<compile_context>
chip_gen: v7x
topology: tpu7x:2x2x1
jax: 0.10.0
libtpu: 0.0.40
codegen_flags: <defaults>
</compile_context>

<pallas_src>
import functools
import math

import numpy as np
import jax
import jax.numpy as jnp
from jax.experimental import pallas as pl
from jax.experimental.pallas import tpu as pltpu


def _round_up(x, m):
    return ((x + m - 1) // m) * m


_COMPILER_PARAMS = pltpu.CompilerParams(
    dimension_semantics=("parallel",),
    vmem_limit_bytes=32 * 1024 * 1024,
)


# ----------------------------------------------------------------------------
# Single fused kernel: encoder conv -> fc_mu/fc_var -> reparameterize ->
# decoder fc -> decoder convT -> sigmoid, all per sample (one grid step each).
# Every stage is a (1, K) @ (K, N) MXU matmul on pre-folded weights.
# ----------------------------------------------------------------------------
def _vae_kernel(x_ref, eps_ref, wenc_ref, benc_ref, wfc_ref, bfc_ref,
                wdfc_ref, bdfc_ref, wdec_ref, bdec_ref,
                rec_ref, mu_ref, lv_ref, *, lp):
    # ---- Encoder conv (3x3, s=2, p=1) as one matmul on the flattened,
    #      zero-padded input (conv structure folded into wenc). ----
    x = x_ref[0]                                          # (1, Kin) bf16
    h = jnp.dot(x, wenc_ref[...], preferred_element_type=jnp.float32)
    h = jnp.maximum(h + benc_ref[...], 0.0)               # (1, feat) f32

    # ---- fc_mu | fc_var fused (lane-aligned 128-wide halves) + reparam ----
    mv = jnp.dot(h.astype(jnp.bfloat16), wfc_ref[...],
                 preferred_element_type=jnp.float32) + bfc_ref[...]
    mu = mv[:, :lp]                                       # (1, lp)
    log_var = mv[:, lp:]                                  # (1, lp)
    z = eps_ref[0] * jnp.exp(0.5 * log_var) + mu          # EUP exp, f32

    # ---- Decoder fc (kept f32: z has wide dynamic range; cost negligible) ----
    d = jnp.dot(z, wdfc_ref[...], preferred_element_type=jnp.float32)
    d = jnp.maximum(d + bdfc_ref[...], 0.0)               # (1, feat) f32

    # ---- Decoder ConvTranspose (3x3, s=2, p=1, op=1) as one matmul ----
    r = jnp.dot(d.astype(jnp.bfloat16), wdec_ref[...],
                preferred_element_type=jnp.float32) + bdec_ref[...]
    rec_ref[0] = jax.nn.sigmoid(r)                        # (1, nout) lane-dense
    mu_ref[0] = mu
    lv_ref[0] = log_var


# ----------------------------------------------------------------------------
# Parameters (canonical layouts) + one-time packing into folded kernel weights.
# Internal flatten convention: (spatial-major, channel-minor), matching
# he.reshape(n, -1) of an NHWC tensor.
# ----------------------------------------------------------------------------
def init_params(key, in_ch, cmid, latent, hw):
    ho = hw // 2
    feat = cmid * ho * ho
    ks = jax.random.split(key, 10)

    def u(k, shape, fan_in):
        bound = 1.0 / math.sqrt(fan_in)
        return jax.random.uniform(k, shape, jnp.float32, -bound, bound)

    return {
        "enc_conv_w": u(ks[0], (3, 3, in_ch, cmid), 9 * in_ch),   # HWIO
        "enc_conv_b": u(ks[1], (cmid,), 9 * in_ch),
        "fc_mu_w": u(ks[2], (feat, latent), feat),
        "fc_mu_b": u(ks[3], (latent,), feat),
        "fc_var_w": u(ks[4], (feat, latent), feat),
        "fc_var_b": u(ks[5], (latent,), feat),
        "dec_fc_w": u(ks[6], (latent, feat), latent),
        "dec_fc_b": u(ks[7], (feat,), latent),
        # ConvTranspose kernel, layout (kh, kw, cmid, in_ch).
        "dec_conv_w": u(ks[8], (3, 3, cmid, in_ch), 9 * cmid),
        "dec_conv_b": u(ks[9], (in_ch,), 9 * cmid),
    }


def pack_params(p, in_ch, cmid, latent, hw):
    ho = wo = hw // 2
    hp = hw + 2                       # zero-padded input spatial extent
    feat = cmid * ho * wo
    lp = _round_up(latent, 128)
    hout = 2 * ho
    nout = hout * hout * in_ch

    enc_w = np.asarray(p["enc_conv_w"], np.float32)   # (3,3,in_ch,cmid)
    dec_w = np.asarray(p["dec_conv_w"], np.float32)   # (3,3,cmid,in_ch)

    # ---- Encoder conv folded to (hp*hp*in_ch, feat): host-side, done once ----
    wenc = np.zeros((hp * hp * in_ch, feat), np.float32)
    for oh in range(ho):
        for ow in range(wo):
            c0 = (oh * wo + ow) * cmid
            for kh in range(3):
                for kw in range(3):
                    r0 = ((2 * oh + kh) * hp + (2 * ow + kw)) * in_ch
                    wenc[r0:r0 + in_ch, c0:c0 + cmid] += enc_w[kh, kw]
    benc = np.tile(np.asarray(p["enc_conv_b"], np.float32), ho * wo)[None]

    # ---- fc_mu | fc_var, lane-aligned 128-wide halves ----
    wfc = np.zeros((feat, 2 * lp), np.float32)
    wfc[:, :latent] = np.asarray(p["fc_mu_w"], np.float32)
    wfc[:, lp:lp + latent] = np.asarray(p["fc_var_w"], np.float32)
    bfc = np.zeros((1, 2 * lp), np.float32)
    bfc[0, :latent] = np.asarray(p["fc_mu_b"], np.float32)
    bfc[0, lp:lp + latent] = np.asarray(p["fc_var_b"], np.float32)

    # ---- Decoder fc: rows padded latent -> lp (z padded lanes are zero) ----
    wdfc = np.zeros((lp, feat), np.float32)
    wdfc[:latent] = np.asarray(p["dec_fc_w"], np.float32)
    bdfc = np.asarray(p["dec_fc_b"], np.float32)[None]

    # ---- Decoder ConvTranspose(k=3,s=2,p=1,op=1) folded to (feat, nout) ----
    # Equivalent to: dilate(2) + pad((1,2),(1,2)) + stride-1 conv w/ flipped kernel.
    wdec = np.zeros((feat, nout), np.float32)
    for oy in range(hout):
        for ox in range(hout):
            c0 = (oy * hout + ox) * in_ch
            for i in range(3):
                for j in range(3):
                    yy, xx = oy + i - 1, ox + j - 1
                    if yy % 2 or xx % 2:
                        continue
                    pi, qj = yy // 2, xx // 2
                    if not (0 <= pi < ho and 0 <= qj < wo):
                        continue
                    r0 = (pi * wo + qj) * cmid
                    wdec[r0:r0 + cmid, c0:c0 + in_ch] += dec_w[2 - i, 2 - j]
    bdec = np.tile(np.asarray(p["dec_conv_b"], np.float32), hout * hout)[None]

    return {
        "wenc": jnp.asarray(wenc, jnp.bfloat16), "benc": jnp.asarray(benc),
        "wfc": jnp.asarray(wfc, jnp.bfloat16), "bfc": jnp.asarray(bfc),
        "wdfc": jnp.asarray(wdfc, jnp.float32), "bdfc": jnp.asarray(bdfc),
        "wdec": jnp.asarray(wdec, jnp.bfloat16), "bdec": jnp.asarray(bdec),
    }


# ----------------------------------------------------------------------------
# Forward pass (external API is NCHW).
# ----------------------------------------------------------------------------
def vae_forward(kp, x_nchw, eps, *, latent, lp, hw, in_ch):
    n = x_nchw.shape[0]
    ho = hw // 2
    kin = (hw + 2) * (hw + 2) * in_ch
    nout = (2 * ho) * (2 * ho) * in_ch

    # Input prep (tiny, pure relayout): NCHW -> NHWC -> pad(1) -> flatten, bf16.
    x = jnp.transpose(x_nchw, (0, 2, 3, 1)).astype(jnp.bfloat16)
    xp = jnp.pad(x, ((0, 0), (1, 1), (1, 1), (0, 0)))
    x_flat = xp.reshape(n, 1, kin)

    eps_p = jnp.zeros((n, 1, lp), jnp.float32).at[:, 0, :latent].set(eps)

    rec_flat, mu_p, lv_p = pl.pallas_call(
        functools.partial(_vae_kernel, lp=lp),
        out_shape=(
            jax.ShapeDtypeStruct((n, 1, nout), jnp.float32),
            jax.ShapeDtypeStruct((n, 1, lp), jnp.float32),
            jax.ShapeDtypeStruct((n, 1, lp), jnp.float32),
        ),
        grid=(n,),
        in_specs=[
            pl.BlockSpec((1, 1, kin), lambda i: (i, 0, 0)),
            pl.BlockSpec((1, 1, lp), lambda i: (i, 0, 0)),
            pl.BlockSpec(kp["wenc"].shape, lambda i: (0, 0)),
            pl.BlockSpec(kp["benc"].shape, lambda i: (0, 0)),
            pl.BlockSpec(kp["wfc"].shape, lambda i: (0, 0)),
            pl.BlockSpec(kp["bfc"].shape, lambda i: (0, 0)),
            pl.BlockSpec(kp["wdfc"].shape, lambda i: (0, 0)),
            pl.BlockSpec(kp["bdfc"].shape, lambda i: (0, 0)),
            pl.BlockSpec(kp["wdec"].shape, lambda i: (0, 0)),
            pl.BlockSpec(kp["bdec"].shape, lambda i: (0, 0)),
        ],
        out_specs=(
            pl.BlockSpec((1, 1, nout), lambda i: (i, 0, 0)),
            pl.BlockSpec((1, 1, lp), lambda i: (i, 0, 0)),
            pl.BlockSpec((1, 1, lp), lambda i: (i, 0, 0)),
        ),
        compiler_params=_COMPILER_PARAMS,
    )(x_flat, eps_p, kp["wenc"], kp["benc"], kp["wfc"], kp["bfc"],
      kp["wdfc"], kp["bdfc"], kp["wdec"], kp["bdec"])

    rec = rec_flat.reshape(n, 2 * ho, 2 * ho, in_ch)       # free contiguous view
    rec_nchw = jnp.transpose(rec, (0, 3, 1, 2))
    mu = mu_p[:, 0, :latent]
    log_var = lv_p[:, 0, :latent]
    return [rec_nchw, x_nchw, mu, log_var]


# ----------------------------------------------------------------------------
# Pure-JAX reference (f32) for a numerical self-check.
# ----------------------------------------------------------------------------
def reference_forward(params, x_nchw, eps):
    x = jnp.transpose(x_nchw, (0, 2, 3, 1)).astype(jnp.float32)
    n, h, w, c = x.shape
    ho, wo = h // 2, w // 2
    cmid = params["enc_conv_b"].shape[0]
    xp = jnp.pad(x, ((0, 0), (1, 1), (1, 1), (0, 0)))
    he = jnp.zeros((n, ho, wo, cmid), jnp.float32)
    for i in range(3):
        for j in range(3):
            he = he + jnp.einsum("nhwc,cd->nhwd",
                                 xp[:, i:i + 2 * ho:2, j:j + 2 * wo:2, :],
                                 params["enc_conv_w"][i, j])
    he = jnp.maximum(he + params["enc_conv_b"], 0.0)
    hf = he.reshape(n, -1)
    mu = hf @ params["fc_mu_w"] + params["fc_mu_b"]
    lv = hf @ params["fc_var_w"] + params["fc_var_b"]
    z = eps * jnp.exp(0.5 * lv) + mu
    d = jnp.maximum(z @ params["dec_fc_w"] + params["dec_fc_b"], 0.0)
    d = d.reshape(n, ho, wo, cmid)
    # ConvTranspose2d(k=3,s=2,p=1,op=1) == dilate(2) + pad(1,2) + flipped conv.
    dd = jnp.zeros((n, 2 * ho - 1, 2 * wo - 1, cmid), jnp.float32)
    dd = dd.at[:, ::2, ::2, :].set(d)
    dp = jnp.pad(dd, ((0, 0), (1, 2), (1, 2), (0, 0)))
    rec = jnp.zeros((n, 2 * ho, 2 * wo, c), jnp.float32)
    for i in range(3):
        for j in range(3):
            rec = rec + jnp.einsum("nhwc,cd->nhwd",
                                   dp[:, i:i + 2 * ho, j:j + 2 * wo, :],
                                   params["dec_conv_w"][2 - i, 2 - j])
    rec = jax.nn.sigmoid(rec + params["dec_conv_b"])
    return jnp.transpose(rec, (0, 3, 1, 2)), mu, lv


# ----------------------------------------------------------------------------
if __name__ == "__main__":
    in_channels, conv_out_channels, latent_dim, hw = 4, 8, 32, 16
    batch = 2

    key = jax.random.PRNGKey(0)
    kx, keps = jax.random.split(key)
    x = jax.random.normal(kx, (batch, in_channels, hw, hw), jnp.float32)
    eps = jax.random.normal(keps, (batch, latent_dim), jnp.float32)

    params = init_params(jax.random.PRNGKey(42), in_channels,
                         conv_out_channels, latent_dim, hw)
    kparams = pack_params(params, in_channels, conv_out_channels,
                          latent_dim, hw)
    lp = _round_up(latent_dim, 128)

    fwd = jax.jit(functools.partial(
        vae_forward, latent=latent_dim, lp=lp, hw=hw, in_ch=in_channels))
    recon, inp, mu, log_var = fwd(kparams, x, eps)
    jax.block_until_ready(recon)

    # Shape / sanity checks.
    assert recon.shape == x.shape, (recon.shape, x.shape)
    assert mu.shape == (batch, latent_dim)
    assert log_var.shape == (batch, latent_dim)
    assert bool(jnp.all(jnp.isfinite(recon)))
    assert bool(jnp.all((recon >= 0.0) & (recon <= 1.0)))

    # Numerical check vs pure-JAX f32 reference (bf16 MXU tolerance).
    ref_rec, ref_mu, ref_lv = reference_forward(params, x, eps)
    assert float(jnp.max(jnp.abs(mu - ref_mu))) < 5e-2
    assert float(jnp.max(jnp.abs(log_var - ref_lv))) < 5e-2
    assert float(jnp.max(jnp.abs(recon - ref_rec))) < 5e-2

    print("KERNEL_OK")
</pallas_src>

<mosaic_0001>
module attributes {stable_mosaic.version = 11 : i64} {
  func.func @_vae_kernel(%arg0: i32, %arg1: memref<1x1x1296xbf16, #tpu.memory_space<vmem>>, %arg2: memref<1x1x128xf32, #tpu.memory_space<vmem>>, %arg3: memref<1296x512xbf16, #tpu.memory_space<vmem>>, %arg4: memref<1x512xf32, #tpu.memory_space<vmem>>, %arg5: memref<512x256xbf16, #tpu.memory_space<vmem>>, %arg6: memref<1x256xf32, #tpu.memory_space<vmem>>, %arg7: memref<128x512xf32, #tpu.memory_space<vmem>>, %arg8: memref<1x512xf32, #tpu.memory_space<vmem>>, %arg9: memref<512x1024xbf16, #tpu.memory_space<vmem>>, %arg10: memref<1x1024xf32, #tpu.memory_space<vmem>>, %arg11: memref<1x1x1024xf32, #tpu.memory_space<vmem>>, %arg12: memref<1x1x128xf32, #tpu.memory_space<vmem>>, %arg13: memref<1x1x128xf32, #tpu.memory_space<vmem>>) attributes {dimension_semantics = [#tpu.dimension_semantics<parallel>], iteration_bounds = array<i64: 2>, scalar_prefetch = 0 : i64, scratch_operands = 0 : i64, tpu.core_type = #tpu.core_type<tc>, window_params = [{transform_indices = @transform_0, window_bounds = array<i64: 1, 1, 1296>}, {transform_indices = @transform_1, window_bounds = array<i64: 1, 1, 128>}, {pipeline_mode = #tpu.pipeline_mode<synchronous>, transform_indices = @transform_2, window_bounds = array<i64: 1296, 512>}, {pipeline_mode = #tpu.pipeline_mode<synchronous>, transform_indices = @transform_3, window_bounds = array<i64: 1, 512>}, {pipeline_mode = #tpu.pipeline_mode<synchronous>, transform_indices = @transform_4, window_bounds = array<i64: 512, 256>}, {pipeline_mode = #tpu.pipeline_mode<synchronous>, transform_indices = @transform_5, window_bounds = array<i64: 1, 256>}, {pipeline_mode = #tpu.pipeline_mode<synchronous>, transform_indices = @transform_6, window_bounds = array<i64: 128, 512>}, {pipeline_mode = #tpu.pipeline_mode<synchronous>, transform_indices = @transform_7, window_bounds = array<i64: 1, 512>}, {pipeline_mode = #tpu.pipeline_mode<synchronous>, transform_indices = @transform_8, window_bounds = array<i64: 512, 1024>}, {pipeline_mode = #tpu.pipeline_mode<synchronous>, transform_indices = @transform_9, window_bounds = array<i64: 1, 1024>}, {transform_indices = @transform_10, window_bounds = array<i64: 1, 1, 1024>}, {transform_indices = @transform_11, window_bounds = array<i64: 1, 1, 128>}, {transform_indices = @transform_12, window_bounds = array<i64: 1, 1, 128>}]} {
    %c0 = arith.constant 0 : index
    %c0_0 = arith.constant 0 : index
    %c0_1 = arith.constant 0 : index
    %0 = vector.load %arg1[%c0, %c0_0, %c0_1] : memref<1x1x1296xbf16, #tpu.memory_space<vmem>>, vector<1x1x1296xbf16>
    %1 = vector.shape_cast %0 : vector<1x1x1296xbf16> to vector<1x1296xbf16>
    %c0_2 = arith.constant 0 : index
    %c0_3 = arith.constant 0 : index
    %2 = vector.load %arg3[%c0_2, %c0_3] : memref<1296x512xbf16, #tpu.memory_space<vmem>>, vector<1296x512xbf16>
    %cst = arith.constant dense<0.000000e+00> : vector<1x512xf32>
    %3 = tpu.matmul %1, %2, %cst {dimension_numbers = #tpu.dot_dimension_numbers<[1], [0], [0], [1], [0, 0, 1, 1], [], []>} : vector<1x1296xbf16>, vector<1296x512xbf16>, vector<1x512xf32> -> vector<1x512xf32>
    %c0_4 = arith.constant 0 : index
    %c0_5 = arith.constant 0 : index
    %4 = vector.load %arg4[%c0_4, %c0_5] : memref<1x512xf32, #tpu.memory_space<vmem>>, vector<1x512xf32>
    %5 = arith.addf %3, %4 : vector<1x512xf32>
    %cst_6 = arith.constant 0.000000e+00 : f32
    %6 = vector.broadcast %cst_6 : f32 to vector<1x512xf32>
    %7 = arith.maximumf %5, %6 : vector<1x512xf32>
    %8 = arith.truncf %7 : vector<1x512xf32> to vector<1x512xbf16>
    %c0_7 = arith.constant 0 : index
    %c0_8 = arith.constant 0 : index
    %9 = vector.load %arg5[%c0_7, %c0_8] : memref<512x256xbf16, #tpu.memory_space<vmem>>, vector<512x256xbf16>
    %cst_9 = arith.constant dense<0.000000e+00> : vector<1x256xf32>
    %10 = tpu.matmul %8, %9, %cst_9 {dimension_numbers = #tpu.dot_dimension_numbers<[1], [0], [0], [1], [0, 0, 1, 1], [], []>} : vector<1x512xbf16>, vector<512x256xbf16>, vector<1x256xf32> -> vector<1x256xf32>
    %c0_10 = arith.constant 0 : index
    %c0_11 = arith.constant 0 : index
    %11 = vector.load %arg6[%c0_10, %c0_11] : memref<1x256xf32, #tpu.memory_space<vmem>>, vector<1x256xf32>
    %12 = arith.addf %10, %11 : vector<1x256xf32>
    %13 = vector.extract_strided_slice %12 {offsets = [0, 0], sizes = [1, 128], strides = [1, 1]} : vector<1x256xf32> to vector<1x128xf32>
    %14 = vector.extract_strided_slice %12 {offsets = [0, 128], sizes = [1, 128], strides = [1, 1]} : vector<1x256xf32> to vector<1x128xf32>
    %c0_12 = arith.constant 0 : index
    %c0_13 = arith.constant 0 : index
    %c0_14 = arith.constant 0 : index
    %15 = vector.load %arg2[%c0_12, %c0_13, %c0_14] : memref<1x1x128xf32, #tpu.memory_space<vmem>>, vector<1x1x128xf32>
    %16 = vector.shape_cast %15 : vector<1x1x128xf32> to vector<1x128xf32>
    %cst_15 = arith.constant 5.000000e-01 : f32
    %17 = vector.broadcast %cst_15 : f32 to vector<1x128xf32>
    %18 = arith.mulf %17, %14 : vector<1x128xf32>
    %19 = math.exp %18 : vector<1x128xf32>
    %20 = arith.mulf %16, %19 : vector<1x128xf32>
    %21 = arith.addf %20, %13 : vector<1x128xf32>
    %c0_16 = arith.constant 0 : index
    %c0_17 = arith.constant 0 : index
    %22 = vector.load %arg7[%c0_16, %c0_17] : memref<128x512xf32, #tpu.memory_space<vmem>>, vector<128x512xf32>
    %cst_18 = arith.constant dense<0.000000e+00> : vector<1x512xf32>
    %23 = tpu.matmul %21, %22, %cst_18 {dimension_numbers = #tpu.dot_dimension_numbers<[1], [0], [0], [1], [0, 0, 1, 1], [], []>} : vector<1x128xf32>, vector<128x512xf32>, vector<1x512xf32> -> vector<1x512xf32>
    %c0_19 = arith.constant 0 : index
    %c0_20 = arith.constant 0 : index
    %24 = vector.load %arg8[%c0_19, %c0_20] : memref<1x512xf32, #tpu.memory_space<vmem>>, vector<1x512xf32>
    %25 = arith.addf %23, %24 : vector<1x512xf32>
    %cst_21 = arith.constant 0.000000e+00 : f32
    %26 = vector.broadcast %cst_21 : f32 to vector<1x512xf32>
    %27 = arith.maximumf %25, %26 : vector<1x512xf32>
    %28 = arith.truncf %27 : vector<1x512xf32> to vector<1x512xbf16>
    %c0_22 = arith.constant 0 : index
    %c0_23 = arith.constant 0 : index
    %29 = vector.load %arg9[%c0_22, %c0_23] : memref<512x1024xbf16, #tpu.memory_space<vmem>>, vector<512x1024xbf16>
    %cst_24 = arith.constant dense<0.000000e+00> : vector<1x1024xf32>
    %30 = tpu.matmul %28, %29, %cst_24 {dimension_numbers = #tpu.dot_dimension_numbers<[1], [0], [0], [1], [0, 0, 1, 1], [], []>} : vector<1x512xbf16>, vector<512x1024xbf16>, vector<1x1024xf32> -> vector<1x1024xf32>
    %c0_25 = arith.constant 0 : index
    %c0_26 = arith.constant 0 : index
    %31 = vector.load %arg10[%c0_25, %c0_26] : memref<1x1024xf32, #tpu.memory_space<vmem>>, vector<1x1024xf32>
    %32 = arith.addf %30, %31 : vector<1x1024xf32>
    %33 = arith.negf %32 : vector<1x1024xf32>
    %34 = math.exp %33 : vector<1x1024xf32>
    %cst_27 = arith.constant 1.000000e+00 : f32
    %35 = vector.broadcast %cst_27 : f32 to vector<1x1024xf32>
    %36 = arith.addf %35, %34 : vector<1x1024xf32>
    %37 = arith.divf %35, %36 : vector<1x1024xf32>
    %c0_28 = arith.constant 0 : index
    %c0_29 = arith.constant 0 : index
    %c0_30 = arith.constant 0 : index
    %38 = vector.load %arg11[%c0_28, %c0_29, %c0_30] : memref<1x1x1024xf32, #tpu.memory_space<vmem>>, vector<1x1x1024xf32>
    %39 = vector.shape_cast %38 : vector<1x1x1024xf32> to vector<1x1024xf32>
    %40 = vector.shape_cast %37 : vector<1x1024xf32> to vector<1x1x1024xf32>
    tpu.vector_store %arg11[%c0_28, %c0_29, %c0_30], %40 {strides = array<i32>} : memref<1x1x1024xf32, #tpu.memory_space<vmem>>, vector<1x1x1024xf32>,
    %c0_31 = arith.constant 0 : index
    %c0_32 = arith.constant 0 : index
    %c0_33 = arith.constant 0 : index
    %41 = vector.load %arg12[%c0_31, %c0_32, %c0_33] : memref<1x1x128xf32, #tpu.memory_space<vmem>>, vector<1x1x128xf32>
    %42 = vector.shape_cast %41 : vector<1x1x128xf32> to vector<1x128xf32>
    %43 = vector.shape_cast %13 : vector<1x128xf32> to vector<1x1x128xf32>
    tpu.vector_store %arg12[%c0_31, %c0_32, %c0_33], %43 {strides = array<i32>} : memref<1x1x128xf32, #tpu.memory_space<vmem>>, vector<1x1x128xf32>,
    %c0_34 = arith.constant 0 : index
    %c0_35 = arith.constant 0 : index
    %c0_36 = arith.constant 0 : index
    %44 = vector.load %arg13[%c0_34, %c0_35, %c0_36] : memref<1x1x128xf32, #tpu.memory_space<vmem>>, vector<1x1x128xf32>
    %45 = vector.shape_cast %44 : vector<1x1x128xf32> to vector<1x128xf32>
    %46 = vector.shape_cast %14 : vector<1x128xf32> to vector<1x1x128xf32>
    tpu.vector_store %arg13[%c0_34, %c0_35, %c0_36], %46 {strides = array<i32>} : memref<1x1x128xf32, #tpu.memory_space<vmem>>, vector<1x1x128xf32>,
    return
  }
  func.func @transform_0(%arg0: i32) -> (i32, i32, i32) {
    %c0_i32 = arith.constant 0 : i32
    %c0_i32_0 = arith.constant 0 : i32
    %c0_i32_1 = arith.constant 0 : i32
    return %arg0, %c0_i32, %c0_i32_0 : i32, i32, i32
  }
  func.func @transform_1(%arg0: i32) -> (i32, i32, i32) {
    %c0_i32 = arith.constant 0 : i32
    %c0_i32_0 = arith.constant 0 : i32
    %c0_i32_1 = arith.constant 0 : i32
    return %arg0, %c0_i32, %c0_i32_0 : i32, i32, i32
  }
  func.func @transform_2(%arg0: i32) -> (i32, i32) {
    %c0_i32 = arith.constant 0 : i32
    %c0_i32_0 = arith.constant 0 : i32
    %c0_i32_1 = arith.constant 0 : i32
    return %c0_i32, %c0_i32_0 : i32, i32
  }
  func.func @transform_3(%arg0: i32) -> (i32, i32) {
    %c0_i32 = arith.constant 0 : i32
    %c0_i32_0 = arith.constant 0 : i32
    %c0_i32_1 = arith.constant 0 : i32
    return %c0_i32, %c0_i32_0 : i32, i32
  }
  func.func @transform_4(%arg0: i32) -> (i32, i32) {
    %c0_i32 = arith.constant 0 : i32
    %c0_i32_0 = arith.constant 0 : i32
    %c0_i32_1 = arith.constant 0 : i32
    return %c0_i32, %c0_i32_0 : i32, i32
  }
  func.func @transform_5(%arg0: i32) -> (i32, i32) {
    %c0_i32 = arith.constant 0 : i32
    %c0_i32_0 = arith.constant 0 : i32
    %c0_i32_1 = arith.constant 0 : i32
    return %c0_i32, %c0_i32_0 : i32, i32
  }
  func.func @transform_6(%arg0: i32) -> (i32, i32) {
    %c0_i32 = arith.constant 0 : i32
    %c0_i32_0 = arith.constant 0 : i32
    %c0_i32_1 = arith.constant 0 : i32
    return %c0_i32, %c0_i32_0 : i32, i32
  }
  func.func @transform_7(%arg0: i32) -> (i32, i32) {
    %c0_i32 = arith.constant 0 : i32
    %c0_i32_0 = arith.constant 0 : i32
    %c0_i32_1 = arith.constant 0 : i32
    return %c0_i32, %c0_i32_0 : i32, i32
  }
  func.func @transform_8(%arg0: i32) -> (i32, i32) {
    %c0_i32 = arith.constant 0 : i32
    %c0_i32_0 = arith.constant 0 : i32
    %c0_i32_1 = arith.constant 0 : i32
    return %c0_i32, %c0_i32_0 : i32, i32
  }
  func.func @transform_9(%arg0: i32) -> (i32, i32) {
    %c0_i32 = arith.constant 0 : i32
    %c0_i32_0 = arith.constant 0 : i32
    %c0_i32_1 = arith.constant 0 : i32
    return %c0_i32, %c0_i32_0 : i32, i32
  }
  func.func @transform_10(%arg0: i32) -> (i32, i32, i32) {
    %c0_i32 = arith.constant 0 : i32
    %c0_i32_0 = arith.constant 0 : i32
    %c0_i32_1 = arith.constant 0 : i32
    return %arg0, %c0_i32, %c0_i32_0 : i32, i32, i32
  }
  func.func @transform_11(%arg0: i32) -> (i32, i32, i32) {
    %c0_i32 = arith.constant 0 : i32
    %c0_i32_0 = arith.constant 0 : i32
    %c0_i32_1 = arith.constant 0 : i32
    return %arg0, %c0_i32, %c0_i32_0 : i32, i32, i32
  }
  func.func @transform_12(%arg0: i32) -> (i32, i32, i32) {
    %c0_i32 = arith.constant 0 : i32
    %c0_i32_0 = arith.constant 0 : i32
    %c0_i32_1 = arith.constant 0 : i32
    return %arg0, %c0_i32, %c0_i32_0 : i32, i32, i32
  }
}

</mosaic_0001>

<bundles_post_ra>
// kernel: vae_forward.1
= control target key start
LH: loop header
LB: loop body
LE: loop exit
PB: predicated region body
PF: predicated region fallthrough
CT: control target
= control target key end

     0   :  { %s8585_s0 = inlined_call_operand.vmem [shape: bf16[2,1,1296], index: 0, kind: input, shape index: {}]   ;;  %s8586_s1 = inlined_call_operand.vmem [shape: f32[2,1,128], index: 1, kind: input, shape index: {}]   ;;  %s8587_s2 = inlined_call_operand.hbm [shape: bf16[1296,512], index: 2, kind: input, shape index: {}]   ;;  %s8588_s3 = inlined_call_operand.hbm [shape: f32[1,512], index: 3, kind: input, shape index: {}]   ;;  %s8589_s4 = inlined_call_operand.hbm [shape: bf16[512,256], index: 4, kind: input, shape index: {}]   ;;  %s8590_s5 = inlined_call_operand.hbm [shape: f32[1,256], index: 5, kind: input, shape index: {}]   ;;  %s8591_s6 = inlined_call_operand.hbm [shape: f32[128,512], index: 6, kind: input, shape index: {}]   ;;  %s8592_s7 = inlined_call_operand.hbm [shape: f32[1,512], index: 7, kind: input, shape index: {}]   ;;  %s8593_s8 = inlined_call_operand.hbm [shape: bf16[512,1024], index: 8, kind: input, shape index: {}]   ;;  %s8594_s9 = inlined_call_operand.hbm [shape: f32[1,1024], index: 9, kind: input, shape index: {}]   ;;  %s8595_s10 = inlined_call_operand.vmem [shape: f32[2,1,1024], index: 10, kind: output, shape index: {0}]   ;;  %s8596_s11 = inlined_call_operand.hbm [shape: f32[2,1,128], index: 11, kind: output, shape index: {1}]   ;;  %s8597_s12 = inlined_call_operand.hbm [shape: f32[2,1,128], index: 12, kind: output, shape index: {2}]  }
   0x1   :  { %8607 = sst [smem:[#allocation32_spill]] %s8588_s3 }
   0x2   :  { %8608 = sst [smem:[#allocation33_spill]] %s8590_s5 }
   0x3   :  { %18 = vsyncpa [#allocation3], 0 }
   0x4   :  { %19 = vsyncpa [#allocation6], 0 }
   0x5   :  { %20 = vsyncpa [#allocation9], 0 }
   0x6   :  { %21 = vsyncpa [#allocation12], 0 }
   0x7   :  { %22 = vsyncpa [#allocation15], 0 }
   0x8   :  { %23 = vsyncpa [#allocation4], 0 }
   0x9   :  { %25 = vsyncpa [#allocation4 + $0x1], 0 }
   0xa   :  { %26 = vsyncpa [#allocation18], 0 }
   0xb   :  { %28 = vsyncpa [#allocation18 + $0x1], 0  ;;  %s8068_s21 = smov 0   ;;  %s8070_s22 = smov 0  }
   0xc   :  { %s8072_s23 = smov 0   ;;  %s8074_s24 = smov 0  }
   0xd LB: > { %8609 = sst [smem:[#allocation26_spill]] %s7970_s21  ;;  %s8089_s25 = sadd.s32 4294967295, %s7982_s24   ;;  %s7982_s24 = sphi %s8074_s24, %s8638_s24   ;;  %s7978_s23 = sphi %s8072_s23, %s8640_s23   ;;  %s7974_s22 = sphi %s8070_s22, %s8642_s22   ;;  %s7970_s21 = sphi %s8068_s21, %s8641_s21  }
   0xe   : > { %8610 = sst [smem:[#allocation27_spill]] %s7978_s23  ;;  %s6075_s26 = sadd.s32 4294967294, %s7982_s24  }
   0xf   : > { %8611 = sst [smem:[#allocation28_spill]] %s7982_s24  ;;  %s8093_s27 = sadd.s32 1, %s7982_s24  }
  0x10   : > { %8612 = sst [smem:[#allocation29_spill]] %s8093_s27  ;;  %s287_s28 = sadd.s32 1, %s7978_s23 }
  0x11   : > { %s284_s29 = ssub.s32 %s7982_s24, %s8093_s27  ;;  %p297_p0 = scmp.ne.s32.totalorder %s7978_s23, %s7974_s22 }
  0x12   : > { %p285_p1 = scmp.eq.s32.totalorder %s284_s29, 0  ;;  %p298_p2 = scmp.eq.s32.totalorder %s8089_s25, 1 }
  0x13   : > { %p303_p3 = scmp.ne.s32.totalorder %s7974_s22, %s7970_s21  ;;  %p304_p4 = scmp.eq.s32.totalorder %s6075_s26, 1 }
  0x14   : > { %s8104_s30 = scalar_select %p285_p1, %s7978_s23, %s287_s28  }
  0x15   : > { %p8106_p5 = por %p298_p2, %p297_p0  ;;  %p8110_p6 = por %p304_p4, %p303_p3 }
  0x16   : > { %8613 = sst [smem:[#allocation30_spill]] %s8104_s30  ;;  %p6076_p7 = scmp.ge.s32.totalorder %s7982_s24, 1 }
  0x17   : > { %s8614_s13 = scalar_select %p8106_p5, 1, 0 }
  0x18   : > { %s8615_s14 = scalar_select %p8110_p6, 1, 0 }
  0x19   : > { %p337_p8 = scmp.lt.s32.totalorder %s7982_s24, 3  ;;  %p8602_p9 = scmp.eq.s32.totalorder %s8089_s25, 0 }
  0x1a   : > { %8616 = sst [smem:[#allocation31_spill]] %s8615_s14  ;;  %s7984_s16 = smov [#allocation5]  }
  0x1b   : > { %p8117_p10 = pnand %p6076_p7, %p337_p8  ;;  %s363_s17 = sshll.u32 %s7984_s16, 4  ;;  %s364_s17 = int_to_ptr.vmem [resolvable:$true] %s363_s17 }
  0x1c   : > { %s7985_s18 = smov [#allocation8]   ;;  %s7986_s26 = smov [#allocation11]  }
  0x1d   : > { %s8617_s15 = scalar_select %p8117_p10, 1, 0 }
  0x1e   : > { %p6928_p11 = pneg %p8117_p10  ;;  %s387_s19 = sshll.u32 %s7985_s18, 4  ;;  %s8129_s19 = int_to_ptr.vmem [resolvable:$true] %s387_s19 }
  0x1f   : > { %s411_s28 = sshll.u32 %s7986_s26, 4  ;;  %s8619_s3 = sld [smem:[#allocation32_spill]]  ;;  %s8131_s28 = int_to_ptr.vmem [resolvable:$true] %s411_s28 }
  0x20   : > { %p8125_p12 = pnand %p8602_p9, %p6928_p11 }
  0x22   : > { %p8141_p0 = pneg %p8125_p12 }
  0x25   : > { %s7644_s16 = scalar_lea.hbm %s8619_s3, 64 }
  0x26   : > { %p7645_p13 = scmp.ne.s32.totalorder %s8619_s3, %s7644_s16  ;;  %p7651_p3 = scmp.lt.u32.totalorder %s7644_s16, %s8619_s3 }
  0x28   : > { %p7647_p1 = pnand %p8141_p0, %p7645_p13 }
  0x2a   : > { %p7648_p2 = pneg %p7647_p1 }
  0x2c   : > { %p7653_p4 = pnand %p7651_p3, %p7648_p2 }
  0x2e   : > { %7656 = shalt.err (!%p7653_p4)
}
  0x2f   : > { %s7657_s30 = scalar_lea.vmem %s364_s17, 64  ;;  %p7665_p9 = scmp.lt.s32.totalorder %s364_s17, %s364_s17 }
  0x30   : > { %p7658_p7 = scmp.ne.s32.totalorder %s364_s17, %s7657_s30  ;;  %p7666_p6 = scmp.lt.s32.totalorder %s7657_s30, %s7657_s30 }
  0x32   : > { %p7660_p8 = pnand %p7658_p7, %p8141_p0  ;;  %p7667_p5 = por %p7666_p6, %p7665_p9 }
  0x34   : > { %p7661_p11 = pneg %p7660_p8 }
  0x36   : > { %p7668_p10 = pnand %p7667_p5, %p7661_p11 }
  0x38   : > { %7671 = shalt.err (!%p7668_p10)
}
  0x39   : > { %6934 = dma.hbm_to_vmem [thread:$0]  (!%p8125_p12), %s8619_s3, 64, %s364_s17, [#allocation6]  }
  0x3a   : > { %s8621_s5 = sld [smem:[#allocation33_spill]] }
  0x40   : > { %s7672_s16 = scalar_lea.hbm %s8621_s5, 32 }
  0x41   : > { %p7673_p13 = scmp.ne.s32.totalorder %s8621_s5, %s7672_s16  ;;  %p7679_p5 = scmp.lt.u32.totalorder %s7672_s16, %s8621_s5 }
  0x43   : > { %p7675_p1 = pnand %p7673_p13, %p8141_p0 }
  0x45   : > { %p7676_p6 = pneg %p7675_p1 }
  0x47   : > { %p7681_p9 = pnand %p7679_p5, %p7676_p6 }
  0x49   : > { %7684 = shalt.err (!%p7681_p9)
}
  0x4a   : > { %s7685_s17 = scalar_lea.vmem %s8129_s19, 32  ;;  %p7693_p4 = scmp.lt.s32.totalorder %s8129_s19, %s8129_s19 }
  0x4b   : > { %p7686_p10 = scmp.ne.s32.totalorder %s8129_s19, %s7685_s17  ;;  %p7694_p7 = scmp.lt.s32.totalorder %s7685_s17, %s7685_s17 }
  0x4d   : > { %p7688_p2 = pnand %p7686_p10, %p8141_p0  ;;  %p7695_p8 = por %p7694_p7, %p7693_p4 }
  0x4f   : > { %p7689_p3 = pneg %p7688_p2 }
  0x51   : > { %p7696_p11 = pnand %p7695_p8, %p7689_p3 }
  0x53   : > { %7699 = shalt.err (!%p7696_p11)
}
  0x54   : > { %6940 = dma.hbm_to_vmem [thread:$0]  (!%p8125_p12), %s8621_s5, 32, %s8129_s19, [#allocation9]  }
  0x55   : > { %s7700_s14 = scalar_lea.hbm %s8592_s7, 64 }
  0x56   : > { %p7701_p13 = scmp.ne.s32.totalorder %s8592_s7, %s7700_s14  ;;  %p7707_p5 = scmp.lt.u32.totalorder %s7700_s14, %s8592_s7 }
  0x58   : > { %p7703_p1 = pnand %p7701_p13, %p8141_p0 }
  0x5a   : > { %p7704_p6 = pneg %p7703_p1 }
  0x5c   : > { %p7709_p9 = pnand %p7707_p5, %p7704_p6 }
  0x5e   : > { %7712 = shalt.err (!%p7709_p9)
}
  0x5f   : > { %s7713_s19 = scalar_lea.vmem %s8131_s28, 64  ;;  %p7721_p4 = scmp.lt.s32.totalorder %s8131_s28, %s8131_s28 }
  0x60   : > { %p7714_p10 = scmp.ne.s32.totalorder %s8131_s28, %s7713_s19  ;;  %p7722_p7 = scmp.lt.s32.totalorder %s7713_s19, %s7713_s19 }
  0x62   : > { %p7716_p2 = pnand %p7714_p10, %p8141_p0  ;;  %p7723_p8 = por %p7722_p7, %p7721_p4 }
  0x64   : > { %p7717_p3 = pneg %p7716_p2 }
  0x66   : > { %p7724_p11 = pnand %p7723_p8, %p7717_p3 }
  0x68   : > { %7727 = shalt.err (!%p7724_p11)
}
  0x69   : > { %6946 = dma.hbm_to_vmem [thread:$0]  (!%p8125_p12), %s8592_s7, 64, %s8131_s28, [#allocation12]  }
  0x6a   : > { %s7987_s24 = smov [#allocation2]   ;;  %s7728_s29 = scalar_lea.hbm %s8587_s2, 41472 }
  0x6b   : > { %s349_s23 = sshll.u32 %s7987_s24, 4  ;;  %p7729_p13 = scmp.ne.s32.totalorder %s8587_s2, %s7728_s29  ;;  %s350_s23 = int_to_ptr.vmem [resolvable:$true] %s349_s23 }
  0x6c   : > { %p7735_p5 = scmp.lt.u32.totalorder %s7728_s29, %s8587_s2 }
  0x6d   : > { %p7731_p1 = pnand %p7729_p13, %p8141_p0 }
  0x6f   : > { %p7732_p6 = pneg %p7731_p1 }
  0x71   : > { %p7737_p9 = pnand %p7735_p5, %p7732_p6 }
  0x73   : > { %7740 = shalt.err (!%p7737_p9)
}
  0x74   : > { %s7741_s28 = scalar_lea.vmem %s350_s23, 41472  ;;  %p7749_p4 = scmp.lt.s32.totalorder %s350_s23, %s350_s23 }
  0x75   : > { %p7742_p10 = scmp.ne.s32.totalorder %s350_s23, %s7741_s28  ;;  %p7750_p7 = scmp.lt.s32.totalorder %s7741_s28, %s7741_s28 }
  0x77   : > { %p7744_p2 = pnand %p7742_p10, %p8141_p0  ;;  %p7751_p8 = por %p7750_p7, %p7749_p4 }
  0x79   : > { %p7745_p3 = pneg %p7744_p2 }
  0x7b   : > { %p7752_p11 = pnand %p7751_p8, %p7745_p3 }
  0x7d   : > { %7755 = shalt.err (!%p7752_p11)
}
  0x7e   : > { %s7988_s17 = smov 256   ;;  %s7989_s21 = smov 16  }
  0x7f   : > { %6931 = dma.hbm_to_vmem [thread:$0]  (!%p8125_p12), %s8587_s2, 41472, %s350_s23, [#allocation3], %s7988_s17, %s7988_s17, %s7989_s21  }
  0x80   : > { %s7990_s14 = smov [#allocation7]   ;;  %s7756_s30 = scalar_lea.hbm %s8589_s4, 8192 }
  0x81   : > { %s373_s29 = sshll.u32 %s7990_s14, 4  ;;  %p7757_p13 = scmp.ne.s32.totalorder %s8589_s4, %s7756_s30  ;;  %s374_s29 = int_to_ptr.vmem [resolvable:$true] %s373_s29 }
  0x82   : > { %p7763_p5 = scmp.lt.u32.totalorder %s7756_s30, %s8589_s4 }
  0x83   : > { %p7759_p1 = pnand %p7757_p13, %p8141_p0 }
  0x85   : > { %p7760_p6 = pneg %p7759_p1 }
  0x87   : > { %p7765_p9 = pnand %p7763_p5, %p7760_p6 }
  0x89   : > { %7768 = shalt.err (!%p7765_p9)
}
  0x8a   : > { %s7769_s23 = scalar_lea.vmem %s374_s29, 8192  ;;  %p7777_p4 = scmp.lt.s32.totalorder %s374_s29, %s374_s29 }
  0x8b   : > { %p7770_p10 = scmp.ne.s32.totalorder %s374_s29, %s7769_s23  ;;  %p7778_p7 = scmp.lt.s32.totalorder %s7769_s23, %s7769_s23 }
  0x8d   : > { %p7772_p2 = pnand %p7770_p10, %p8141_p0  ;;  %p7779_p8 = por %p7778_p7, %p7777_p4 }
  0x8f   : > { %p7773_p3 = pneg %p7772_p2 }
  0x91   : > { %p7780_p11 = pnand %p7779_p8, %p7773_p3 }
  0x93   : > { %7783 = shalt.err (!%p7780_p11)
}
  0x94   : > { %s7991_s17 = smov 128   ;;  %s7992_s21 = smov 8  }
  0x95   : > { %6937 = dma.hbm_to_vmem [thread:$0]  (!%p8125_p12), %s8589_s4, 8192, %s374_s29, [#allocation6], %s7991_s17, %s7991_s17, %s7992_s21  }
  0x96   : > { %s7993_s24 = smov [#allocation10]   ;;  %s7784_s26 = scalar_lea.hbm %s8591_s6, 8192 }
  0x97   : > { %s397_s27 = sshll.u32 %s7993_s24, 4  ;;  %p7785_p13 = scmp.ne.s32.totalorder %s8591_s6, %s7784_s26  ;;  %s398_s27 = int_to_ptr.vmem [resolvable:$true] %s397_s27 }
  0x98   : > { %p7791_p5 = scmp.lt.u32.totalorder %s7784_s26, %s8591_s6 }
  0x99   : > { %p7787_p1 = pnand %p7785_p13, %p8141_p0 }
  0x9b   : > { %p7788_p6 = pneg %p7787_p1 }
  0x9d   : > { %p7793_p9 = pnand %p7791_p5, %p7788_p6 }
  0x9f   : > { %7796 = shalt.err (!%p7793_p9)
}
  0xa0   : > { %s7797_s29 = scalar_lea.vmem %s398_s27, 8192  ;;  %p7805_p4 = scmp.lt.s32.totalorder %s398_s27, %s398_s27 }
  0xa1   : > { %p7798_p10 = scmp.ne.s32.totalorder %s398_s27, %s7797_s29  ;;  %p7806_p7 = scmp.lt.s32.totalorder %s7797_s29, %s7797_s29 }
  0xa3   : > { %p7800_p2 = pnand %p7798_p10, %p8141_p0  ;;  %p7807_p8 = por %p7806_p7, %p7805_p4 }
  0xa5   : > { %p7801_p3 = pneg %p7800_p2 }
  0xa7   : > { %p7808_p11 = pnand %p7807_p8, %p7801_p3 }
  0xa9   : > { %7811 = shalt.err (!%p7808_p11)
}
  0xaa   : > { %s7994_s17 = smov 512   ;;  %s7995_s21 = smov 32  }
  0xab   : > { %6943 = dma.hbm_to_vmem [thread:$0]  (!%p8125_p12), %s8591_s6, 8192, %s398_s27, [#allocation9], %s7994_s17, %s7994_s17, %s7995_s21  }
  0xac   : > { %s7996_s24 = smov [#allocation13]   ;;  %s7997_s16 = smov [#allocation14]  }
  0xad   : > { %s421_s14 = sshll.u32 %s7996_s24, 4  ;;  %s435_s26 = sshll.u32 %s7997_s16, 4  ;;  %s422_s14 = int_to_ptr.vmem [resolvable:$true] %s421_s14  ;;  %s8257_s26 = int_to_ptr.vmem [resolvable:$true] %s435_s26 }
  0xae   : > { %s7812_s28 = scalar_lea.hbm %s8593_s8, 32768 }
  0xaf   : > { %p7813_p13 = scmp.ne.s32.totalorder %s8593_s8, %s7812_s28  ;;  %p7819_p5 = scmp.lt.u32.totalorder %s7812_s28, %s8593_s8 }
  0xb1   : > { %p7815_p1 = pnand %p7813_p13, %p8141_p0 }
  0xb3   : > { %p7816_p6 = pneg %p7815_p1 }
  0xb5   : > { %p7821_p9 = pnand %p7819_p5, %p7816_p6 }
  0xb7   : > { %7824 = shalt.err (!%p7821_p9)
}
  0xb8   : > { %s7825_s5 = scalar_lea.vmem %s422_s14, 32768  ;;  %p7833_p4 = scmp.lt.s32.totalorder %s422_s14, %s422_s14 }
  0xb9   : > { %p7826_p10 = scmp.ne.s32.totalorder %s422_s14, %s7825_s5  ;;  %p7834_p7 = scmp.lt.s32.totalorder %s7825_s5, %s7825_s5 }
  0xbb   : > { %p7828_p2 = pnand %p7826_p10, %p8141_p0  ;;  %p7835_p8 = por %p7834_p7, %p7833_p4 }
  0xbd   : > { %p7829_p3 = pneg %p7828_p2 }
  0xbf   : > { %p7836_p11 = pnand %p7835_p8, %p7829_p3 }
  0xc1   : > { %7839 = shalt.err (!%p7836_p11)
}
  0xc2   : > { %6949 = dma.hbm_to_vmem [thread:$0]  (!%p8125_p12), %s8593_s8, 32768, %s422_s14, [#allocation12], %s7994_s17, %s7994_s17, %s7995_s21  }
  0xc3   : > { %s7840_s28 = scalar_lea.hbm %s8594_s9, 128 }
  0xc4   : > { %p7841_p13 = scmp.ne.s32.totalorder %s8594_s9, %s7840_s28  ;;  %p7847_p5 = scmp.lt.u32.totalorder %s7840_s28, %s8594_s9 }
  0xc6   : > { %p7843_p1 = pnand %p7841_p13, %p8141_p0 }
  0xc8   : > { %p7844_p6 = pneg %p7843_p1 }
  0xca   : > { %p7849_p9 = pnand %p7847_p5, %p7844_p6 }
  0xcc   : > { %7852 = shalt.err (!%p7849_p9)
}
  0xcd   : > { %s7853_s17 = scalar_lea.vmem %s8257_s26, 128  ;;  %p7861_p4 = scmp.lt.s32.totalorder %s8257_s26, %s8257_s26 }
  0xce   : > { %p7854_p10 = scmp.ne.s32.totalorder %s8257_s26, %s7853_s17  ;;  %p7862_p7 = scmp.lt.s32.totalorder %s7853_s17, %s7853_s17 }
  0xd0   : > { %p7856_p2 = pnand %p7854_p10, %p8141_p0  ;;  %p7863_p8 = por %p7862_p7, %p7861_p4 }
  0xd2   : > { %p7857_p3 = pneg %p7856_p2 }
  0xd4   : > { %p7864_p11 = pnand %p7863_p8, %p7857_p3 }
  0xd6   : > { %7867 = shalt.err (!%p7864_p11)
}
  0xd7   : > { %6952 = dma.hbm_to_vmem [thread:$0]  (!%p8125_p12), %s8594_s9, 128, %s8257_s26, [#allocation15]  }
  0xd8   : > { %p8622_p13 = scmp.ne.s32.totalorder %s8617_s15, 0 }
  0xd9   : > { %p8623_p1 = scmp.eq.s32.totalorder (!%p8622_p13), %s8089_s25, 0 }
  0xda   : > { %461 = sbr.rel (%p8622_p13) target bundleno = 1747 (0x6d3), region = 60 }
  0xe1   : > { %7941 = dma.done.wait (%p8623_p1), [#allocation3], 41472   ;;  %p8624_p0 = pmov %p8623_p1 }
  0xe3   : > { %7943 = vsyncadd (%p8624_p0), [#allocation3], 4294925824  ;;  %p8625_p6 = pmov %p8624_p0 }
  0xe4   : > { %p8626_p5 = pmov %p8624_p0 }
  0xe5   : > { %7945 = dma.done.wait (%p8625_p6), [#allocation6], 8256  }
  0xe6   : > { %7947 = vsyncadd (%p8626_p5), [#allocation6], 4294959040  ;;  %p8627_p9 = pmov %p8624_p0 }
  0xe7   : > { %p8628_p12 = pmov %p8624_p0 }
  0xe8   : > { %7949 = dma.done.wait (%p8627_p9), [#allocation9], 8224  }
  0xe9   : > { %7951 = vsyncadd (%p8628_p12), [#allocation9], 4294959072  ;;  %p8629_p10 = pmov %p8624_p0 }
  0xea   : > { %p8630_p2 = pmov %p8624_p0 }
  0xeb   : > { %7953 = dma.done.wait (%p8629_p10), [#allocation12], 32832  }
  0xec   : > { %7955 = vsyncadd (%p8630_p2), [#allocation12], 4294934464  ;;  %p8631_p3 = pmov %p8624_p0 }
  0xed   : > { %p8632_p4 = pmov %p8624_p0 }
  0xee   : > { %7957 = dma.done.wait (%p8631_p3), [#allocation15], 128  }
  0xef   : > { %7959 = vsyncadd (%p8632_p4), [#allocation15], 4294967168  ;;  %p540_p7 = scmp.lt.s32.totalorder %s8089_s25, 1  ;;  %v7998_v0 = vmov 0   ;;  %v7999_v1 = vmov 1966171168   ;;  %v885_v3 = vlaneseq }
  0xf0   : > { %2845 = vmatprep.mubr.bf16.mxu1 %v7998_v0  ;;  %v883_v2 = vunpack.c.l.s4 %v7999_v1  ;;  %v7026_v6 = vld [vmem:[#allocation2 + $0x4] ss:$16 sps:$4 sm:$0xff]   ;;  %v7030_v8 = vld [vmem:[#allocation2] ss:$16 sps:$4 sm:$0xff]   ;;  %v7036_v12 = vld [vmem:[#allocation2 + $0xc] ss:$16 sps:$4 sm:$0xff]  }
  0xf1   : > { %s8325_s15 = scalar_select %p540_p7, %s8089_s25, 1  ;;  %v8328_v5 = vshrl.u32 %v885_v3, 7  ;;  %v7028_v7 = vld [vmem:[#allocation2 + $0xa04] ss:$16 sps:$4 sm:$0xff]   ;;  %2608 = vmatprep.subr.bf16.mxu0 %v7026_v6  ;;  %v7031_v9 = vld [vmem:[#allocation2 + $0xa00] ss:$16 sps:$4 sm:$0xff]  }
  0xf2   : > { %v884_v4 = vunpack.c.0.s8 %v883_v2  ;;  %2813 = vmatprep.subr.bf16.mxu1 %v7028_v7  ;;  %v7032_v11 = vld [vmem:[#allocation2 + $0x24] ss:$16 sps:$4 sm:$0xff]   ;;  %2609 = vmatpush1.bf16.msra.mxu0 %v7030_v8  ;;  %v7037_v13 = vld [vmem:[#allocation2 + $0x20] ss:$16 sps:$4 sm:$0xff]   ;;  %v7034_v17 = vld [vmem:[#allocation2 + $0x8] ss:$16 sps:$4 sm:$0xff]  }
  0xf3   : > { %s6891_s20 = smul.u32 11, %s8325_s15  ;;  %2814 = vmatpush1.bf16.msra.mxu1 %v7031_v9  ;;  %2610 = vmatprep.subr.bf16.mxu0 %v7032_v11  ;;  %v7038_v16 = vld [vmem:[#allocation2 + $0x44] ss:$16 sps:$4 sm:$0xff]   ;;  %vm2604_vm0 = vcmask 130048   ;;  %v7042_v19 = vld [vmem:[#allocation2 + $0x2c] ss:$16 sps:$4 sm:$0xff]   ;;  %s546_s23 = scalar_lea.vmem %s8586_s1, %s8325_s15 }
  0xf4   : > { %v8336_v10 = vsub.s32 %v884_v4, %v8328_v5  ;;  %2854 = vmatprep.subr.bf16.mxu1 %v7036_v12  ;;  %v7043_v20 = vld [vmem:[#allocation2 + $0x40] ss:$16 sps:$4 sm:$0xff]   ;;  %v7044_v21 = vld [vmem:[#allocation2 + $0x64] ss:$16 sps:$4 sm:$0xff]   ;;  %v7040_v22 = vld [vmem:[#allocation2 + $0x28] ss:$16 sps:$4 sm:$0xff]  }
  0xf5   : > { %s8333_s5 = scalar_lea.vmem %s8585_s0, %s6891_s20  ;;  %v7048_v23 = vld [vmem:[#allocation2 + $0x4c] ss:$16 sps:$4 sm:$0xff]   ;;  %v7049_v24 = vld [vmem:[#allocation2 + $0x60] ss:$16 sps:$4 sm:$0xff]   ;;  %v7050_v25 = vld [vmem:[#allocation2 + $0x84] ss:$16 sps:$4 sm:$0xff]  }
  0xf6   : > { %v6096_v14 = vld.sshfl [vmem:[%s8333_s5 + $0x8] sm:$0x13 pattern:$0x75316420]  ;;  %2611 = vmatpush1.bf16.msra.mxu0 %v7037_v13  ;;  %v7054_v27 = vld [vmem:[#allocation2 + $0x6c] ss:$16 sps:$4 sm:$0xff]  }
  0xf7   : > { %v8340_v15 = vrot.slane %v6096_v14, %v8336_v10  ;;  %2612 = vmatprep.subr.bf16.mxu0 %v7038_v16  ;;  %v7046_v26 = vld [vmem:[#allocation2 + $0x48] ss:$16 sps:$4 sm:$0xff]   ;;  %v7055_v28 = vld [vmem:[#allocation2 + $0x80] ss:$16 sps:$4 sm:$0xff]   ;;  %v7056_v29 = vld [vmem:[#allocation2 + $0xa4] ss:$16 sps:$4 sm:$0xff]  }
  0xf8   : > { %v7052_v30 = vld [vmem:[#allocation2 + $0x68] ss:$16 sps:$4 sm:$0xff]   ;;  %v7060_v31 = vld [vmem:[#allocation2 + $0x8c] ss:$16 sps:$4 sm:$0xff]   ;;  %v7061_v32 = vld [vmem:[#allocation2 + $0xa0] ss:$16 sps:$4 sm:$0xff]  }
  0xf9   : > { %v8344_v18 = vcombine.high %v8340_v15, %v8340_v15  ;;  %v7062_v33 = vld [vmem:[#allocation2 + $0xc4] ss:$16 sps:$4 sm:$0xff]   ;;  %v7058_v34 = vld [vmem:[#allocation2 + $0x88] ss:$16 sps:$4 sm:$0xff]   ;;  %v7066_v35 = vld [vmem:[#allocation2 + $0xac] ss:$16 sps:$4 sm:$0xff]  }
  0xfa   : > { %2613 = vmatpush1.bf16.msra.mxu0 %v7043_v20  ;;  %v7067_v36 = vld [vmem:[#allocation2 + $0xc0] ss:$16 sps:$4 sm:$0xff]   ;;  %v7068_v37 = vld [vmem:[#allocation2 + $0xe4] ss:$16 sps:$4 sm:$0xff]   ;;  %v7064_v38 = vld [vmem:[#allocation2 + $0xa8] ss:$16 sps:$4 sm:$0xff]  }
  0xfb   : > { %6421 = vmatmul.mubr.msk.bf16.vlgmr.msra.gmra.mrb[0].mxu1 %vm2604_vm0, %v8344_v18  ;;  %2614 = vmatprep.subr.bf16.mxu0 %v7044_v21  ;;  %v7072_v39 = vld [vmem:[#allocation2 + $0xcc] ss:$16 sps:$4 sm:$0xff]   ;;  %v7073_v40 = vld [vmem:[#allocation2 + $0xe0] ss:$16 sps:$4 sm:$0xff]   ;;  %v7074_v41 = vld [vmem:[#allocation2 + $0x104] ss:$16 sps:$4 sm:$0xff]  }
  0xfc   : > { %2855 = vmatpush1.bf16.msra.mxu1 %v7034_v17  ;;  %v7070_v42 = vld [vmem:[#allocation2 + $0xc8] ss:$16 sps:$4 sm:$0xff]   ;;  %v7078_v43 = vld [vmem:[#allocation2 + $0xec] ss:$16 sps:$4 sm:$0xff]   ;;  %v7079_v44 = vld [vmem:[#allocation2 + $0x100] ss:$16 sps:$4 sm:$0xff]  }
  0xfd   : > { %2856 = vmatprep.subr.bf16.mxu1 %v7042_v19  ;;  %v7080_v45 = vld [vmem:[#allocation2 + $0x124] ss:$16 sps:$4 sm:$0xff]   ;;  %v7076_v46 = vld [vmem:[#allocation2 + $0xe8] ss:$16 sps:$4 sm:$0xff]   ;;  %v7084_v47 = vld [vmem:[#allocation2 + $0x10c] ss:$16 sps:$4 sm:$0xff]  }
  0xfe   : > { %2615 = vmatpush1.bf16.msra.mxu0 %v7049_v24  ;;  %v7085_v48 = vld [vmem:[#allocation2 + $0x120] ss:$16 sps:$4 sm:$0xff]   ;;  %v7086_v49 = vld [vmem:[#allocation2 + $0x144] ss:$16 sps:$4 sm:$0xff]   ;;  %v7082_v50 = vld [vmem:[#allocation2 + $0x108] ss:$16 sps:$4 sm:$0xff]  }
  0xff   : > { %2616 = vmatprep.subr.bf16.mxu0 %v7050_v25  ;;  %v7090_v51 = vld [vmem:[#allocation2 + $0x12c] ss:$16 sps:$4 sm:$0xff]   ;;  %v7091_v52 = vld [vmem:[#allocation2 + $0x140] ss:$16 sps:$4 sm:$0xff]   ;;  %v7092_v53 = vld [vmem:[#allocation2 + $0x164] ss:$16 sps:$4 sm:$0xff]  }
 0x100   : > { %2857 = vmatpush1.bf16.msra.mxu1 %v7040_v22  ;;  %v7088_v54 = vld [vmem:[#allocation2 + $0x128] ss:$16 sps:$4 sm:$0xff]   ;;  %v8349_v55 = vld [vmem:[%s8333_s5] sm:$0xff]  ;;  %v7096_v56 = vld [vmem:[#allocation2 + $0x14c] ss:$16 sps:$4 sm:$0xff]   ;;  %s8420_s24 = sand.u32 1, %s7974_s22  }
 0x101   : > { %2858 = vmatprep.subr.bf16.mxu1 %v7048_v23  ;;  %v7097_v57 = vld [vmem:[#allocation2 + $0x160] ss:$16 sps:$4 sm:$0xff]   ;;  %v888_v58 = vrot.slane %v8349_v55, %v8336_v10  ;;  %v7098_v59 = vld [vmem:[#allocation2 + $0x184] ss:$16 sps:$4 sm:$0xff]   ;;  %v7094_v61 = vld [vmem:[#allocation2 + $0x148] ss:$16 sps:$4 sm:$0xff]  }
 0x102   : > { %2617 = vmatpush1.bf16.msra.mxu0 %v7055_v28  ;;  %v7102_v62 = vld [vmem:[#allocation2 + $0x16c] ss:$16 sps:$4 sm:$0xff]   ;;  %v7103_v63 = vld [vmem:[#allocation2 + $0x180] ss:$16 sps:$4 sm:$0xff]   ;;  %v7104_v2 = vld [vmem:[#allocation2 + $0x1a4] ss:$16 sps:$4 sm:$0xff]  }
 0x103   : > { %2618 = vmatprep.subr.bf16.mxu0 %v7056_v29  ;;  %v896_v60 = vcombine.high %v888_v58, %v888_v58  ;;  %v7100_v3 = vld [vmem:[#allocation2 + $0x168] ss:$16 sps:$4 sm:$0xff]   ;;  %v7108_v4 = vld [vmem:[#allocation2 + $0x18c] ss:$16 sps:$4 sm:$0xff]   ;;  %v7109_v6 = vld [vmem:[#allocation2 + $0x1a0] ss:$16 sps:$4 sm:$0xff]   ;;  %v8355_v20 = vrot.slane %v888_v58, %v8336_v10 }
 0x104   : > { %2859 = vmatpush1.bf16.msra.mxu1 %v7046_v26  ;;  %v7110_v7 = vld [vmem:[#allocation2 + $0x1c4] ss:$16 sps:$4 sm:$0xff]   ;;  %v7106_v8 = vld [vmem:[#allocation2 + $0x188] ss:$16 sps:$4 sm:$0xff]   ;;  %v7114_v9 = vld [vmem:[#allocation2 + $0x1ac] ss:$16 sps:$4 sm:$0xff]  }
 0x105   : > { %2860 = vmatprep.subr.bf16.mxu1 %v7054_v27  ;;  %v918_v1 = vrot.slane %v896_v60, %v8336_v10  ;;  %v7115_v11 = vld [vmem:[#allocation2 + $0x1c0] ss:$16 sps:$4 sm:$0xff]   ;;  %v7116_v12 = vld [vmem:[#allocation2 + $0x1e4] ss:$16 sps:$4 sm:$0xff]   ;;  %v7112_v13 = vld [vmem:[#allocation2 + $0x1a8] ss:$16 sps:$4 sm:$0xff]  }
 0x106   : > { %2619 = vmatpush1.bf16.msra.mxu0 %v7061_v32  ;;  %v7120_v14 = vld [vmem:[#allocation2 + $0x1cc] ss:$16 sps:$4 sm:$0xff]   ;;  %v7121_v16 = vld [vmem:[#allocation2 + $0x1e0] ss:$16 sps:$4 sm:$0xff]   ;;  %v7124_v17 = vld [vmem:[#allocation2 + $0x204] ss:$16 sps:$4 sm:$0xff]  }
 0x107   : > { %2620 = vmatprep.subr.bf16.mxu0 %v7062_v33  ;;  %2640 = vmatprep.mubr.bf16.mxu0 %v918_v1  ;;  %v7118_v19 = vld [vmem:[#allocation2 + $0x1c8] ss:$16 sps:$4 sm:$0xff]   ;;  %v7122_v21 = vld [vmem:[#allocation2 + $0x200] ss:$16 sps:$4 sm:$0xff]   ;;  %v7127_v22 = vld [vmem:[#allocation2 + $0x1ec] ss:$16 sps:$4 sm:$0xff]   ;;  %v928_v24 = vcombine.high %v918_v1, %v918_v1 }
 0x108   : > { %2861 = vmatpush1.bf16.msra.mxu1 %v7052_v30  ;;  %2886 = vmatprep.mubr.bf16.mxu1 %v918_v1  ;;  %v7130_v23 = vld [vmem:[#allocation2 + $0x224] ss:$16 sps:$4 sm:$0xff]   ;;  %v7125_v25 = vld [vmem:[#allocation2 + $0x1e8] ss:$16 sps:$4 sm:$0xff]   ;;  %v7128_v26 = vld [vmem:[#allocation2 + $0x220] ss:$16 sps:$4 sm:$0xff]  }
 0x109   : > { %2862 = vmatprep.subr.bf16.mxu1 %v7060_v31  ;;  %v7133_v27 = vld [vmem:[#allocation2 + $0x20c] ss:$16 sps:$4 sm:$0xff]   ;;  %v7136_v28 = vld [vmem:[#allocation2 + $0x244] ss:$16 sps:$4 sm:$0xff]   ;;  %v7131_v29 = vld [vmem:[#allocation2 + $0x208] ss:$16 sps:$4 sm:$0xff]  }
 0x10a   : > { %2621 = vmatpush1.bf16.msra.mxu0 %v7067_v36  ;;  %v7134_v30 = vld [vmem:[#allocation2 + $0x240] ss:$16 sps:$4 sm:$0xff]   ;;  %v7139_v31 = vld [vmem:[#allocation2 + $0x22c] ss:$16 sps:$4 sm:$0xff]   ;;  %v7142_v32 = vld [vmem:[#allocation2 + $0x264] ss:$16 sps:$4 sm:$0xff]  }
 0x10b   : > { %2622 = vmatprep.subr.bf16.mxu0 %v7068_v37  ;;  %v7137_v33 = vld [vmem:[#allocation2 + $0x228] ss:$16 sps:$4 sm:$0xff]   ;;  %v7148_v36 = vld [vmem:[#allocation2 + $0x284] ss:$16 sps:$4 sm:$0xff]   ;;  %v7181_v60 = vld [vmem:[#allocation2 + $0x30c] ss:$16 sps:$4 sm:$0xff]  }
 0x10c   : > { %2863 = vmatpush1.bf16.msra.mxu1 %v7058_v34  ;;  %v7140_v34 = vld [vmem:[#allocation2 + $0x260] ss:$16 sps:$4 sm:$0xff]   ;;  %v7143_v37 = vld [vmem:[#allocation2 + $0x248] ss:$16 sps:$4 sm:$0xff]   ;;  %v7187_v1 = vld [vmem:[#allocation2 + $0x32c] ss:$16 sps:$4 sm:$0xff]  }
 0x10d   : > { %2864 = vmatprep.subr.bf16.mxu1 %v7066_v35  ;;  %v7145_v35 = vld [vmem:[#allocation2 + $0x24c] ss:$16 sps:$4 sm:$0xff]   ;;  %v7173_v58 = vld [vmem:[#allocation2 + $0x2e8] ss:$16 sps:$4 sm:$0xff]   ;;  %s533_s16 = scalar_lea.vmem [#allocation16], %s8420_s24  ;;  %s539_s30 = scalar_lea.vmem [#allocation17], %s8420_s24 }
 0x10e   : > { %2623 = vmatpush1.bf16.msra.mxu0 %v7073_v40  ;;  %v7154_v40 = vld [vmem:[#allocation2 + $0x2a4] ss:$16 sps:$4 sm:$0xff]   ;;  %s6751_s29 = sshll.u32 %s8089_s25, 4  ;;  %s5867_s3 = sshll.u32 %s533_s16, 4  ;;  %s5868_s3 = int_to_ptr.vmem [resolvable:$true] %s5867_s3 }
 0x10f   : > { %2624 = vmatprep.subr.bf16.mxu0 %v7074_v41  ;;  %v7149_v41 = vld [vmem:[#allocation2 + $0x268] ss:$16 sps:$4 sm:$0xff]   ;;  %s8502_s21 = scalar_lea.hbm %s8596_s11, %s6751_s29  ;;  %s5848_s14 = scalar_lea.sflag [#allocation4], %s8420_s24 }
 0x110   : > { %2865 = vmatpush1.bf16.msra.mxu1 %v7064_v38  ;;  %v7146_v38 = vld [vmem:[#allocation2 + $0x280] ss:$16 sps:$4 sm:$0xff]   ;;  %s7868_s20 = scalar_lea.vmem %s5868_s3, 16  ;;  %p8633_p11 = scmp.ne.s32.totalorder %s8614_s13, 0 }
 0x111   : > { %2866 = vmatprep.subr.bf16.mxu1 %v7072_v39  ;;  %v7151_v39 = vld [vmem:[#allocation2 + $0x26c] ss:$16 sps:$4 sm:$0xff]   ;;  %p7869_p8 = scmp.ne.s32.totalorder %s5868_s3, %s7868_s20  ;;  %s8001_s18 = smov [#allocation16]  }
 0x112   : > { %2625 = vmatpush1.bf16.msra.mxu0 %v7079_v44  ;;  %v7160_v44 = vld [vmem:[#allocation2 + $0x2c4] ss:$16 sps:$4 sm:$0xff]   ;;  %s7872_s26 = sshll.u32 %s8001_s18, 4  ;;  %s7873_s26 = int_to_ptr.vmem [resolvable:$false] %s7872_s26 }
 0x113   : > { %2626 = vmatprep.subr.bf16.mxu0 %v7080_v45  ;;  %v7155_v45 = vld [vmem:[#allocation2 + $0x288] ss:$16 sps:$4 sm:$0xff]   ;;  %p7870_p13 = pnand %p7869_p8, %p8633_p11  ;;  %p7875_p0 = scmp.lt.s32.totalorder %s5868_s3, %s7873_s26 }
 0x114   : > { %2867 = vmatpush1.bf16.msra.mxu1 %v7070_v42  ;;  %v7152_v42 = vld [vmem:[#allocation2 + $0x2a0] ss:$16 sps:$4 sm:$0xff]  }
 0x115   : > { %2868 = vmatprep.subr.bf16.mxu1 %v7078_v43  ;;  %v7157_v43 = vld [vmem:[#allocation2 + $0x28c] ss:$16 sps:$4 sm:$0xff]   ;;  %p7871_p1 = pneg %p7870_p13 }
 0x116   : > { %2627 = vmatpush1.bf16.msra.mxu0 %v7085_v48  ;;  %v7166_v48 = vld [vmem:[#allocation2 + $0x2e4] ss:$16 sps:$4 sm:$0xff]  }
 0x117   : > { %2628 = vmatprep.subr.bf16.mxu0 %v7086_v49  ;;  %v7161_v49 = vld [vmem:[#allocation2 + $0x2a8] ss:$16 sps:$4 sm:$0xff]  }
 0x118   : > { %2869 = vmatpush1.bf16.msra.mxu1 %v7076_v46  ;;  %v7158_v46 = vld [vmem:[#allocation2 + $0x2c0] ss:$16 sps:$4 sm:$0xff]  }
 0x119   : > { %2870 = vmatprep.subr.bf16.mxu1 %v7084_v47  ;;  %v7163_v47 = vld [vmem:[#allocation2 + $0x2ac] ss:$16 sps:$4 sm:$0xff]  }
 0x11a   : > { %2629 = vmatpush1.bf16.msra.mxu0 %v7091_v52  ;;  %v7172_v52 = vld [vmem:[#allocation2 + $0x304] ss:$16 sps:$4 sm:$0xff]  }
 0x11b   : > { %2630 = vmatprep.subr.bf16.mxu0 %v7092_v53  ;;  %v7167_v53 = vld [vmem:[#allocation2 + $0x2c8] ss:$16 sps:$4 sm:$0xff]  }
 0x11c   : > { %2871 = vmatpush1.bf16.msra.mxu1 %v7082_v50  ;;  %v7164_v50 = vld [vmem:[#allocation2 + $0x2e0] ss:$16 sps:$4 sm:$0xff]  }
 0x11d   : > { %2872 = vmatprep.subr.bf16.mxu1 %v7090_v51  ;;  %v7169_v51 = vld [vmem:[#allocation2 + $0x2cc] ss:$16 sps:$4 sm:$0xff]  }
 0x11e   : > { %2631 = vmatpush1.bf16.msra.mxu0 %v7097_v57  ;;  %v7178_v57 = vld [vmem:[#allocation2 + $0x324] ss:$16 sps:$4 sm:$0xff]  }
 0x11f   : > { %2632 = vmatprep.subr.bf16.mxu0 %v7098_v59  ;;  %v7176_v59 = vld [vmem:[#allocation2 + $0x320] ss:$16 sps:$4 sm:$0xff]  }
 0x120   : > { %2873 = vmatpush1.bf16.msra.mxu1 %v7088_v54  ;;  %v7170_v54 = vld [vmem:[#allocation2 + $0x300] ss:$16 sps:$4 sm:$0xff]  }
 0x121   : > { %2874 = vmatprep.subr.bf16.mxu1 %v7096_v56  ;;  %v7175_v56 = vld [vmem:[#allocation2 + $0x2ec] ss:$16 sps:$4 sm:$0xff]  }
 0x122   : > { %2633 = vmatpush1.bf16.msra.mxu0 %v7103_v63  ;;  %v7182_v63 = vld [vmem:[#allocation2 + $0x340] ss:$16 sps:$4 sm:$0xff]  }
 0x123   : > { %2634 = vmatprep.subr.bf16.mxu0 %v7104_v2  ;;  %v7190_v2 = vld [vmem:[#allocation2 + $0x364] ss:$16 sps:$4 sm:$0xff]  }
 0x124   : > { %2875 = vmatpush1.bf16.msra.mxu1 %v7094_v61  ;;  %v7184_v61 = vld [vmem:[#allocation2 + $0x344] ss:$16 sps:$4 sm:$0xff]  }
 0x125   : > { %2876 = vmatprep.subr.bf16.mxu1 %v7102_v62  ;;  %v7179_v62 = vld [vmem:[#allocation2 + $0x308] ss:$16 sps:$4 sm:$0xff]  }
 0x126   : > { %2635 = vmatpush1.bf16.msra.mxu0 %v7109_v6  ;;  %v7193_v6 = vld [vmem:[#allocation2 + $0x34c] ss:$16 sps:$4 sm:$0xff]  }
 0x127   : > { %2636 = vmatprep.subr.bf16.mxu0 %v7110_v7  ;;  %v7196_v7 = vld [vmem:[#allocation2 + $0x384] ss:$16 sps:$4 sm:$0xff]  }
 0x128   : > { %2877 = vmatpush1.bf16.msra.mxu1 %v7100_v3  ;;  %v7185_v3 = vld [vmem:[#allocation2 + $0x328] ss:$16 sps:$4 sm:$0xff]  }
 0x129   : > { %2878 = vmatprep.subr.bf16.mxu1 %v7108_v4  ;;  %v7188_v4 = vld [vmem:[#allocation2 + $0x360] ss:$16 sps:$4 sm:$0xff]  }
 0x12a   : > { %2637 = vmatpush1.bf16.msra.mxu0 %v7115_v11  ;;  %v7199_v11 = vld [vmem:[#allocation2 + $0x36c] ss:$16 sps:$4 sm:$0xff]  }
 0x12b   : > { %2638 = vmatprep.subr.bf16.mxu0 %v7116_v12  ;;  %v7202_v12 = vld [vmem:[#allocation2 + $0x3a4] ss:$16 sps:$4 sm:$0xff]  }
 0x12c   : > { %2879 = vmatpush1.bf16.msra.mxu1 %v7106_v8  ;;  %v7191_v8 = vld [vmem:[#allocation2 + $0x348] ss:$16 sps:$4 sm:$0xff]  }
 0x12d   : > { %2880 = vmatprep.subr.bf16.mxu1 %v7114_v9  ;;  %v7194_v9 = vld [vmem:[#allocation2 + $0x380] ss:$16 sps:$4 sm:$0xff]  }
 0x12e   : > { %2639 = vmatpush1.bf16.msra.mxu0 %v7121_v16  ;;  %v7205_v16 = vld [vmem:[#allocation2 + $0x38c] ss:$16 sps:$4 sm:$0xff]  }
 0x12f   : > { %2649 = vmatprep.subr.bf16.mxu0 %v7124_v17  ;;  %v7208_v17 = vld [vmem:[#allocation2 + $0x3c4] ss:$16 sps:$4 sm:$0xff]  }
 0x130   : > { %2881 = vmatpush1.bf16.msra.mxu1 %v7112_v13  ;;  %v7197_v13 = vld [vmem:[#allocation2 + $0x368] ss:$16 sps:$4 sm:$0xff]  }
 0x131   : > { %2882 = vmatprep.subr.bf16.mxu1 %v7120_v14  ;;  %2641 = vmatmul.mubr.bf16.vlgmr.msra.gmra.mrb[0].mxu0 %v8355_v20  ;;  %v7200_v14 = vld [vmem:[#allocation2 + $0x3a0] ss:$16 sps:$4 sm:$0xff]  }
 0x132   : > { %2650 = vmatpush1.bf16.msra.mxu0 %v7122_v21  ;;  %2681 = vmatprep.mubr.bf16.mxu0 %v928_v24  ;;  %v7203_v21 = vld [vmem:[#allocation2 + $0x388] ss:$16 sps:$4 sm:$0xff]  }
 0x133   : > { %2651 = vmatprep.subr.bf16.mxu0 %v7130_v23  ;;  %v7211_v23 = vld [vmem:[#allocation2 + $0x3ac] ss:$16 sps:$4 sm:$0xff]  }
 0x134   : > { %2883 = vmatpush1.bf16.msra.mxu1 %v7118_v19  ;;  %v881_v19 = vcombine.high %v8349_v55, %v8349_v55 }
 0x135   : > { %2884 = vmatprep.subr.bf16.mxu1 %v7127_v22  ;;  %v7206_v22 = vld [vmem:[#allocation2 + $0x3c0] ss:$16 sps:$4 sm:$0xff]  }
 0x136   : > { %2652 = vmatpush1.bf16.msra.mxu0 %v7128_v26  ;;  %v7209_v26 = vld [vmem:[#allocation2 + $0x3a8] ss:$16 sps:$4 sm:$0xff]  }
 0x137   : > { %2653 = vmatprep.subr.bf16.mxu0 %v7136_v28  ;;  %v7217_v28 = vld [vmem:[#allocation2 + $0x3cc] ss:$16 sps:$4 sm:$0xff]  }
 0x138   : > { %2885 = vmatpush1.bf16.msra.mxu1 %v7125_v25  ;;  %v8362_v25 = vrot.slane %v881_v19, %v8336_v10  ;;  %v7289_v19 = vld [vmem:[#allocation2 + $0x54c] ss:$16 sps:$4 sm:$0xff]  }
 0x139   : > { %2895 = vmatprep.subr.bf16.mxu1 %v7133_v27  ;;  %v7212_v27 = vld [vmem:[#allocation2 + $0x3e0] ss:$16 sps:$4 sm:$0xff]  }
 0x13a   : > { %2654 = vmatpush1.bf16.msra.mxu0 %v7134_v30  ;;  %v897_v55 = vcombine.high %v8362_v25, %v8362_v25  ;;  %v7215_v30 = vld [vmem:[#allocation2 + $0x3c8] ss:$16 sps:$4 sm:$0xff]  }
 0x13b   : > { %2887 = vmatmul.mubr.bf16.vlgmr.msra.gmra.mrb[4].mxu1 %v8355_v20  ;;  %2655 = vmatprep.subr.bf16.mxu0 %v7142_v32  ;;  %v7218_v32 = vld [vmem:[#allocation2 + $0x400] ss:$16 sps:$4 sm:$0xff]  }
 0x13c   : > { %2896 = vmatpush1.bf16.msra.mxu1 %v7131_v29  ;;  %2927 = vmatprep.mubr.bf16.mxu1 %v928_v24  ;;  %v7214_v24 = vld [vmem:[#allocation2 + $0x3e4] ss:$16 sps:$4 sm:$0xff]  }
 0x13d   : > { %2897 = vmatprep.subr.bf16.mxu1 %v7139_v31  ;;  %v7220_v29 = vld [vmem:[#allocation2 + $0x404] ss:$16 sps:$4 sm:$0xff]   ;;  %v926_v31 = vcombine.high %v8355_v20, %v8355_v20  ;;  %v7227_v20 = vld [vmem:[#allocation2 + $0x408] ss:$16 sps:$4 sm:$0xff]  }
 0x13e   : > { %2656 = vmatpush1.bf16.msra.mxu0 %v7140_v34  ;;  %v7226_v34 = vld [vmem:[#allocation2 + $0x424] ss:$16 sps:$4 sm:$0xff]  }
 0x13f   : > { %2657 = vmatprep.subr.bf16.mxu0 %v7148_v36  ;;  %v7221_v36 = vld [vmem:[#allocation2 + $0x3e8] ss:$16 sps:$4 sm:$0xff]  }
 0x140   : > { %2898 = vmatpush1.bf16.msra.mxu1 %v7137_v33  ;;  %v7223_v33 = vld [vmem:[#allocation2 + $0x3ec] ss:$16 sps:$4 sm:$0xff]  }
 0x141   : > { %2899 = vmatprep.subr.bf16.mxu1 %v7145_v35  ;;  %v8369_v35 = vrot.slane %v897_v55, %v8336_v10  ;;  %v7304_v55 = vld [vmem:[#allocation2 + $0x5c4] ss:$16 sps:$4 sm:$0xff]  }
 0x142   : > { %2658 = vmatpush1.bf16.msra.mxu0 %v7146_v38  ;;  %v7229_v38 = vld [vmem:[#allocation2 + $0x40c] ss:$16 sps:$4 sm:$0xff]  }
 0x143   : > { %2659 = vmatprep.subr.bf16.mxu0 %v7154_v40  ;;  %v7230_v40 = vld [vmem:[#allocation2 + $0x440] ss:$16 sps:$4 sm:$0xff]  }
 0x144   : > { %2900 = vmatpush1.bf16.msra.mxu1 %v7143_v37  ;;  %v7224_v37 = vld [vmem:[#allocation2 + $0x420] ss:$16 sps:$4 sm:$0xff]  }
 0x145   : > { %2901 = vmatprep.subr.bf16.mxu1 %v7151_v39  ;;  %v7232_v39 = vld [vmem:[#allocation2 + $0x444] ss:$16 sps:$4 sm:$0xff]  }
 0x146   : > { %2660 = vmatpush1.bf16.msra.mxu0 %v7152_v42  ;;  %v7238_v42 = vld [vmem:[#allocation2 + $0x464] ss:$16 sps:$4 sm:$0xff]  }
 0x147   : > { %2661 = vmatprep.subr.bf16.mxu0 %v7160_v44  ;;  %v7236_v44 = vld [vmem:[#allocation2 + $0x460] ss:$16 sps:$4 sm:$0xff]  }
 0x148   : > { %2902 = vmatpush1.bf16.msra.mxu1 %v7149_v41  ;;  %v7235_v41 = vld [vmem:[#allocation2 + $0x42c] ss:$16 sps:$4 sm:$0xff]  }
 0x149   : > { %2903 = vmatprep.subr.bf16.mxu1 %v7157_v43  ;;  %v7233_v43 = vld [vmem:[#allocation2 + $0x428] ss:$16 sps:$4 sm:$0xff]  }
 0x14a   : > { %2662 = vmatpush1.bf16.msra.mxu0 %v7158_v46  ;;  %v7244_v46 = vld [vmem:[#allocation2 + $0x484] ss:$16 sps:$4 sm:$0xff]  }
 0x14b   : > { %2663 = vmatprep.subr.bf16.mxu0 %v7166_v48  ;;  %v7242_v48 = vld [vmem:[#allocation2 + $0x480] ss:$16 sps:$4 sm:$0xff]  }
 0x14c   : > { %2904 = vmatpush1.bf16.msra.mxu1 %v7155_v45  ;;  %v7241_v45 = vld [vmem:[#allocation2 + $0x44c] ss:$16 sps:$4 sm:$0xff]  }
 0x14d   : > { %2905 = vmatprep.subr.bf16.mxu1 %v7163_v47  ;;  %v7239_v47 = vld [vmem:[#allocation2 + $0x448] ss:$16 sps:$4 sm:$0xff]  }
 0x14e   : > { %2664 = vmatpush1.bf16.msra.mxu0 %v7164_v50  ;;  %v7250_v50 = vld [vmem:[#allocation2 + $0x4a4] ss:$16 sps:$4 sm:$0xff]  }
 0x14f   : > { %2665 = vmatprep.subr.bf16.mxu0 %v7172_v52  ;;  %v7248_v52 = vld [vmem:[#allocation2 + $0x4a0] ss:$16 sps:$4 sm:$0xff]  }
 0x150   : > { %2906 = vmatpush1.bf16.msra.mxu1 %v7161_v49  ;;  %v7247_v49 = vld [vmem:[#allocation2 + $0x46c] ss:$16 sps:$4 sm:$0xff]  }
 0x151   : > { %2907 = vmatprep.subr.bf16.mxu1 %v7169_v51  ;;  %v7245_v51 = vld [vmem:[#allocation2 + $0x468] ss:$16 sps:$4 sm:$0xff]  }
 0x152   : > { %2666 = vmatpush1.bf16.msra.mxu0 %v7170_v54  ;;  %v7256_v54 = vld [vmem:[#allocation2 + $0x4c4] ss:$16 sps:$4 sm:$0xff]  }
 0x153   : > { %2667 = vmatprep.subr.bf16.mxu0 %v7178_v57  ;;  %v7254_v57 = vld [vmem:[#allocation2 + $0x4c0] ss:$16 sps:$4 sm:$0xff]  }
 0x154   : > { %2908 = vmatpush1.bf16.msra.mxu1 %v7167_v53  ;;  %v7253_v53 = vld [vmem:[#allocation2 + $0x48c] ss:$16 sps:$4 sm:$0xff]  }
 0x155   : > { %2909 = vmatprep.subr.bf16.mxu1 %v7175_v56  ;;  %v7251_v56 = vld [vmem:[#allocation2 + $0x488] ss:$16 sps:$4 sm:$0xff]  }
 0x156   : > { %2668 = vmatpush1.bf16.msra.mxu0 %v7176_v59  ;;  %v7262_v59 = vld [vmem:[#allocation2 + $0x4e4] ss:$16 sps:$4 sm:$0xff]  }
 0x157   : > { %2669 = vmatprep.subr.bf16.mxu0 %v7184_v61  ;;  %v7260_v61 = vld [vmem:[#allocation2 + $0x4e0] ss:$16 sps:$4 sm:$0xff]  }
 0x158   : > { %2910 = vmatpush1.bf16.msra.mxu1 %v7173_v58  ;;  %v7259_v58 = vld [vmem:[#allocation2 + $0x4ac] ss:$16 sps:$4 sm:$0xff]  }
 0x159   : > { %2911 = vmatprep.subr.bf16.mxu1 %v7181_v60  ;;  %v7257_v60 = vld [vmem:[#allocation2 + $0x4a8] ss:$16 sps:$4 sm:$0xff]  }
 0x15a   : > { %2670 = vmatpush1.bf16.msra.mxu0 %v7182_v63  ;;  %v7268_v63 = vld [vmem:[#allocation2 + $0x504] ss:$16 sps:$4 sm:$0xff]  }
 0x15b   : > { %2671 = vmatprep.subr.bf16.mxu0 %v7190_v2  ;;  %v7266_v2 = vld [vmem:[#allocation2 + $0x500] ss:$16 sps:$4 sm:$0xff]  }
 0x15c   : > { %2912 = vmatpush1.bf16.msra.mxu1 %v7179_v62  ;;  %v7265_v62 = vld [vmem:[#allocation2 + $0x4cc] ss:$16 sps:$4 sm:$0xff]  }
 0x15d   : > { %2913 = vmatprep.subr.bf16.mxu1 %v7187_v1  ;;  %v7263_v1 = vld [vmem:[#allocation2 + $0x4c8] ss:$16 sps:$4 sm:$0xff]  }
 0x15e   : > { %2672 = vmatpush1.bf16.msra.mxu0 %v7188_v4  ;;  %v7274_v4 = vld [vmem:[#allocation2 + $0x524] ss:$16 sps:$4 sm:$0xff]  }
 0x15f   : > { %2673 = vmatprep.subr.bf16.mxu0 %v7196_v7  ;;  %v7272_v7 = vld [vmem:[#allocation2 + $0x520] ss:$16 sps:$4 sm:$0xff]  }
 0x160   : > { %2914 = vmatpush1.bf16.msra.mxu1 %v7185_v3  ;;  %v7271_v3 = vld [vmem:[#allocation2 + $0x4ec] ss:$16 sps:$4 sm:$0xff]  }
 0x161   : > { %2915 = vmatprep.subr.bf16.mxu1 %v7193_v6  ;;  %v7269_v6 = vld [vmem:[#allocation2 + $0x4e8] ss:$16 sps:$4 sm:$0xff]  }
 0x162   : > { %2674 = vmatpush1.bf16.msra.mxu0 %v7194_v9  ;;  %v7280_v9 = vld [vmem:[#allocation2 + $0x544] ss:$16 sps:$4 sm:$0xff]  }
 0x163   : > { %2675 = vmatprep.subr.bf16.mxu0 %v7202_v12  ;;  %v7278_v12 = vld [vmem:[#allocation2 + $0x540] ss:$16 sps:$4 sm:$0xff]  }
 0x164   : > { %2916 = vmatpush1.bf16.msra.mxu1 %v7191_v8  ;;  %v7277_v8 = vld [vmem:[#allocation2 + $0x50c] ss:$16 sps:$4 sm:$0xff]  }
 0x165   : > { %2917 = vmatprep.subr.bf16.mxu1 %v7199_v11  ;;  %v7275_v11 = vld [vmem:[#allocation2 + $0x508] ss:$16 sps:$4 sm:$0xff]  }
 0x166   : > { %2676 = vmatpush1.bf16.msra.mxu0 %v7200_v14  ;;  %v7286_v14 = vld [vmem:[#allocation2 + $0x564] ss:$16 sps:$4 sm:$0xff]  }
 0x167   : > { %2677 = vmatprep.subr.bf16.mxu0 %v7208_v17  ;;  %v7284_v17 = vld [vmem:[#allocation2 + $0x560] ss:$16 sps:$4 sm:$0xff]  }
 0x168   : > { %2918 = vmatpush1.bf16.msra.mxu1 %v7197_v13  ;;  %v7283_v13 = vld [vmem:[#allocation2 + $0x52c] ss:$16 sps:$4 sm:$0xff]  }
 0x169   : > { %2919 = vmatprep.subr.bf16.mxu1 %v7205_v16  ;;  %v7281_v16 = vld [vmem:[#allocation2 + $0x528] ss:$16 sps:$4 sm:$0xff]  }
 0x16a   : > { %2678 = vmatpush1.bf16.msra.mxu0 %v7206_v22  ;;  %v7287_v22 = vld [vmem:[#allocation2 + $0x548] ss:$16 sps:$4 sm:$0xff]  }
 0x16b   : > { %2679 = vmatprep.subr.bf16.mxu0 %v7214_v24  ;;  %v7295_v24 = vld [vmem:[#allocation2 + $0x56c] ss:$16 sps:$4 sm:$0xff]  }
 0x16c   : > { %2920 = vmatpush1.bf16.msra.mxu1 %v7203_v21  ;;  %v7292_v21 = vld [vmem:[#allocation2 + $0x584] ss:$16 sps:$4 sm:$0xff]  }
 0x16d   : > { %2921 = vmatprep.subr.bf16.mxu1 %v7211_v23  ;;  %v7290_v23 = vld [vmem:[#allocation2 + $0x580] ss:$16 sps:$4 sm:$0xff]  }
 0x16e   : > { %2680 = vmatpush1.bf16.msra.mxu0 %v7212_v27  ;;  %v7293_v27 = vld [vmem:[#allocation2 + $0x568] ss:$16 sps:$4 sm:$0xff]  }
 0x16f   : > { %2690 = vmatprep.subr.bf16.mxu0 %v7220_v29  ;;  %v7301_v29 = vld [vmem:[#allocation2 + $0x58c] ss:$16 sps:$4 sm:$0xff]  }
 0x170   : > { %2922 = vmatpush1.bf16.msra.mxu1 %v7209_v26  ;;  %v7298_v26 = vld [vmem:[#allocation2 + $0x5a4] ss:$16 sps:$4 sm:$0xff]  }
 0x171   : > { %2923 = vmatprep.subr.bf16.mxu1 %v7217_v28  ;;  %2682 = vmatmul.mubr.bf16.vlgmr.msra.gmra.mrb[0].mxu0 %v926_v31  ;;  %v7296_v28 = vld [vmem:[#allocation2 + $0x5a0] ss:$16 sps:$4 sm:$0xff]  }
 0x172   : > { %2691 = vmatpush1.bf16.msra.mxu0 %v7218_v32  ;;  %2722 = vmatprep.mubr.bf16.mxu0 %v8369_v35  ;;  %v7307_v32 = vld [vmem:[#allocation2 + $0x5ac] ss:$16 sps:$4 sm:$0xff]  }
 0x173   : > { %2692 = vmatprep.subr.bf16.mxu0 %v7226_v34  ;;  %v7305_v34 = vld [vmem:[#allocation2 + $0x5a8] ss:$16 sps:$4 sm:$0xff]  }
 0x174   : > { %2924 = vmatpush1.bf16.msra.mxu1 %v7215_v30  ;;  %v7299_v30 = vld [vmem:[#allocation2 + $0x588] ss:$16 sps:$4 sm:$0xff]  }
 0x175   : > { %2925 = vmatprep.subr.bf16.mxu1 %v7223_v33  ;;  %v7310_v33 = vld [vmem:[#allocation2 + $0x5e4] ss:$16 sps:$4 sm:$0xff]  }
 0x176   : > { %2693 = vmatpush1.bf16.msra.mxu0 %v7224_v37  ;;  %v7313_v37 = vld [vmem:[#allocation2 + $0x5cc] ss:$16 sps:$4 sm:$0xff]  }
 0x177   : > { %2694 = vmatprep.subr.bf16.mxu0 %v7232_v39  ;;  %v7311_v39 = vld [vmem:[#allocation2 + $0x5c8] ss:$16 sps:$4 sm:$0xff]  }
 0x178   : > { %2926 = vmatpush1.bf16.msra.mxu1 %v7221_v36  ;;  %v7308_v36 = vld [vmem:[#allocation2 + $0x5e0] ss:$16 sps:$4 sm:$0xff]  }
 0x179   : > { %2936 = vmatprep.subr.bf16.mxu1 %v7229_v38  ;;  %v7317_v38 = vld [vmem:[#allocation2 + $0x604] ss:$16 sps:$4 sm:$0xff]  }
 0x17a   : > { %2695 = vmatpush1.bf16.msra.mxu0 %v7230_v40  ;;  %v7315_v40 = vld [vmem:[#allocation2 + $0x600] ss:$16 sps:$4 sm:$0xff]  }
 0x17b   : > { %2928 = vmatmul.mubr.bf16.vlgmr.msra.gmra.mrb[4].mxu1 %v926_v31  ;;  %2696 = vmatprep.subr.bf16.mxu0 %v7238_v42  ;;  %v7302_v31 = vld [vmem:[#allocation2 + $0x5c0] ss:$16 sps:$4 sm:$0xff]   ;;  %v7323_v42 = vld [vmem:[#allocation2 + $0x624] ss:$16 sps:$4 sm:$0xff]  }
 0x17c   : > { %2937 = vmatpush1.bf16.msra.mxu1 %v7227_v20  ;;  %2968 = vmatprep.mubr.bf16.mxu1 %v8369_v35  ;;  %v8375_v20 = vrot.slane %v8362_v25, %v8336_v10  ;;  %v7329_v25 = vld [vmem:[#allocation2 + $0x644] ss:$16 sps:$4 sm:$0xff]  }
 0x17d   : > { %2938 = vmatprep.subr.bf16.mxu1 %v7235_v41  ;;  %v7320_v41 = vld [vmem:[#allocation2 + $0x5ec] ss:$16 sps:$4 sm:$0xff]  }
 0x17e   : > { %2697 = vmatpush1.bf16.msra.mxu0 %v7236_v44  ;;  %v7318_v44 = vld [vmem:[#allocation2 + $0x5e8] ss:$16 sps:$4 sm:$0xff]  }
 0x17f   : > { %2698 = vmatprep.subr.bf16.mxu0 %v7244_v46  ;;  %v7326_v46 = vld [vmem:[#allocation2 + $0x60c] ss:$16 sps:$4 sm:$0xff]  }
 0x180   : > { %2939 = vmatpush1.bf16.msra.mxu1 %v7233_v43  ;;  %v929_v43 = vcombine.high %v8369_v35, %v8369_v35  ;;  %v7330_v35 = vld [vmem:[#allocation2 + $0x628] ss:$16 sps:$4 sm:$0xff]  }
 0x181   : > { %2940 = vmatprep.subr.bf16.mxu1 %v7241_v45  ;;  %v7321_v45 = vld [vmem:[#allocation2 + $0x620] ss:$16 sps:$4 sm:$0xff]  }
 0x182   : > { %2699 = vmatpush1.bf16.msra.mxu0 %v7242_v48  ;;  %v7327_v48 = vld [vmem:[#allocation2 + $0x640] ss:$16 sps:$4 sm:$0xff]  }
 0x183   : > { %2700 = vmatprep.subr.bf16.mxu0 %v7250_v50  ;;  %v7335_v50 = vld [vmem:[#allocation2 + $0x664] ss:$16 sps:$4 sm:$0xff]  }
 0x184   : > { %2941 = vmatpush1.bf16.msra.mxu1 %v7239_v47  ;;  %v7324_v47 = vld [vmem:[#allocation2 + $0x608] ss:$16 sps:$4 sm:$0xff]  }
 0x185   : > { %2942 = vmatprep.subr.bf16.mxu1 %v7247_v49  ;;  %v7332_v49 = vld [vmem:[#allocation2 + $0x62c] ss:$16 sps:$4 sm:$0xff]  }
 0x186   : > { %2701 = vmatpush1.bf16.msra.mxu0 %v7248_v52  ;;  %v7338_v52 = vld [vmem:[#allocation2 + $0x64c] ss:$16 sps:$4 sm:$0xff]  }
 0x187   : > { %2702 = vmatprep.subr.bf16.mxu0 %v7256_v54  ;;  %v7336_v54 = vld [vmem:[#allocation2 + $0x648] ss:$16 sps:$4 sm:$0xff]  }
 0x188   : > { %2943 = vmatpush1.bf16.msra.mxu1 %v7245_v51  ;;  %v7333_v51 = vld [vmem:[#allocation2 + $0x660] ss:$16 sps:$4 sm:$0xff]  }
 0x189   : > { %2944 = vmatprep.subr.bf16.mxu1 %v7253_v53  ;;  %v7341_v53 = vld [vmem:[#allocation2 + $0x684] ss:$16 sps:$4 sm:$0xff]  }
 0x18a   : > { %2703 = vmatpush1.bf16.msra.mxu0 %v7254_v57  ;;  %v7344_v57 = vld [vmem:[#allocation2 + $0x66c] ss:$16 sps:$4 sm:$0xff]  }
 0x18b   : > { %2704 = vmatprep.subr.bf16.mxu0 %v7262_v59  ;;  %v7342_v59 = vld [vmem:[#allocation2 + $0x668] ss:$16 sps:$4 sm:$0xff]  }
 0x18c   : > { %2945 = vmatpush1.bf16.msra.mxu1 %v7251_v56  ;;  %v7339_v56 = vld [vmem:[#allocation2 + $0x680] ss:$16 sps:$4 sm:$0xff]  }
 0x18d   : > { %2946 = vmatprep.subr.bf16.mxu1 %v7259_v58  ;;  %v7347_v58 = vld [vmem:[#allocation2 + $0x6a4] ss:$16 sps:$4 sm:$0xff]  }
 0x18e   : > { %2705 = vmatpush1.bf16.msra.mxu0 %v7260_v61  ;;  %v7350_v61 = vld [vmem:[#allocation2 + $0x68c] ss:$16 sps:$4 sm:$0xff]  }
 0x18f   : > { %2706 = vmatprep.subr.bf16.mxu0 %v7268_v63  ;;  %v7348_v63 = vld [vmem:[#allocation2 + $0x688] ss:$16 sps:$4 sm:$0xff]  }
 0x190   : > { %2947 = vmatpush1.bf16.msra.mxu1 %v7257_v60  ;;  %v7345_v60 = vld [vmem:[#allocation2 + $0x6a0] ss:$16 sps:$4 sm:$0xff]  }
 0x191   : > { %2948 = vmatprep.subr.bf16.mxu1 %v7265_v62  ;;  %v7353_v62 = vld [vmem:[#allocation2 + $0x6c4] ss:$16 sps:$4 sm:$0xff]  }
 0x192   : > { %2707 = vmatpush1.bf16.msra.mxu0 %v7266_v2  ;;  %v7356_v2 = vld [vmem:[#allocation2 + $0x6ac] ss:$16 sps:$4 sm:$0xff]  }
 0x193   : > { %2708 = vmatprep.subr.bf16.mxu0 %v7274_v4  ;;  %v7354_v4 = vld [vmem:[#allocation2 + $0x6a8] ss:$16 sps:$4 sm:$0xff]  }
 0x194   : > { %2949 = vmatpush1.bf16.msra.mxu1 %v7263_v1  ;;  %v7351_v1 = vld [vmem:[#allocation2 + $0x6c0] ss:$16 sps:$4 sm:$0xff]  }
 0x195   : > { %2950 = vmatprep.subr.bf16.mxu1 %v7271_v3  ;;  %v7359_v3 = vld [vmem:[#allocation2 + $0x6e4] ss:$16 sps:$4 sm:$0xff]  }
 0x196   : > { %2709 = vmatpush1.bf16.msra.mxu0 %v7272_v7  ;;  %v7362_v7 = vld [vmem:[#allocation2 + $0x6cc] ss:$16 sps:$4 sm:$0xff]  }
 0x197   : > { %2710 = vmatprep.subr.bf16.mxu0 %v7280_v9 }
 0x198   : > { %2951 = vmatpush1.bf16.msra.mxu1 %v7269_v6  ;;  %v7357_v6 = vld [vmem:[#allocation2 + $0x6e0] ss:$16 sps:$4 sm:$0xff]  }
 0x199   : > { %2952 = vmatprep.subr.bf16.mxu1 %v7277_v8  ;;  %v7365_v8 = vld [vmem:[#allocation2 + $0x704] ss:$16 sps:$4 sm:$0xff]  }
 0x19a   : > { %2711 = vmatpush1.bf16.msra.mxu0 %v7278_v12  ;;  %v7360_v12 = vld [vmem:[#allocation2 + $0x6c8] ss:$16 sps:$4 sm:$0xff]  }
 0x19b   : > { %2712 = vmatprep.subr.bf16.mxu0 %v7286_v14  ;;  %v7363_v14 = vld [vmem:[#allocation2 + $0x700] ss:$16 sps:$4 sm:$0xff]  }
 0x19c   : > { %2953 = vmatpush1.bf16.msra.mxu1 %v7275_v11 }
 0x19d   : > { %2954 = vmatprep.subr.bf16.mxu1 %v7283_v13 }
 0x19e   : > { %2713 = vmatpush1.bf16.msra.mxu0 %v7284_v17 }
 0x19f   : > { %2714 = vmatprep.subr.bf16.mxu0 %v7292_v21  ;;  %v7366_v21 = vld [vmem:[#allocation2 + $0x6e8] ss:$16 sps:$4 sm:$0xff]  }
 0x1a0   : > { %2955 = vmatpush1.bf16.msra.mxu1 %v7281_v16  ;;  %v7368_v16 = vld [vmem:[#allocation2 + $0x6ec] ss:$16 sps:$4 sm:$0xff]  }
 0x1a1   : > { %2956 = vmatprep.subr.bf16.mxu1 %v7289_v19  ;;  %v7371_v19 = vld [vmem:[#allocation2 + $0x724] ss:$16 sps:$4 sm:$0xff]  }
 0x1a2   : > { %2715 = vmatpush1.bf16.msra.mxu0 %v7290_v23  ;;  %v7374_v23 = vld [vmem:[#allocation2 + $0x70c] ss:$16 sps:$4 sm:$0xff]  }
 0x1a3   : > { %2716 = vmatprep.subr.bf16.mxu0 %v7298_v26  ;;  %v7377_v26 = vld [vmem:[#allocation2 + $0x744] ss:$16 sps:$4 sm:$0xff]  }
 0x1a4   : > { %2957 = vmatpush1.bf16.msra.mxu1 %v7287_v22  ;;  %v7369_v22 = vld [vmem:[#allocation2 + $0x720] ss:$16 sps:$4 sm:$0xff]  }
 0x1a5   : > { %2958 = vmatprep.subr.bf16.mxu1 %v7295_v24  ;;  %v7372_v24 = vld [vmem:[#allocation2 + $0x708] ss:$16 sps:$4 sm:$0xff]  }
 0x1a6   : > { %2717 = vmatpush1.bf16.msra.mxu0 %v7296_v28  ;;  %v7380_v28 = vld [vmem:[#allocation2 + $0x72c] ss:$16 sps:$4 sm:$0xff]  }
 0x1a7   : > { %2718 = vmatprep.subr.bf16.mxu0 %v7304_v55  ;;  %v7378_v55 = vld [vmem:[#allocation2 + $0x728] ss:$16 sps:$4 sm:$0xff]  }
 0x1a8   : > { %2959 = vmatpush1.bf16.msra.mxu1 %v7293_v27  ;;  %v7375_v27 = vld [vmem:[#allocation2 + $0x740] ss:$16 sps:$4 sm:$0xff]  }
 0x1a9   : > { %2960 = vmatprep.subr.bf16.mxu1 %v7301_v29  ;;  %v7383_v29 = vld [vmem:[#allocation2 + $0x764] ss:$16 sps:$4 sm:$0xff]  }
 0x1aa   : > { %2719 = vmatpush1.bf16.msra.mxu0 %v7302_v31  ;;  %v7386_v31 = vld [vmem:[#allocation2 + $0x74c] ss:$16 sps:$4 sm:$0xff]  }
 0x1ab   : > { %2720 = vmatprep.subr.bf16.mxu0 %v7310_v33  ;;  %v7384_v33 = vld [vmem:[#allocation2 + $0x748] ss:$16 sps:$4 sm:$0xff]  }
 0x1ac   : > { %2961 = vmatpush1.bf16.msra.mxu1 %v7299_v30  ;;  %v7381_v30 = vld [vmem:[#allocation2 + $0x760] ss:$16 sps:$4 sm:$0xff]  }
 0x1ad   : > { %2962 = vmatprep.subr.bf16.mxu1 %v7307_v32  ;;  %v7389_v32 = vld [vmem:[#allocation2 + $0x784] ss:$16 sps:$4 sm:$0xff]  }
 0x1ae   : > { %2721 = vmatpush1.bf16.msra.mxu0 %v7308_v36  ;;  %v7392_v36 = vld [vmem:[#allocation2 + $0x76c] ss:$16 sps:$4 sm:$0xff]  }
 0x1af   : > { %2731 = vmatprep.subr.bf16.mxu0 %v7317_v38  ;;  %v7390_v38 = vld [vmem:[#allocation2 + $0x768] ss:$16 sps:$4 sm:$0xff]  }
 0x1b0   : > { %2963 = vmatpush1.bf16.msra.mxu1 %v7305_v34  ;;  %v7387_v34 = vld [vmem:[#allocation2 + $0x780] ss:$16 sps:$4 sm:$0xff]  }
 0x1b1   : > { %2964 = vmatprep.subr.bf16.mxu1 %v7313_v37  ;;  %2723 = vmatmul.mubr.bf16.vlgmr.msra.gmra.mrb[0].mxu0 %v8375_v20  ;;  %v7395_v37 = vld [vmem:[#allocation2 + $0x7a4] ss:$16 sps:$4 sm:$0xff]  }
 0x1b2   : > { %2732 = vmatpush1.bf16.msra.mxu0 %v7315_v40  ;;  %2763 = vmatprep.mubr.bf16.mxu0 %v929_v43  ;;  %v7398_v40 = vld [vmem:[#allocation2 + $0x78c] ss:$16 sps:$4 sm:$0xff]  }
 0x1b3   : > { %2733 = vmatprep.subr.bf16.mxu0 %v7323_v42  ;;  %v7396_v42 = vld [vmem:[#allocation2 + $0x788] ss:$16 sps:$4 sm:$0xff]  }
 0x1b4   : > { %2965 = vmatpush1.bf16.msra.mxu1 %v7311_v39  ;;  %v7393_v39 = vld [vmem:[#allocation2 + $0x7a0] ss:$16 sps:$4 sm:$0xff]  }
 0x1b5   : > { %2966 = vmatprep.subr.bf16.mxu1 %v7320_v41  ;;  %v7401_v41 = vld [vmem:[#allocation2 + $0x7c4] ss:$16 sps:$4 sm:$0xff]  }
 0x1b6   : > { %2734 = vmatpush1.bf16.msra.mxu0 %v7321_v45  ;;  %v7407_v45 = vld [vmem:[#allocation2 + $0x7e4] ss:$16 sps:$4 sm:$0xff]  }
 0x1b7   : > { %2735 = vmatprep.subr.bf16.mxu0 %v7329_v25  ;;  %v7405_v25 = vld [vmem:[#allocation2 + $0x7e0] ss:$16 sps:$4 sm:$0xff]  }
 0x1b8   : > { %2967 = vmatpush1.bf16.msra.mxu1 %v7318_v44  ;;  %v7404_v44 = vld [vmem:[#allocation2 + $0x7ac] ss:$16 sps:$4 sm:$0xff]  }
 0x1b9   : > { %2977 = vmatprep.subr.bf16.mxu1 %v7326_v46  ;;  %v7402_v46 = vld [vmem:[#allocation2 + $0x7a8] ss:$16 sps:$4 sm:$0xff]  }
 0x1ba   : > { %2736 = vmatpush1.bf16.msra.mxu0 %v7327_v48  ;;  %v7413_v48 = vld [vmem:[#allocation2 + $0x804] ss:$16 sps:$4 sm:$0xff]  }
 0x1bb   : > { %2969 = vmatmul.mubr.bf16.vlgmr.msra.gmra.mrb[4].mxu1 %v8375_v20  ;;  %2737 = vmatprep.subr.bf16.mxu0 %v7335_v50 }
 0x1bc   : > { %2978 = vmatpush1.bf16.msra.mxu1 %v7324_v47  ;;  %3009 = vmatprep.mubr.bf16.mxu1 %v929_v43  ;;  %v7399_v43 = vld [vmem:[#allocation2 + $0x7c0] ss:$16 sps:$4 sm:$0xff]   ;;  %v7410_v47 = vld [vmem:[#allocation2 + $0x7cc] ss:$16 sps:$4 sm:$0xff]  }
 0x1bd   : > { %2979 = vmatprep.subr.bf16.mxu1 %v7332_v49  ;;  %v7643_v49 = vld.sshfl [vmem:[%s8333_s5 + $0x8] sm:$0x13 pattern:$0x75316420]  ;;  %s7874_s5 = scalar_lea.vmem %s7873_s26, 32 }
 0x1be   : > { %2738 = vmatpush1.bf16.msra.mxu0 %v7333_v51  ;;  %v937_v50 = vcombine.high %v7643_v49, %v7643_v49  ;;  %v927_v51 = vcombine.high %v8375_v20, %v8375_v20  ;;  %v7420_v20 = vld [vmem:[#allocation2 + $0x808] ss:$16 sps:$4 sm:$0xff]   ;;  %v7489_v49 = vld [vmem:[#allocation2 + $0x9a0] ss:$16 sps:$4 sm:$0xff]   ;;  %p7876_p6 = scmp.lt.s32.totalorder %s7874_s5, %s7868_s20 }
 0x1bf   : > { %2739 = vmatprep.subr.bf16.mxu0 %v7341_v53  ;;  %v7416_v53 = vld [vmem:[#allocation2 + $0x7ec] ss:$16 sps:$4 sm:$0xff]  }
 0x1c0   : > { %2980 = vmatpush1.bf16.msra.mxu1 %v7330_v35  ;;  %v7408_v35 = vld [vmem:[#allocation2 + $0x7c8] ss:$16 sps:$4 sm:$0xff]   ;;  %p7877_p5 = por %p7876_p6, %p7875_p0 }
 0x1c1   : > { %2981 = vmatprep.subr.bf16.mxu1 %v7338_v52  ;;  %v7411_v52 = vld [vmem:[#allocation2 + $0x800] ss:$16 sps:$4 sm:$0xff]  }
 0x1c2   : > { %2740 = vmatpush1.bf16.msra.mxu0 %v7339_v56  ;;  %v951_v56 = vrot.slane %v937_v50, %v8336_v10  ;;  %v7494_v50 = vld [vmem:[#allocation2 + $0x98c] ss:$16 sps:$4 sm:$0xff]   ;;  %p7878_p9 = pnand %p7877_p5, %p7871_p1 }
 0x1c3   : > { %2741 = vmatprep.subr.bf16.mxu0 %v7347_v58  ;;  %v7417_v58 = vld [vmem:[#allocation2 + $0x820] ss:$16 sps:$4 sm:$0xff]  }
 0x1c4   : > { %2982 = vmatpush1.bf16.msra.mxu1 %v7336_v54  ;;  %v7419_v54 = vld [vmem:[#allocation2 + $0x824] ss:$16 sps:$4 sm:$0xff]  }
 0x1c5   : > { %2983 = vmatprep.subr.bf16.mxu1 %v7344_v57  ;;  %v7414_v57 = vld [vmem:[#allocation2 + $0x7e8] ss:$16 sps:$4 sm:$0xff]  }
 0x1c6   : > { %2742 = vmatpush1.bf16.msra.mxu0 %v7345_v60  ;;  %v7425_v60 = vld [vmem:[#allocation2 + $0x844] ss:$16 sps:$4 sm:$0xff]  }
 0x1c7   : > { %2743 = vmatprep.subr.bf16.mxu0 %v7353_v62  ;;  %v7428_v62 = vld [vmem:[#allocation2 + $0x82c] ss:$16 sps:$4 sm:$0xff]  }
 0x1c8   : > { %2984 = vmatpush1.bf16.msra.mxu1 %v7342_v59  ;;  %v7422_v59 = vld [vmem:[#allocation2 + $0x80c] ss:$16 sps:$4 sm:$0xff]  }
 0x1c9   : > { %2985 = vmatprep.subr.bf16.mxu1 %v7350_v61  ;;  %v7423_v61 = vld [vmem:[#allocation2 + $0x840] ss:$16 sps:$4 sm:$0xff]  }
 0x1ca   : > { %2744 = vmatpush1.bf16.msra.mxu0 %v7351_v1  ;;  %v7426_v1 = vld [vmem:[#allocation2 + $0x828] ss:$16 sps:$4 sm:$0xff]  }
 0x1cb   : > { %2745 = vmatprep.subr.bf16.mxu0 %v7359_v3  ;;  %v7434_v3 = vld [vmem:[#allocation2 + $0x84c] ss:$16 sps:$4 sm:$0xff]  }
 0x1cc   : > { %2986 = vmatpush1.bf16.msra.mxu1 %v7348_v63  ;;  %v7431_v63 = vld [vmem:[#allocation2 + $0x864] ss:$16 sps:$4 sm:$0xff]  }
 0x1cd   : > { %2987 = vmatprep.subr.bf16.mxu1 %v7356_v2  ;;  %v7429_v2 = vld [vmem:[#allocation2 + $0x860] ss:$16 sps:$4 sm:$0xff]  }
 0x1ce   : > { %v8381_v9 = vpop.f32.mrb[0].mxu1  ;;  %2746 = vmatpush1.bf16.msra.mxu0 %v7357_v6  ;;  %v7432_v6 = vld [vmem:[#allocation2 + $0x848] ss:$16 sps:$4 sm:$0xff]  }
 0x1cf   : > { %v8383_v11 = vpop.f32.mrb[1].mxu1  ;;  %2747 = vmatprep.subr.bf16.mxu0 %v7365_v8  ;;  %v7440_v8 = vld [vmem:[#allocation2 + $0x86c] ss:$16 sps:$4 sm:$0xff]  }
 0x1d0   : > { %2988 = vmatpush1.bf16.msra.mxu1 %v7354_v4  ;;  %v2851_v13 = vpop.f32.mrb[2].mxu1  ;;  %v7437_v4 = vld [vmem:[#allocation2 + $0x884] ss:$16 sps:$4 sm:$0xff]  }
 0x1d1   : > { %2989 = vmatprep.subr.bf16.mxu1 %v7362_v7  ;;  %v2852_v17 = vpop.f32.mrb[3].mxu1  ;;  %v7435_v7 = vld [vmem:[#allocation2 + $0x880] ss:$16 sps:$4 sm:$0xff]   ;;  %v7438_v13 = vld [vmem:[#allocation2 + $0x868] ss:$16 sps:$4 sm:$0xff]  }
 0x1d2   : > { %2748 = vmatpush1.bf16.msra.mxu0 %v7363_v14  ;;  %v7441_v14 = vld [vmem:[#allocation2 + $0x8a0] ss:$16 sps:$4 sm:$0xff]   ;;  %v7449_v17 = vld [vmem:[#allocation2 + $0x8c4] ss:$16 sps:$4 sm:$0xff]  }
 0x1d3   : > { %2749 = vmatprep.subr.bf16.mxu0 %v7371_v19  ;;  %v7444_v19 = vld [vmem:[#allocation2 + $0x888] ss:$16 sps:$4 sm:$0xff]  }
 0x1d4   : > { %2990 = vmatpush1.bf16.msra.mxu1 %v7360_v12  ;;  %v7443_v12 = vld [vmem:[#allocation2 + $0x8a4] ss:$16 sps:$4 sm:$0xff]  }
 0x1d5   : > { %2991 = vmatprep.subr.bf16.mxu1 %v7368_v16  ;;  %v7446_v16 = vld [vmem:[#allocation2 + $0x88c] ss:$16 sps:$4 sm:$0xff]  }
 0x1d6   : > { %2750 = vmatpush1.bf16.msra.mxu0 %v7369_v22  ;;  %v7452_v22 = vld [vmem:[#allocation2 + $0x8ac] ss:$16 sps:$4 sm:$0xff]  }
 0x1d7   : > { %2751 = vmatprep.subr.bf16.mxu0 %v7377_v26  ;;  %v7453_v26 = vld [vmem:[#allocation2 + $0x8e0] ss:$16 sps:$4 sm:$0xff]  }
 0x1d8   : > { %2992 = vmatpush1.bf16.msra.mxu1 %v7366_v21  ;;  %v7447_v21 = vld [vmem:[#allocation2 + $0x8c0] ss:$16 sps:$4 sm:$0xff]  }
 0x1d9   : > { %2993 = vmatprep.subr.bf16.mxu1 %v7374_v23  ;;  %v7455_v23 = vld [vmem:[#allocation2 + $0x8e4] ss:$16 sps:$4 sm:$0xff]  }
 0x1da   : > { %2752 = vmatpush1.bf16.msra.mxu0 %v7375_v27  ;;  %v7458_v27 = vld [vmem:[#allocation2 + $0x8cc] ss:$16 sps:$4 sm:$0xff]  }
 0x1db   : > { %2753 = vmatprep.subr.bf16.mxu0 %v7383_v29  ;;  %v7456_v29 = vld [vmem:[#allocation2 + $0x8c8] ss:$16 sps:$4 sm:$0xff]  }
 0x1dc   : > { %2994 = vmatpush1.bf16.msra.mxu1 %v7372_v24  ;;  %v7450_v24 = vld [vmem:[#allocation2 + $0x8a8] ss:$16 sps:$4 sm:$0xff]  }
 0x1dd   : > { %2995 = vmatprep.subr.bf16.mxu1 %v7380_v28  ;;  %v7461_v28 = vld [vmem:[#allocation2 + $0x904] ss:$16 sps:$4 sm:$0xff]  }
 0x1de   : > { %2754 = vmatpush1.bf16.msra.mxu0 %v7381_v30  ;;  %v7464_v30 = vld [vmem:[#allocation2 + $0x8ec] ss:$16 sps:$4 sm:$0xff]  }
 0x1df   : > { %2755 = vmatprep.subr.bf16.mxu0 %v7389_v32  ;;  %v7462_v32 = vld [vmem:[#allocation2 + $0x8e8] ss:$16 sps:$4 sm:$0xff]  }
 0x1e0   : > { %2996 = vmatpush1.bf16.msra.mxu1 %v7378_v55  ;;  %v7459_v55 = vld [vmem:[#allocation2 + $0x900] ss:$16 sps:$4 sm:$0xff]  }
 0x1e1   : > { %2997 = vmatprep.subr.bf16.mxu1 %v7386_v31  ;;  %v7467_v31 = vld [vmem:[#allocation2 + $0x924] ss:$16 sps:$4 sm:$0xff]  }
 0x1e2   : > { %2756 = vmatpush1.bf16.msra.mxu0 %v7387_v34  ;;  %v7470_v34 = vld [vmem:[#allocation2 + $0x90c] ss:$16 sps:$4 sm:$0xff]  }
 0x1e3   : > { %2757 = vmatprep.subr.bf16.mxu0 %v7395_v37  ;;  %v7468_v37 = vld [vmem:[#allocation2 + $0x908] ss:$16 sps:$4 sm:$0xff]  }
 0x1e4   : > { %2998 = vmatpush1.bf16.msra.mxu1 %v7384_v33  ;;  %v7465_v33 = vld [vmem:[#allocation2 + $0x920] ss:$16 sps:$4 sm:$0xff]  }
 0x1e5   : > { %2999 = vmatprep.subr.bf16.mxu1 %v7392_v36  ;;  %v7473_v36 = vld [vmem:[#allocation2 + $0x944] ss:$16 sps:$4 sm:$0xff]  }
 0x1e6   : > { %2758 = vmatpush1.bf16.msra.mxu0 %v7393_v39  ;;  %v7476_v39 = vld [vmem:[#allocation2 + $0x92c] ss:$16 sps:$4 sm:$0xff]  }
 0x1e7   : > { %2759 = vmatprep.subr.bf16.mxu0 %v7401_v41  ;;  %v7474_v41 = vld [vmem:[#allocation2 + $0x928] ss:$16 sps:$4 sm:$0xff]  }
 0x1e8   : > { %3000 = vmatpush1.bf16.msra.mxu1 %v7390_v38  ;;  %v7471_v38 = vld [vmem:[#allocation2 + $0x940] ss:$16 sps:$4 sm:$0xff]  }
 0x1e9   : > { %3001 = vmatprep.subr.bf16.mxu1 %v7398_v40  ;;  %v7479_v40 = vld [vmem:[#allocation2 + $0x964] ss:$16 sps:$4 sm:$0xff]  }
 0x1ea   : > { %2760 = vmatpush1.bf16.msra.mxu0 %v7399_v43  ;;  %v7482_v43 = vld [vmem:[#allocation2 + $0x94c] ss:$16 sps:$4 sm:$0xff]  }
 0x1eb   : > { %2761 = vmatprep.subr.bf16.mxu0 %v7407_v45  ;;  %v7480_v45 = vld [vmem:[#allocation2 + $0x948] ss:$16 sps:$4 sm:$0xff]  }
 0x1ec   : > { %3002 = vmatpush1.bf16.msra.mxu1 %v7396_v42  ;;  %v7477_v42 = vld [vmem:[#allocation2 + $0x960] ss:$16 sps:$4 sm:$0xff]  }
 0x1ed   : > { %3003 = vmatprep.subr.bf16.mxu1 %v7404_v44  ;;  %v7485_v44 = vld [vmem:[#allocation2 + $0x984] ss:$16 sps:$4 sm:$0xff]  }
 0x1ee   : > { %2762 = vmatpush1.bf16.msra.mxu0 %v7405_v25  ;;  %v7488_v25 = vld [vmem:[#allocation2 + $0x96c] ss:$16 sps:$4 sm:$0xff]  }
 0x1ef   : > { %2772 = vmatprep.subr.bf16.mxu0 %v7413_v48  ;;  %v7486_v48 = vld [vmem:[#allocation2 + $0x968] ss:$16 sps:$4 sm:$0xff]  }
 0x1f0   : > { %3004 = vmatpush1.bf16.msra.mxu1 %v7402_v46  ;;  %v7483_v46 = vld [vmem:[#allocation2 + $0x980] ss:$16 sps:$4 sm:$0xff]  }
 0x1f1   : > { %3005 = vmatprep.subr.bf16.mxu1 %v7410_v47  ;;  %2764 = vmatmul.mubr.bf16.vlgmr.msra.gmra.mrb[0].mxu0 %v927_v51  ;;  %v7491_v47 = vld [vmem:[#allocation2 + $0x9a4] ss:$16 sps:$4 sm:$0xff]  }
 0x1f2   : > { %2773 = vmatpush1.bf16.msra.mxu0 %v7411_v52  ;;  %2804 = vmatprep.mubr.bf16.mxu0 %v951_v56  ;;  %v7495_v52 = vld [vmem:[#allocation2 + $0x9c0] ss:$16 sps:$4 sm:$0xff]  }
 0x1f3   : > { %2774 = vmatprep.subr.bf16.mxu0 %v7419_v54  ;;  %v7503_v54 = vld [vmem:[#allocation2 + $0x9e4] ss:$16 sps:$4 sm:$0xff]  }
 0x1f4   : > { %3006 = vmatpush1.bf16.msra.mxu1 %v7408_v35  ;;  %v7497_v35 = vld [vmem:[#allocation2 + $0x9c4] ss:$16 sps:$4 sm:$0xff]  }
 0x1f5   : > { %3007 = vmatprep.subr.bf16.mxu1 %v7416_v53  ;;  %v7500_v53 = vld [vmem:[#allocation2 + $0x9ac] ss:$16 sps:$4 sm:$0xff]  }
 0x1f6   : > { %2775 = vmatpush1.bf16.msra.mxu0 %v7417_v58  ;;  %v7506_v58 = vld [vmem:[#allocation2 + $0x9cc] ss:$16 sps:$4 sm:$0xff]  }
 0x1f7   : > { %2776 = vmatprep.subr.bf16.mxu0 %v7425_v60  ;;  %v7504_v60 = vld [vmem:[#allocation2 + $0x9c8] ss:$16 sps:$4 sm:$0xff]  }
 0x1f8   : > { %3008 = vmatpush1.bf16.msra.mxu1 %v7414_v57  ;;  %v7501_v57 = vld [vmem:[#allocation2 + $0x9e0] ss:$16 sps:$4 sm:$0xff]  }
 0x1f9   : > { %3018 = vmatprep.subr.bf16.mxu1 %v7422_v59  ;;  %v7515_v59 = vld [vmem:[#allocation7 + $0x4] ss:$8 sps:$4 sm:$0xff]  }
 0x1fa   : > { %2777 = vmatpush1.bf16.msra.mxu0 %v7423_v61  ;;  %v7513_v61 = vld [vmem:[#allocation7] ss:$8 sps:$4 sm:$0xff]  }
 0x1fb   : > { %3010 = vmatmul.mubr.bf16.vlgmr.msra.gmra.mrb[4].mxu1 %v927_v51  ;;  %2778 = vmatprep.subr.bf16.mxu0 %v7431_v63  ;;  %v7492_v51 = vld [vmem:[#allocation2 + $0x988] ss:$16 sps:$4 sm:$0xff]  }
 0x1fc   : > { %3019 = vmatpush1.bf16.msra.mxu1 %v7420_v20  ;;  %3050 = vmatprep.mubr.bf16.mxu1 %v951_v56  ;;  %v7498_v56 = vld [vmem:[#allocation2 + $0x9a8] ss:$16 sps:$4 sm:$0xff]   ;;  %v7509_v20 = vld [vmem:[#allocation2 + $0x9ec] ss:$16 sps:$4 sm:$0xff]  }
 0x1fd   : > { %3020 = vmatprep.subr.bf16.mxu1 %v7428_v62  ;;  %v7518_v62 = vld [vmem:[#allocation7 + $0x14] ss:$8 sps:$4 sm:$0xff]  }
 0x1fe   : > { %2779 = vmatpush1.bf16.msra.mxu0 %v7429_v2  ;;  %v7507_v63 = vld [vmem:[#allocation2 + $0x9e8] ss:$16 sps:$4 sm:$0xff]   ;;  %v7516_v2 = vld [vmem:[#allocation7 + $0x10] ss:$8 sps:$4 sm:$0xff]  }
 0x1ff   : > { %2780 = vmatprep.subr.bf16.mxu0 %v7437_v4  ;;  %v7510_v4 = vld [vmem:[#allocation2 + $0xa08] ss:$16 sps:$4 sm:$0xff]  }
 0x200   : > { %3021 = vmatpush1.bf16.msra.mxu1 %v7426_v1  ;;  %v7512_v1 = vld [vmem:[#allocation2 + $0xa0c] ss:$16 sps:$4 sm:$0xff]  }
 0x201   : > { %3022 = vmatprep.subr.bf16.mxu1 %v7434_v3  ;;  %v7521_v3 = vld [vmem:[#allocation7 + $0x24] ss:$8 sps:$4 sm:$0xff]  }
 0x202   : > { %2781 = vmatpush1.bf16.msra.mxu0 %v7435_v7  ;;  %v7524_v7 = vld [vmem:[#allocation7 + $0x34] ss:$8 sps:$4 sm:$0xff]  }
 0x203   : > { %2782 = vmatprep.subr.bf16.mxu0 %v7443_v12  ;;  %v7527_v12 = vld [vmem:[#allocation7 + $0x44] ss:$8 sps:$4 sm:$0xff]  }
 0x204   : > { %3023 = vmatpush1.bf16.msra.mxu1 %v7432_v6  ;;  %v7519_v6 = vld [vmem:[#allocation7 + $0x20] ss:$8 sps:$4 sm:$0xff]  }
 0x205   : > { %3024 = vmatprep.subr.bf16.mxu1 %v7440_v8  ;;  %v7522_v8 = vld [vmem:[#allocation7 + $0x30] ss:$8 sps:$4 sm:$0xff]  }
 0x206   : > { %2783 = vmatpush1.bf16.msra.mxu0 %v7441_v14  ;;  %v7530_v14 = vld [vmem:[#allocation7 + $0x54] ss:$8 sps:$4 sm:$0xff]  }
 0x207   : > { %2784 = vmatprep.subr.bf16.mxu0 %v7449_v17  ;;  %v7533_v17 = vld [vmem:[#allocation7 + $0x64] ss:$8 sps:$4 sm:$0xff]  }
 0x208   : > { %3025 = vmatpush1.bf16.msra.mxu1 %v7438_v13  ;;  %v7525_v13 = vld [vmem:[#allocation7 + $0x40] ss:$8 sps:$4 sm:$0xff]  }
 0x209   : > { %3026 = vmatprep.subr.bf16.mxu1 %v7446_v16  ;;  %v7528_v16 = vld [vmem:[#allocation7 + $0x50] ss:$8 sps:$4 sm:$0xff]  }
 0x20a   : > { %2785 = vmatpush1.bf16.msra.mxu0 %v7447_v21  ;;  %v7539_v21 = vld [vmem:[#allocation7 + $0x84] ss:$8 sps:$4 sm:$0xff]  }
 0x20b   : > { %2786 = vmatprep.subr.bf16.mxu0 %v7455_v23  ;;  %v7542_v23 = vld [vmem:[#allocation7 + $0x94] ss:$8 sps:$4 sm:$0xff]  }
 0x20c   : > { %3027 = vmatpush1.bf16.msra.mxu1 %v7444_v19  ;;  %v7536_v19 = vld [vmem:[#allocation7 + $0x74] ss:$8 sps:$4 sm:$0xff]  }
 0x20d   : > { %3028 = vmatprep.subr.bf16.mxu1 %v7452_v22  ;;  %v7537_v22 = vld [vmem:[#allocation7 + $0x80] ss:$8 sps:$4 sm:$0xff]  }
 0x20e   : > { %2787 = vmatpush1.bf16.msra.mxu0 %v7453_v26  ;;  %v7545_v26 = vld [vmem:[#allocation7 + $0xa4] ss:$8 sps:$4 sm:$0xff]  }
 0x20f   : > { %2788 = vmatprep.subr.bf16.mxu0 %v7461_v28  ;;  %v7546_v28 = vld [vmem:[#allocation7 + $0xb0] ss:$8 sps:$4 sm:$0xff]  }
 0x210   : > { %3029 = vmatpush1.bf16.msra.mxu1 %v7450_v24  ;;  %v7540_v24 = vld [vmem:[#allocation7 + $0x90] ss:$8 sps:$4 sm:$0xff]  }
 0x211   : > { %3030 = vmatprep.subr.bf16.mxu1 %v7458_v27  ;;  %v7543_v27 = vld [vmem:[#allocation7 + $0xa0] ss:$8 sps:$4 sm:$0xff]  }
 0x212   : > { %2789 = vmatpush1.bf16.msra.mxu0 %v7459_v55  ;;  %v7549_v55 = vld [vmem:[#allocation7 + $0xc0] ss:$8 sps:$4 sm:$0xff]  }
 0x213   : > { %2790 = vmatprep.subr.bf16.mxu0 %v7467_v31  ;;  %v7552_v31 = vld [vmem:[#allocation7 + $0xd0] ss:$8 sps:$4 sm:$0xff]  }
 0x214   : > { %3031 = vmatpush1.bf16.msra.mxu1 %v7456_v29  ;;  %v7551_v29 = vld [vmem:[#allocation7 + $0xc4] ss:$8 sps:$4 sm:$0xff]  }
 0x215   : > { %3032 = vmatprep.subr.bf16.mxu1 %v7464_v30  ;;  %v7554_v30 = vld [vmem:[#allocation7 + $0xd4] ss:$8 sps:$4 sm:$0xff]  }
 0x216   : > { %2791 = vmatpush1.bf16.msra.mxu0 %v7465_v33  ;;  %v7555_v33 = vld [vmem:[#allocation7 + $0xe0] ss:$8 sps:$4 sm:$0xff]  }
 0x217   : > { %2792 = vmatprep.subr.bf16.mxu0 %v7473_v36  ;;  %v7558_v36 = vld [vmem:[#allocation7 + $0xf0] ss:$8 sps:$4 sm:$0xff]  }
 0x218   : > { %3033 = vmatpush1.bf16.msra.mxu1 %v7462_v32  ;;  %v7557_v32 = vld [vmem:[#allocation7 + $0xe4] ss:$8 sps:$4 sm:$0xff]  }
 0x219   : > { %3034 = vmatprep.subr.bf16.mxu1 %v7470_v34  ;;  %v7560_v34 = vld [vmem:[#allocation7 + $0xf4] ss:$8 sps:$4 sm:$0xff]  }
 0x21a   : > { %2793 = vmatpush1.bf16.msra.mxu0 %v7471_v38  ;;  %v3593_v38 = vld [vmem:[#allocation10 + $0x8] sm:$0xff] }
 0x21b   : > { %2794 = vmatprep.subr.bf16.mxu0 %v7479_v40  ;;  %v3592_v40 = vld [vmem:[#allocation10] sm:$0xff] }
 0x21c   : > { %3035 = vmatpush1.bf16.msra.mxu1 %v7468_v37  ;;  %v7563_v37 = vld [vmem:[#allocation7 + $0x104] ss:$8 sps:$4 sm:$0xff]  }
 0x21d   : > { %3036 = vmatprep.subr.bf16.mxu1 %v7476_v39  ;;  %v3597_v39 = vld [vmem:[#allocation10 + $0x28] sm:$0xff] }
 0x21e   : > { %2795 = vmatpush1.bf16.msra.mxu0 %v7477_v42  ;;  %v3596_v42 = vld [vmem:[#allocation10 + $0x20] sm:$0xff] }
 0x21f   : > { %2796 = vmatprep.subr.bf16.mxu0 %v7485_v44  ;;  %v3605_v44 = vld [vmem:[#allocation10 + $0x68] sm:$0xff] }
 0x220   : > { %3037 = vmatpush1.bf16.msra.mxu1 %v7474_v41  ;;  %v6755_v41 = vpack.c.bf16 %v3597_v39, %v3593_v38  ;;  %v7588_v38 = vld [vmem:[#allocation7 + $0x190] ss:$8 sps:$4 sm:$0xff]   ;;  %v7593_v39 = vld [vmem:[#allocation7 + $0x1a4] ss:$8 sps:$4 sm:$0xff]  }
 0x221   : > { %3038 = vmatprep.subr.bf16.mxu1 %v7482_v43  ;;  %v3601_v43 = vld [vmem:[#allocation10 + $0x48] sm:$0xff] }
 0x222   : > { %2797 = vmatpush1.bf16.msra.mxu0 %v7483_v46  ;;  %v6759_v46 = vpack.c.bf16 %v3605_v44, %v3601_v43  ;;  %v7599_v43 = vld [vmem:[#allocation7 + $0x1c4] ss:$8 sps:$4 sm:$0xff]   ;;  %v7597_v44 = vld [vmem:[#allocation7 + $0x1c0] ss:$8 sps:$4 sm:$0xff]  }
 0x223   : > { %2798 = vmatprep.subr.bf16.mxu0 %v7491_v47  ;;  %v3604_v47 = vld [vmem:[#allocation10 + $0x60] sm:$0xff] }
 0x224   : > { %3039 = vmatpush1.bf16.msra.mxu1 %v7480_v45  ;;  %v6757_v45 = vpack.c.bf16 %v3596_v42, %v3592_v40  ;;  %v7591_v40 = vld [vmem:[#allocation7 + $0x1a0] ss:$8 sps:$4 sm:$0xff]   ;;  %v7594_v42 = vld [vmem:[#allocation7 + $0x1b0] ss:$8 sps:$4 sm:$0xff]  }
 0x225   : > { %3040 = vmatprep.subr.bf16.mxu1 %v7488_v25  ;;  %v3600_v25 = vld [vmem:[#allocation10 + $0x40] sm:$0xff] }
 0x226   : > { %2799 = vmatpush1.bf16.msra.mxu0 %v7489_v49  ;;  %v3613_v49 = vld [vmem:[#allocation10 + $0xa8] sm:$0xff] }
 0x227   : > { %2800 = vmatprep.subr.bf16.mxu0 %v7497_v35 }
 0x228   : > { %3041 = vmatpush1.bf16.msra.mxu1 %v7486_v48  ;;  %v3609_v48 = vld [vmem:[#allocation10 + $0x88] sm:$0xff] }
 0x229   : > { %3042 = vmatprep.subr.bf16.mxu1 %v7494_v50  ;;  %v6761_v50 = vpack.c.bf16 %v3604_v47, %v3600_v25  ;;  %v6763_v35 = vpack.c.bf16 %v3613_v49, %v3609_v48  ;;  %v7600_v25 = vld [vmem:[#allocation7 + $0x1d0] ss:$8 sps:$4 sm:$0xff]   ;;  %v7605_v48 = vld [vmem:[#allocation7 + $0x1e4] ss:$8 sps:$4 sm:$0xff]   ;;  %v7603_v49 = vld [vmem:[#allocation7 + $0x1e0] ss:$8 sps:$4 sm:$0xff]  }
 0x22a   : > { %2801 = vmatpush1.bf16.msra.mxu0 %v7495_v52  ;;  %v3612_v52 = vld [vmem:[#allocation10 + $0xa0] sm:$0xff] }
 0x22b   : > { %2802 = vmatprep.subr.bf16.mxu0 %v7503_v54  ;;  %v8395_v54 = vsub.s32 0, %v8328_v5 }
 0x22c   : > { %3043 = vmatpush1.bf16.msra.mxu1 %v7492_v51  ;;  %v3608_v51 = vld [vmem:[#allocation10 + $0x80] sm:$0xff] }
 0x22d   : > { %3044 = vmatprep.subr.bf16.mxu1 %v7500_v53  ;;  %v6765_v53 = vpack.c.bf16 %v3612_v52, %v3608_v51  ;;  %v7606_v51 = vld [vmem:[#allocation7 + $0x1f0] ss:$8 sps:$4 sm:$0xff]  }
 0x22e   : > { %2803 = vmatpush1.bf16.msra.mxu0 %v7501_v57  ;;  %v8400_v57 = vsub.s32 1, %v8328_v5 }
 0x22f   : > { %3504 = vmatprep.subr.bf16.mxu0 %v7515_v59 }
 0x230   : > { %3045 = vmatpush1.bf16.msra.mxu1 %v7498_v56  ;;  %v8397_v56 = vld [vmem:[#allocation5] sm:$0xf] }
 0x231   : > { %3046 = vmatprep.subr.bf16.mxu1 %v7506_v58  ;;  %2805 = vmatmul.mubr.bf16.vlgmr.msra.gmra.mrb[0].mxu0 %v8340_v15  ;;  %v2587_v58 = vrot.slane %v8397_v56, %v8395_v54  ;;  %v2591_v59 = vrot.slane %v8397_v56, %v8400_v57 }
 0x232   : > { %3505 = vmatpush1.bf16.msra.mxu0 %v7513_v61 }
 0x233   : > { %3506 = vmatprep.subr.bf16.mxu0 %v7518_v62 }
 0x234   : > { %3047 = vmatpush1.bf16.msra.mxu1 %v7504_v60 }
 0x235   : > { %3048 = vmatprep.subr.bf16.mxu1 %v7509_v20 }
 0x236   : > { %3507 = vmatpush1.bf16.msra.mxu0 %v7516_v2 }
 0x237   : > { %3508 = vmatprep.subr.bf16.mxu0 %v7521_v3 }
 0x238   : > { %3049 = vmatpush1.bf16.msra.mxu1 %v7507_v63 }
 0x239   : > { %3059 = vmatprep.subr.bf16.mxu1 %v7512_v1 }
 0x23a   : > { %3509 = vmatpush1.bf16.msra.mxu0 %v7519_v6 }
 0x23b   : > { %3051 = vmatmul.mubr.bf16.vlgmr.msra.gmra.mrb[4].mxu1 %v8340_v15  ;;  %3510 = vmatprep.subr.bf16.mxu0 %v7524_v7  ;;  %v7531_v15 = vld [vmem:[#allocation7 + $0x60] ss:$8 sps:$4 sm:$0xff]  }
 0x23c   : > { %3060 = vmatpush1.bf16.msra.mxu1 %v7510_v4  ;;  %3091 = vmatprep.mubr.bf16.mxu1 %v7998_v0  ;;  %v7534_v0 = vld [vmem:[#allocation7 + $0x70] ss:$8 sps:$4 sm:$0xff]  }
 0x23d   : > { %6756 = vmatprep.subr.bf16.mxu1 %v6755_v41  ;;  %v7596_v41 = vld [vmem:[#allocation7 + $0x1b4] ss:$8 sps:$4 sm:$0xff]  }
 0x23e   : > { %3511 = vmatpush1.bf16.msra.mxu0 %v7522_v8  ;;  %v7561_v8 = vld [vmem:[#allocation7 + $0x100] ss:$8 sps:$4 sm:$0xff]  }
 0x23f   : > { %3512 = vmatprep.subr.bf16.mxu0 %v7527_v12 }
 0x242   : > { %3513 = vmatpush1.bf16.msra.mxu0 %v7525_v13  ;;  %v7566_v13 = vld [vmem:[#allocation7 + $0x114] ss:$8 sps:$4 sm:$0xff]  }
 0x243   : > { %3514 = vmatprep.subr.bf16.mxu0 %v7530_v14  ;;  %v7564_v14 = vld [vmem:[#allocation7 + $0x110] ss:$8 sps:$4 sm:$0xff]  }
 0x246   : > { %3515 = vmatpush1.bf16.msra.mxu0 %v7528_v16  ;;  %v8409_v16 = vsub.s32 3, %v8328_v5 }
 0x247   : > { %6422 = vmatmul.mubr.msk.bf16.vlgmr.msra.gmra.mrb[4].mxu1 %vm2604_vm0, %v8344_v18  ;;  %3516 = vmatprep.subr.bf16.mxu0 %v7533_v17  ;;  %v7548_v18 = vld [vmem:[#allocation7 + $0xb4] ss:$8 sps:$4 sm:$0xff]   ;;  %v7569_v17 = vld [vmem:[#allocation7 + $0x124] ss:$8 sps:$4 sm:$0xff]  }
 0x248   : > { %6758 = vmatpush1.bf16.msra.mxu1 %v6757_v45  ;;  %v8414_v45 = vsub.s32 2, %v8328_v5 }
 0x249   : > { %6760 = vmatprep.subr.bf16.mxu1 %v6759_v46  ;;  %v7602_v46 = vld [vmem:[#allocation7 + $0x1d4] ss:$8 sps:$4 sm:$0xff]  }
 0x24a   : > { %3517 = vmatpush1.bf16.msra.mxu0 %v7531_v15  ;;  %v7572_v15 = vld [vmem:[#allocation7 + $0x134] ss:$8 sps:$4 sm:$0xff]   ;;  %v2595_v47 = vrot.slane %v8397_v56, %v8414_v45 }
 0x24b   : > { %3518 = vmatprep.subr.bf16.mxu0 %v7536_v19 }
 0x24c   : > { %6762 = vmatpush1.bf16.msra.mxu1 %v6761_v50 }
 0x24d   : > { %6764 = vmatprep.subr.bf16.mxu1 %v6763_v35  ;;  %v7608_v35 = vld [vmem:[#allocation7 + $0x1f4] ss:$8 sps:$4 sm:$0xff]  }
 0x24e   : > { %3519 = vmatpush1.bf16.msra.mxu0 %v7534_v0 }
 0x24f   : > { %3520 = vmatprep.subr.bf16.mxu0 %v7539_v21  ;;  %v7570_v21 = vld [vmem:[#allocation7 + $0x130] ss:$8 sps:$4 sm:$0xff]  }
 0x250   : > { %6766 = vmatpush1.bf16.msra.mxu1 %v6765_v53 }
 0x252   : > { %3521 = vmatpush1.bf16.msra.mxu0 %v7537_v22 }
 0x253   : > { %3522 = vmatprep.subr.bf16.mxu0 %v7542_v23 }
 0x256   : > { %3523 = vmatpush1.bf16.msra.mxu0 %v7540_v24  ;;  %v7575_v24 = vld [vmem:[#allocation7 + $0x144] ss:$8 sps:$4 sm:$0xff]  }
 0x257   : > { %3524 = vmatprep.subr.bf16.mxu0 %v7545_v26 }
 0x25a   : > { %3525 = vmatpush1.bf16.msra.mxu0 %v7543_v27 }
 0x25b   : > { %3526 = vmatprep.subr.bf16.mxu0 %v7548_v18  ;;  %v7573_v18 = vld [vmem:[#allocation7 + $0x140] ss:$8 sps:$4 sm:$0xff]  }
 0x25e   : > { %3527 = vmatpush1.bf16.msra.mxu0 %v7546_v28 }
 0x25f   : > { %3528 = vmatprep.subr.bf16.mxu0 %v7551_v29  ;;  %v7578_v29 = vld [vmem:[#allocation7 + $0x154] ss:$8 sps:$4 sm:$0xff]  }
 0x262   : > { %3529 = vmatpush1.bf16.msra.mxu0 %v7549_v55  ;;  %v7576_v55 = vld [vmem:[#allocation7 + $0x150] ss:$8 sps:$4 sm:$0xff]  }
 0x263   : > { %3530 = vmatprep.subr.bf16.mxu0 %v7554_v30  ;;  %v7581_v30 = vld [vmem:[#allocation7 + $0x164] ss:$8 sps:$4 sm:$0xff]  }
 0x266   : > { %3531 = vmatpush1.bf16.msra.mxu0 %v7552_v31  ;;  %v7579_v31 = vld [vmem:[#allocation7 + $0x160] ss:$8 sps:$4 sm:$0xff]  }
 0x267   : > { %3532 = vmatprep.subr.bf16.mxu0 %v7557_v32  ;;  %v7584_v32 = vld [vmem:[#allocation7 + $0x174] ss:$8 sps:$4 sm:$0xff]  }
 0x26a   : > { %3533 = vmatpush1.bf16.msra.mxu0 %v7555_v33  ;;  %v7582_v33 = vld [vmem:[#allocation7 + $0x170] ss:$8 sps:$4 sm:$0xff]  }
 0x26b   : > { %3534 = vmatprep.subr.bf16.mxu0 %v7560_v34  ;;  %v7587_v34 = vld [vmem:[#allocation7 + $0x184] ss:$8 sps:$4 sm:$0xff]  }
 0x26e   : > { %3535 = vmatpush1.bf16.msra.mxu0 %v7558_v36  ;;  %v7585_v36 = vld [vmem:[#allocation7 + $0x180] ss:$8 sps:$4 sm:$0xff]  }
 0x26f   : > { %3545 = vmatprep.subr.bf16.mxu0 %v7563_v37  ;;  %v7590_v37 = vld [vmem:[#allocation7 + $0x194] ss:$8 sps:$4 sm:$0xff]  }
 0x304   : > { %v2806_v60 = vpop.f32.mrb[0].mxu0 }
 0x305   : > { %v6819_v20 = vadd.f32 %v2806_v60, %v2587_v58  ;;  %v2808_v61 = vpop.f32.mrb[1].mxu0  ;;  %v3617_v58 = vld [vmem:[#allocation10 + $0xc8] sm:$0xff] }
 0x306   : > { %v6821_v62 = vadd.f32 %v2808_v61, %v2591_v59  ;;  %v2810_v63 = vpop.f32.mrb[2].mxu0  ;;  %v3621_v59 = vld [vmem:[#allocation10 + $0xe8] sm:$0xff]  ;;  %v3620_v61 = vld [vmem:[#allocation10 + $0xe0] sm:$0xff] }
 0x307   : > { %v6820_v1 = vadd.f32 %v6819_v20, %v8381_v9  ;;  %v2811_v2 = vpop.f32.mrb[3].mxu0  ;;  %v7567_v9 = vld [vmem:[#allocation7 + $0x120] ss:$8 sps:$4 sm:$0xff]   ;;  %v6767_v60 = vpack.c.bf16 %v3621_v59, %v3617_v58  ;;  %v3877_v58 = vld [vmem:[#allocation13 + $0x188] sm:$0xff] }
 0x308   : > { %v6822_v3 = vadd.f32 %v6821_v62, %v8383_v11  ;;  %v2599_v11 = vrot.slane %v8397_v56, %v8409_v16  ;;  %v3616_v20 = vld [vmem:[#allocation10 + $0xc0] sm:$0xff]  ;;  %v3625_v62 = vld [vmem:[#allocation10 + $0x108] sm:$0xff] }
 0x309   : > { %v3100_v4 = vmax.f32 %v6820_v1, 0.0  ;;  %v6769_v56 = vpack.c.bf16 %v3620_v61, %v3616_v20  ;;  %6768 = vmatprep.subr.bf16.mxu1 %v6767_v60  ;;  %v3629_v63 = vld [vmem:[#allocation10 + $0x128] sm:$0xff]  ;;  %v3624_v2 = vld [vmem:[#allocation10 + $0x100] sm:$0xff] }
 0x30a   : > { %v3101_v6 = vmax.f32 %v6822_v3, 0.0  ;;  %v6771_v1 = vpack.c.bf16 %v3629_v63, %v3625_v62  ;;  %v3628_v3 = vld [vmem:[#allocation10 + $0x120] sm:$0xff]  ;;  %v3881_v59 = vld [vmem:[#allocation13 + $0x1a8] sm:$0xff] }
 0x30b   : > { %v3104_v12 = vpack.c.bf16 %v3100_v4, %v3100_v4  ;;  %6770 = vmatpush1.bf16.msra.mxu1 %v6769_v56  ;;  %v6773_v4 = vpack.c.bf16 %v3628_v3, %v3624_v2  ;;  %v6538_v60 = vcombine.high %v3877_v58, %v3881_v59  ;;  %v6537_v20 = vcombine.low %v3877_v58, %v3881_v59  ;;  %v3885_v61 = vld [vmem:[#allocation13 + $0x1c8] sm:$0xff] }
 0x30c   : > { %v3105_v7 = vpack.c.bf16 %v3101_v6, %v3101_v6  ;;  %6772 = vmatprep.subr.bf16.mxu1 %v6771_v1  ;;  %v3633_v6 = vld [vmem:[#allocation10 + $0x148] sm:$0xff] }
 0x30d   : > { %v3889_v56 = vld [vmem:[#allocation13 + $0x1e8] sm:$0xff] }
 0x30e   : > { %3536 = vmatprep.mubr.bf16.mxu0 %v3105_v7  ;;  %v3637_v7 = vld [vmem:[#allocation10 + $0x168] sm:$0xff]  ;;  %v6546_v62 = vcombine.high %v3885_v61, %v3889_v56  ;;  %v6545_v63 = vcombine.low %v3885_v61, %v3889_v56  ;;  %v3619_v61 = vld [vmem:[#allocation10 + $0xd8] sm:$0xff] }
 0x30f   : > { %3537 = vmatmul.mubr.bf16.vlgmr.msra.gmra.mrb[4].mxu0 %v3104_v12  ;;  %6774 = vmatpush1.bf16.msra.mxu1 %v6773_v4  ;;  %v6775_v12 = vpack.c.bf16 %v3637_v7, %v3633_v6  ;;  %v3893_v1 = vld [vmem:[#allocation13 + $0x208] sm:$0xff]  ;;  %v3623_v56 = vld [vmem:[#allocation10 + $0xf8] sm:$0xff] }
 0x310   : > { %3546 = vmatpush1.bf16.msra.mxu0 %v7561_v8  ;;  %v3632_v8 = vld [vmem:[#allocation10 + $0x140] sm:$0xff]  ;;  %v3897_v2 = vld [vmem:[#allocation13 + $0x228] sm:$0xff] }
 0x311   : > { %3547 = vmatprep.subr.bf16.mxu0 %v7566_v13  ;;  %v3636_v13 = vld [vmem:[#allocation10 + $0x160] sm:$0xff]  ;;  %6776 = vmatprep.subr.bf16.mxu1 %v6775_v12  ;;  %v6554_v3 = vcombine.high %v3893_v1, %v3897_v2  ;;  %v6553_v4 = vcombine.low %v3893_v1, %v3897_v2  ;;  %v3901_v6 = vld [vmem:[#allocation13 + $0x248] sm:$0xff] }
 0x312   : > { %v3905_v7 = vld [vmem:[#allocation13 + $0x268] sm:$0xff] }
 0x313   : > { %v6561_v12 = vcombine.low %v3901_v6, %v3905_v7  ;;  %v3618_v1 = vld [vmem:[#allocation10 + $0xd0] sm:$0xff] }
 0x314   : > { %3548 = vmatpush1.bf16.msra.mxu0 %v7564_v14  ;;  %v3641_v14 = vld [vmem:[#allocation10 + $0x188] sm:$0xff]  ;;  %v3622_v2 = vld [vmem:[#allocation10 + $0xf0] sm:$0xff] }
 0x315   : > { %3549 = vmatprep.subr.bf16.mxu0 %v7569_v17  ;;  %v3645_v17 = vld [vmem:[#allocation10 + $0x1a8] sm:$0xff] }
 0x318   : > { %3550 = vmatpush1.bf16.msra.mxu0 %v7567_v9  ;;  %v8000_v9 = vmov 0.0  }
 0x319   : > { %3551 = vmatprep.subr.bf16.mxu0 %v7572_v15  ;;  %3742 = vmatprep.mubr.f32.mxu1 %v8000_v9  ;;  %v6779_v15 = vpack.c.bf16 %v3645_v17, %v3641_v14  ;;  %v3913_v14 = vld [vmem:[#allocation13 + $0x2a8] sm:$0xff] }
 0x31a   : > { %v3093_v19 = vpop.f32.mrb[4].mxu1 }
 0x31b   : > { %v3095_v0 = vpop.f32.mrb[5].mxu1  ;;  %v6823_v50 = vadd.f32 %v3093_v19, %v2595_v47  ;;  %v3640_v19 = vld [vmem:[#allocation10 + $0x180] sm:$0xff]  ;;  %v3861_v47 = vld [vmem:[#allocation13 + $0x108] sm:$0xff] }
 0x31c   : > { %v6824_v22 = vadd.f32 %v3095_v0, %v2599_v11  ;;  %v3097_v23 = vpop.f32.mrb[6].mxu1  ;;  %3552 = vmatpush1.bf16.msra.mxu0 %v7570_v21  ;;  %v6777_v11 = vpack.c.bf16 %v3636_v13, %v3632_v8  ;;  %v3644_v0 = vld [vmem:[#allocation10 + $0x1a0] sm:$0xff]  ;;  %v3649_v21 = vld [vmem:[#allocation10 + $0x1c8] sm:$0xff]  ;;  %v6562_v8 = vcombine.high %v3901_v6, %v3905_v7  ;;  %v6801_v6 = vpack.c.bf16 %v3622_v2, %v3618_v1 }
 0x31d   : > { %v3098_v26 = vpop.f32.mrb[7].mxu1  ;;  %3553 = vmatprep.subr.bf16.mxu0 %v7575_v24  ;;  %v3102_v52 = vmax.f32 %v6823_v50, 0.0  ;;  %v6781_v23 = vpack.c.bf16 %v3644_v0, %v3640_v19  ;;  %v3909_v13 = vld [vmem:[#allocation13 + $0x288] sm:$0xff]  ;;  %v3892_v1 = vld [vmem:[#allocation13 + $0x200] sm:$0xff] }
 0x31e   : > { %v3103_v27 = vmax.f32 %v6824_v22, 0.0  ;;  %v3653_v22 = vld [vmem:[#allocation10 + $0x1e8] sm:$0xff]  ;;  %6778 = vmatpush1.bf16.msra.mxu1 %v6777_v11  ;;  %v3648_v26 = vld [vmem:[#allocation10 + $0x1c0] sm:$0xff]  ;;  %v6570_v17 = vcombine.high %v3909_v13, %v3913_v14  ;;  %v6569_v11 = vcombine.low %v3909_v13, %v3913_v14  ;;  %v3639_v13 = vld [vmem:[#allocation10 + $0x178] sm:$0xff] }
 0x31f   : > { %v3106_v53 = vpack.c.bf16 %v3102_v52, %v3102_v52  ;;  %6780 = vmatprep.subr.bf16.mxu1 %v6779_v15  ;;  %v6783_v24 = vpack.c.bf16 %v3653_v22, %v3649_v21  ;;  %v3917_v15 = vld [vmem:[#allocation13 + $0x2c8] sm:$0xff]  ;;  %v3896_v2 = vld [vmem:[#allocation13 + $0x220] sm:$0xff] }
 0x320   : > { %v3107_v28 = vpack.c.bf16 %v3103_v27, %v3103_v27  ;;  %3554 = vmatpush1.bf16.msra.mxu0 %v7573_v18  ;;  %v3652_v27 = vld [vmem:[#allocation10 + $0x1e0] sm:$0xff]  ;;  %v3595_v18 = vld [vmem:[#allocation10 + $0x18] sm:$0xff]  ;;  %v3921_v19 = vld [vmem:[#allocation13 + $0x2e8] sm:$0xff] }
 0x321   : > { %3555 = vmatprep.subr.bf16.mxu0 %v7578_v29  ;;  %v6785_v29 = vpack.c.bf16 %v3652_v27, %v3648_v26  ;;  %v6578_v0 = vcombine.high %v3917_v15, %v3921_v19  ;;  %v6577_v21 = vcombine.low %v3917_v15, %v3921_v19  ;;  %v3925_v22 = vld [vmem:[#allocation13 + $0x308] sm:$0xff]  ;;  %v3643_v19 = vld [vmem:[#allocation10 + $0x198] sm:$0xff] }
 0x322   : > { %3577 = vmatprep.mubr.bf16.mxu0 %v3107_v28  ;;  %v3599_v28 = vld [vmem:[#allocation10 + $0x38] sm:$0xff]  ;;  %6782 = vmatpush1.bf16.msra.mxu1 %v6781_v23  ;;  %v3929_v23 = vld [vmem:[#allocation13 + $0x328] sm:$0xff] }
 0x323   : > { %6784 = vmatprep.subr.bf16.mxu1 %v6783_v24  ;;  %v6586_v24 = vcombine.high %v3925_v22, %v3929_v23  ;;  %v6585_v26 = vcombine.low %v3925_v22, %v3929_v23  ;;  %v3933_v27 = vld [vmem:[#allocation13 + $0x348] sm:$0xff] }
 0x324   : > { %3556 = vmatpush1.bf16.msra.mxu0 %v7576_v55  ;;  %v6787_v55 = vpack.c.bf16 %v3599_v28, %v3595_v18  ;;  %v3937_v18 = vld [vmem:[#allocation13 + $0x368] sm:$0xff] }
 0x325   : > { %3557 = vmatprep.subr.bf16.mxu0 %v7581_v30  ;;  %v3829_v30 = vld [vmem:[#allocation13 + $0x8] sm:$0xff]  ;;  %v6594_v28 = vcombine.high %v3933_v27, %v3937_v18 }
 0x326   : > { %6786 = vmatpush1.bf16.msra.mxu1 %v6785_v29  ;;  %v6593_v29 = vcombine.low %v3933_v27, %v3937_v18  ;;  %v3638_v15 = vld [vmem:[#allocation10 + $0x170] sm:$0xff]  ;;  %v3655_v27 = vld [vmem:[#allocation10 + $0x1f8] sm:$0xff] }
 0x327   : > { %6788 = vmatprep.subr.bf16.mxu1 %v6787_v55  ;;  %v3172_v55 = vld [vmem:[#allocation8] sm:$0x3]  ;;  %v3642_v23 = vld [vmem:[#allocation10 + $0x190] sm:$0xff] }
 0x328   : > { %3558 = vmatpush1.bf16.msra.mxu0 %v7579_v31  ;;  %v3833_v31 = vld [vmem:[#allocation13 + $0x28] sm:$0xff] }
 0x329   : > { %3559 = vmatprep.subr.bf16.mxu0 %v7584_v32  ;;  %v6489_v32 = vcombine.low %v3829_v30, %v3833_v31 }
 0x32c   : > { %3560 = vmatpush1.bf16.msra.mxu0 %v7582_v33  ;;  %v6490_v33 = vcombine.high %v3829_v30, %v3833_v31  ;;  %v3497_v30 = vrot.slane %v3172_v55, %v8395_v54  ;;  %v3501_v31 = vrot.slane %v3172_v55, %v8400_v57  ;;  %v3654_v55 = vld [vmem:[#allocation10 + $0x1f0] sm:$0xff] }
 0x32d   : > { %3561 = vmatprep.subr.bf16.mxu0 %v7587_v34  ;;  %v3837_v34 = vld [vmem:[#allocation13 + $0x48] sm:$0xff] }
 0x330   : > { %3562 = vmatpush1.bf16.msra.mxu0 %v7585_v36  ;;  %v3841_v36 = vld [vmem:[#allocation13 + $0x68] sm:$0xff] }
 0x331   : > { %3563 = vmatprep.subr.bf16.mxu0 %v7590_v37  ;;  %v6498_v37 = vcombine.high %v3837_v34, %v3841_v36 }
 0x334   : > { %3564 = vmatpush1.bf16.msra.mxu0 %v7588_v38  ;;  %v6497_v38 = vcombine.low %v3837_v34, %v3841_v36 }
 0x335   : > { %3565 = vmatprep.subr.bf16.mxu0 %v7593_v39  ;;  %v3845_v39 = vld [vmem:[#allocation13 + $0x88] sm:$0xff] }
 0x338   : > { %3566 = vmatpush1.bf16.msra.mxu0 %v7591_v40  ;;  %v3849_v40 = vld [vmem:[#allocation13 + $0xa8] sm:$0xff] }
 0x339   : > { %3567 = vmatprep.subr.bf16.mxu0 %v7596_v41  ;;  %v6506_v41 = vcombine.high %v3845_v39, %v3849_v40 }
 0x33c   : > { %3568 = vmatpush1.bf16.msra.mxu0 %v7594_v42  ;;  %v6505_v42 = vcombine.low %v3845_v39, %v3849_v40 }
 0x33d   : > { %3569 = vmatprep.subr.bf16.mxu0 %v7599_v43  ;;  %v3853_v43 = vld [vmem:[#allocation13 + $0xc8] sm:$0xff] }
 0x340   : > { %3570 = vmatpush1.bf16.msra.mxu0 %v7597_v44  ;;  %v3857_v44 = vld [vmem:[#allocation13 + $0xe8] sm:$0xff] }
 0x341   : > { %3571 = vmatprep.subr.bf16.mxu0 %v7602_v46  ;;  %v6514_v46 = vcombine.high %v3853_v43, %v3857_v44 }
 0x344   : > { %3572 = vmatpush1.bf16.msra.mxu0 %v7600_v25  ;;  %v6513_v25 = vcombine.low %v3853_v43, %v3857_v44  ;;  %v3598_v43 = vld [vmem:[#allocation10 + $0x30] sm:$0xff] }
 0x345   : > { %3573 = vmatprep.subr.bf16.mxu0 %v7605_v48  ;;  %v3865_v48 = vld [vmem:[#allocation13 + $0x128] sm:$0xff] }
 0x346   : > { %v6521_v50 = vcombine.low %v3861_v47, %v3865_v48 }
 0x348   : > { %3574 = vmatpush1.bf16.msra.mxu0 %v7603_v49  ;;  %v6522_v49 = vcombine.high %v3861_v47, %v3865_v48 }
 0x349   : > { %3575 = vmatprep.subr.bf16.mxu0 %v7608_v35  ;;  %v3869_v35 = vld [vmem:[#allocation13 + $0x148] sm:$0xff] }
 0x34c   : > { %3576 = vmatpush1.bf16.msra.mxu0 %v7606_v51  ;;  %v3873_v51 = vld [vmem:[#allocation13 + $0x168] sm:$0xff] }
 0x34d   : > { %5488 = vmatprep.subr.bf16.mxu0 %v6490_v33  ;;  %v6530_v52 = vcombine.high %v3869_v35, %v3873_v51 }
 0x34f   : > { %3578 = vmatmul.mubr.bf16.vlgmr.msra.gmra.mrb[4].mxu0 %v3106_v53  ;;  %v6529_v53 = vcombine.low %v3869_v35, %v3873_v51  ;;  %v3602_v35 = vld [vmem:[#allocation10 + $0x50] sm:$0xff] }
 0x350   : > { %5489 = vmatpush1.bf16.msra.mxu0 %v6489_v32  ;;  %v3606_v51 = vld [vmem:[#allocation10 + $0x70] sm:$0xff] }
 0x351   : > { %5490 = vmatprep.subr.bf16.mxu0 %v6498_v37  ;;  %v6793_v58 = vpack.c.bf16 %v3606_v51, %v3602_v35  ;;  %v3868_v51 = vld [vmem:[#allocation13 + $0x140] sm:$0xff] }
 0x354   : > { %5491 = vmatpush1.bf16.msra.mxu0 %v6497_v38 }
 0x355   : > { %5492 = vmatprep.subr.bf16.mxu0 %v6506_v41  ;;  %v3586_v41 = vld [vmem:[%s546_s23] sm:$0x1] }
 0x358   : > { %5493 = vmatpush1.bf16.msra.mxu0 %v6505_v42  ;;  %v3594_v42 = vld [vmem:[#allocation10 + $0x10] sm:$0xff] }
 0x359   : > { %5494 = vmatprep.subr.bf16.mxu0 %v6514_v46  ;;  %v3603_v46 = vld [vmem:[#allocation10 + $0x58] sm:$0xff]  ;;  %v6789_v48 = vpack.c.bf16 %v3598_v43, %v3594_v42  ;;  %v3852_v43 = vld [vmem:[#allocation13 + $0xc0] sm:$0xff] }
 0x35c   : > { %5495 = vmatpush1.bf16.msra.mxu0 %v6513_v25  ;;  %v3607_v25 = vld [vmem:[#allocation10 + $0x78] sm:$0xff] }
 0x35d   : > { %5496 = vmatprep.subr.bf16.mxu0 %v6522_v49 }
 0x360   : > { %5497 = vmatpush1.bf16.msra.mxu0 %v6521_v50  ;;  %v6791_v50 = vpack.c.bf16 %v3607_v25, %v3603_v46 }
 0x361   : > { %5498 = vmatprep.subr.bf16.mxu0 %v6530_v52  ;;  %v3611_v52 = vld [vmem:[#allocation10 + $0x98] sm:$0xff] }
 0x364   : > { %5499 = vmatpush1.bf16.msra.mxu0 %v6529_v53  ;;  %v3615_v53 = vld [vmem:[#allocation10 + $0xb8] sm:$0xff] }
 0x365   : > { %5500 = vmatprep.subr.bf16.mxu0 %v6538_v60  ;;  %v6795_v59 = vpack.c.bf16 %v3615_v53, %v3611_v52  ;;  %v3610_v60 = vld [vmem:[#allocation10 + $0x90] sm:$0xff]  ;;  %v3872_v52 = vld [vmem:[#allocation13 + $0x160] sm:$0xff] }
 0x366   : > { %v6528_v53 = vcombine.high %v3868_v51, %v3872_v52 }
 0x368   : > { %5501 = vmatpush1.bf16.msra.mxu0 %v6537_v20  ;;  %v3614_v20 = vld [vmem:[#allocation10 + $0xb0] sm:$0xff] }
 0x369   : > { %5502 = vmatprep.subr.bf16.mxu0 %v6546_v62  ;;  %v6797_v62 = vpack.c.bf16 %v3614_v20, %v3610_v60  ;;  %v6527_v60 = vcombine.low %v3868_v51, %v3872_v52  ;;  %v3961_v51 = vld [vmem:[#allocation13 + $0x428] sm:$0xff] }
 0x36c   : > { %5503 = vmatpush1.bf16.msra.mxu0 %v6545_v63  ;;  %v6799_v63 = vpack.c.bf16 %v3623_v56, %v3619_v61  ;;  %v3884_v61 = vld [vmem:[#allocation13 + $0x1c0] sm:$0xff] }
 0x36d   : > { %5504 = vmatprep.subr.bf16.mxu0 %v6554_v3  ;;  %v3627_v3 = vld [vmem:[#allocation10 + $0x118] sm:$0xff]  ;;  %v3888_v56 = vld [vmem:[#allocation13 + $0x1e0] sm:$0xff] }
 0x370   : > { %5505 = vmatpush1.bf16.msra.mxu0 %v6553_v4  ;;  %v3631_v4 = vld [vmem:[#allocation10 + $0x138] sm:$0xff] }
 0x371   : > { %5506 = vmatprep.subr.bf16.mxu0 %v6562_v8  ;;  %v6803_v7 = vpack.c.bf16 %v3631_v4, %v3627_v3  ;;  %v3626_v8 = vld [vmem:[#allocation10 + $0x110] sm:$0xff]  ;;  %v6543_v3 = vcombine.low %v3884_v61, %v3888_v56  ;;  %v6552_v4 = vcombine.high %v3892_v1, %v3896_v2 }
 0x374   : > { %5507 = vmatpush1.bf16.msra.mxu0 %v6561_v12  ;;  %v3635_v12 = vld [vmem:[#allocation10 + $0x158] sm:$0xff] }
 0x375   : > { %5508 = vmatprep.subr.bf16.mxu0 %v6570_v17  ;;  %v6807_v17 = vpack.c.bf16 %v3639_v13, %v3635_v12  ;;  %v3908_v12 = vld [vmem:[#allocation13 + $0x280] sm:$0xff] }
 0x376   : > { %v3912_v13 = vld [vmem:[#allocation13 + $0x2a0] sm:$0xff] }
 0x378   : > { %5509 = vmatpush1.bf16.msra.mxu0 %v6569_v11  ;;  %v3634_v11 = vld [vmem:[#allocation10 + $0x150] sm:$0xff] }
 0x379   : > { %5510 = vmatprep.subr.bf16.mxu0 %v6578_v0  ;;  %v3647_v0 = vld [vmem:[#allocation10 + $0x1b8] sm:$0xff] }
 0x37a   : > { %v6811_v22 = vpack.c.bf16 %v3647_v0, %v3643_v19  ;;  %v6567_v19 = vcombine.low %v3908_v12, %v3912_v13 }
 0x37c   : > { %5511 = vmatpush1.bf16.msra.mxu0 %v6577_v21  ;;  %v6809_v21 = vpack.c.bf16 %v3638_v15, %v3634_v11  ;;  %v3916_v11 = vld [vmem:[#allocation13 + $0x2c0] sm:$0xff] }
 0x37d   : > { %5512 = vmatprep.subr.bf16.mxu0 %v6586_v24  ;;  %v3646_v24 = vld [vmem:[#allocation10 + $0x1b0] sm:$0xff]  ;;  %v3920_v15 = vld [vmem:[#allocation13 + $0x2e0] sm:$0xff] }
 0x37e   : > { %v6813_v18 = vpack.c.bf16 %v3646_v24, %v3642_v23  ;;  %v6576_v0 = vcombine.high %v3916_v11, %v3920_v15  ;;  %v6575_v23 = vcombine.low %v3916_v11, %v3920_v15 }
 0x380   : > { %5513 = vmatpush1.bf16.msra.mxu0 %v6585_v26  ;;  %v3651_v26 = vld [vmem:[#allocation10 + $0x1d8] sm:$0xff] }
 0x381   : > { %5514 = vmatprep.subr.bf16.mxu0 %v6594_v28  ;;  %v6815_v28 = vpack.c.bf16 %v3655_v27, %v3651_v26  ;;  %v3932_v26 = vld [vmem:[#allocation13 + $0x340] sm:$0xff] }
 0x382   : > { %v3936_v27 = vld [vmem:[#allocation13 + $0x360] sm:$0xff] }
 0x384   : > { %5515 = vmatpush1.bf16.msra.mxu0 %v6593_v29  ;;  %v3650_v29 = vld [vmem:[#allocation10 + $0x1d0] sm:$0xff] }
 0x422   : > { %v3579_v32 = vpop.f32.mrb[4].mxu0 }
 0x423   : > { %v6825_v33 = vadd.f32 %v3579_v32, %v3497_v30  ;;  %v3581_v34 = vpop.f32.mrb[5].mxu0  ;;  %v3828_v30 = vld [vmem:[#allocation13] sm:$0xff]  ;;  %v6817_v32 = vpack.c.bf16 %v3654_v55, %v3650_v29  ;;  %v6591_v29 = vcombine.low %v3932_v26, %v3936_v27 }
 0x424   : > { %v6826_v36 = vadd.f32 %v3581_v34, %v3501_v31  ;;  %v3583_v37 = vpop.f32.mrb[6].mxu0  ;;  %v3832_v31 = vld [vmem:[#allocation13 + $0x20] sm:$0xff] }
 0x425   : > { %5841 = vst [vmem:[%s533_s16] sm:$0x1] %v6825_v33  ;;  %v3584_v38 = vpop.f32.mrb[7].mxu0  ;;  %v3836_v34 = vld [vmem:[#allocation13 + $0x40] sm:$0xff]  ;;  %v6487_v37 = vcombine.low %v3828_v30, %v3832_v31 }
 0x426   : > { %v3587_v39 = vmul.f32 0.5, %v6826_v36  ;;  %5842 = vst [vmem:[%s539_s30] sm:$0x1] %v6826_v36  ;;  %v3840_v36 = vld [vmem:[#allocation13 + $0x60] sm:$0xff] }
 0x427   : > { %v6496_v38 = vcombine.high %v3836_v34, %v3840_v36  ;;  %v3940_v55 = vld [vmem:[#allocation13 + $0x380] sm:$0xff] }
 0x428   : > { %v3588_v40 = vmul.f32 1.442695, %v3587_v39  ;;  %v3844_v39 = vld [vmem:[#allocation13 + $0x80] sm:$0xff] }
 0x42a   : > { %7609 = vpow2.f32 %v3588_v40  ;;  %v3848_v40 = vld [vmem:[#allocation13 + $0xa0] sm:$0xff] }
 0x42b   : > { %v6504_v42 = vcombine.high %v3844_v39, %v3848_v40  ;;  %v6503_v46 = vcombine.low %v3844_v39, %v3848_v40  ;;  %v3952_v39 = vld [vmem:[#allocation13 + $0x3e0] sm:$0xff]  ;;  %v3949_v40 = vld [vmem:[#allocation13 + $0x3c8] sm:$0xff] }
 0x434   : > { %v7610_v44 = vpop.eup %7609 }
 0x435   : > { %v3590_v47 = vmul.f32 %v7610_v44, %v3586_v41  ;;  %v6495_v41 = vcombine.low %v3836_v34, %v3840_v36  ;;  %v3856_v44 = vld [vmem:[#allocation13 + $0xe0] sm:$0xff] }
 0x436   : > { %v6512_v25 = vcombine.high %v3852_v43, %v3856_v44 }
 0x437   : > { %v8434_v49 = vadd.f32 %v6825_v33, %v3590_v47  ;;  %v6488_v33 = vcombine.high %v3828_v30, %v3832_v31  ;;  %v3860_v47 = vld [vmem:[#allocation13 + $0x100] sm:$0xff]  ;;  %v3941_v31 = vld [vmem:[#allocation13 + $0x388] sm:$0xff] }
 0x438   : > { %v3944_v30 = vld [vmem:[#allocation13 + $0x3a0] sm:$0xff] }
 0x439   : > { %3743 = vmatmul.mubr.f32.vlgmr.msra.gmra.mrb[8].mxu1 %v8434_v49 }
 0x43a   : > { %6790 = vmatpush1.bf16.msra.mxu1 %v6789_v48  ;;  %3813 = vmatprep.mubr.f32.mxu1 %v8000_v9  ;;  %v3630_v9 = vld [vmem:[#allocation10 + $0x130] sm:$0xff]  ;;  %v3864_v48 = vld [vmem:[#allocation13 + $0x120] sm:$0xff] }
 0x43b   : > { %6792 = vmatprep.subr.bf16.mxu1 %v6791_v50  ;;  %v6805_v14 = vpack.c.bf16 %v3630_v9, %v3626_v8  ;;  %v6511_v50 = vcombine.low %v3852_v43, %v3856_v44  ;;  %v6520_v35 = vcombine.high %v3860_v47, %v3864_v48  ;;  %v6551_v8 = vcombine.low %v3892_v1, %v3896_v2  ;;  %v3968_v2 = vld [vmem:[#allocation13 + $0x460] sm:$0xff] }
 0x43e   : > { %6794 = vmatpush1.bf16.msra.mxu1 %v6793_v58  ;;  %v3876_v58 = vld [vmem:[#allocation13 + $0x180] sm:$0xff] }
 0x43f   : > { %6796 = vmatprep.subr.bf16.mxu1 %v6795_v59  ;;  %v3880_v59 = vld [vmem:[#allocation13 + $0x1a0] sm:$0xff] }
 0x440   : > { %v6536_v20 = vcombine.high %v3876_v58, %v3880_v59 }
 0x442   : > { %6798 = vmatpush1.bf16.msra.mxu1 %v6797_v62  ;;  %v6535_v62 = vcombine.low %v3876_v58, %v3880_v59 }
 0x443   : > { %6800 = vmatprep.subr.bf16.mxu1 %v6799_v63  ;;  %v6544_v63 = vcombine.high %v3884_v61, %v3888_v56 }
 0x446   : > { %6802 = vmatpush1.bf16.msra.mxu1 %v6801_v6  ;;  %v3900_v6 = vld [vmem:[#allocation13 + $0x240] sm:$0xff] }
 0x447   : > { %6804 = vmatprep.subr.bf16.mxu1 %v6803_v7  ;;  %v3904_v7 = vld [vmem:[#allocation13 + $0x260] sm:$0xff] }
 0x448   : > { %v6560_v9 = vcombine.high %v3900_v6, %v3904_v7 }
 0x44a   : > { %6806 = vmatpush1.bf16.msra.mxu1 %v6805_v14  ;;  %v6559_v14 = vcombine.low %v3900_v6, %v3904_v7 }
 0x44b   : > { %6808 = vmatprep.subr.bf16.mxu1 %v6807_v17  ;;  %v6568_v17 = vcombine.high %v3908_v12, %v3912_v13  ;;  %v3972_v12 = vld [vmem:[#allocation13 + $0x480] sm:$0xff] }
 0x44c   : > { %v3976_v13 = vld [vmem:[#allocation13 + $0x4a0] sm:$0xff] }
 0x44e   : > { %6810 = vmatpush1.bf16.msra.mxu1 %v6809_v21  ;;  %v3924_v21 = vld [vmem:[#allocation13 + $0x300] sm:$0xff] }
 0x44f   : > { %6812 = vmatprep.subr.bf16.mxu1 %v6811_v22  ;;  %v3928_v22 = vld [vmem:[#allocation13 + $0x320] sm:$0xff] }
 0x450   : > { %v6584_v24 = vcombine.high %v3924_v21, %v3928_v22 }
 0x452   : > { %6814 = vmatpush1.bf16.msra.mxu1 %v6813_v18  ;;  %v6583_v18 = vcombine.low %v3924_v21, %v3928_v22  ;;  %v3980_v21 = vld [vmem:[#allocation13 + $0x4c0] sm:$0xff] }
 0x453   : > { %6816 = vmatprep.subr.bf16.mxu1 %v6815_v28  ;;  %v6592_v28 = vcombine.high %v3932_v26, %v3936_v27  ;;  %v3984_v22 = vld [vmem:[#allocation13 + $0x4e0] sm:$0xff]  ;;  %v6631_v26 = vcombine.low %v3972_v12, %v3976_v13 }
 0x456   : > { %6818 = vmatpush1.bf16.msra.mxu1 %v6817_v32  ;;  %v6600_v32 = vcombine.high %v3940_v55, %v3944_v30 }
 0x457   : > { %5406 = vmatprep.subr.bf16.mxu1 %v6488_v33  ;;  %v3945_v33 = vld [vmem:[#allocation13 + $0x3a8] sm:$0xff] }
 0x458   : > { %v6601_v34 = vcombine.low %v3941_v31, %v3945_v33  ;;  %v6602_v36 = vcombine.high %v3941_v31, %v3945_v33  ;;  %v3993_v31 = vld [vmem:[#allocation13 + $0x528] sm:$0xff] }
 0x459   : > { %3814 = vmatmul.mubr.f32.vlgmr.msra.gmra.mrb[10].mxu1 %v8434_v49  ;;  %v6519_v49 = vcombine.low %v3860_v47, %v3864_v48  ;;  %v3960_v47 = vld [vmem:[#allocation13 + $0x420] sm:$0xff]  ;;  %v3957_v48 = vld [vmem:[#allocation13 + $0x408] sm:$0xff] }
 0x45a   : > { %5407 = vmatpush1.bf16.msra.mxu1 %v6487_v37  ;;  %v6599_v37 = vcombine.low %v3940_v55, %v3944_v30  ;;  %5516 = vmatprep.subr.bf16.mxu0 %v6602_v36  ;;  %v6617_v52 = vcombine.low %v3957_v48, %v3961_v51  ;;  %v3992_v55 = vld [vmem:[#allocation13 + $0x520] sm:$0xff]  ;;  %v3989_v30 = vld [vmem:[#allocation13 + $0x508] sm:$0xff] }
 0x45b   : > { %5408 = vmatprep.subr.bf16.mxu1 %v6496_v38  ;;  %v3948_v38 = vld [vmem:[#allocation13 + $0x3c0] sm:$0xff]  ;;  %5517 = vmatpush1.bf16.msra.mxu0 %v6601_v34  ;;  %v6650_v36 = vcombine.high %v3989_v30, %v3993_v31 }
 0x45e   : > { %5409 = vmatpush1.bf16.msra.mxu1 %v6495_v41  ;;  %v6608_v41 = vcombine.high %v3948_v38, %v3952_v39 }
 0x45f   : > { %5410 = vmatprep.subr.bf16.mxu1 %v6504_v42  ;;  %v3953_v42 = vld [vmem:[#allocation13 + $0x3e8] sm:$0xff] }
 0x460   : > { %v6609_v43 = vcombine.low %v3949_v40, %v3953_v42  ;;  %v6610_v44 = vcombine.high %v3949_v40, %v3953_v42  ;;  %v4001_v40 = vld [vmem:[#allocation13 + $0x568] sm:$0xff]  ;;  %v6649_v42 = vcombine.low %v3989_v30, %v3993_v31 }
 0x461   : > { %v4041_v30 = vld [vmem:[#allocation13 + $0x6a8] sm:$0xff] }
 0x462   : > { %5411 = vmatpush1.bf16.msra.mxu1 %v6503_v46  ;;  %v6607_v46 = vcombine.low %v3948_v38, %v3952_v39  ;;  %5518 = vmatprep.subr.bf16.mxu0 %v6610_v44  ;;  %v4000_v38 = vld [vmem:[#allocation13 + $0x560] sm:$0xff]  ;;  %v3997_v39 = vld [vmem:[#allocation13 + $0x548] sm:$0xff] }
 0x463   : > { %5412 = vmatprep.subr.bf16.mxu1 %v6512_v25  ;;  %v3956_v25 = vld [vmem:[#allocation13 + $0x400] sm:$0xff]  ;;  %5519 = vmatpush1.bf16.msra.mxu0 %v6609_v43  ;;  %v6658_v44 = vcombine.high %v3997_v39, %v4001_v40 }
 0x466   : > { %5413 = vmatpush1.bf16.msra.mxu1 %v6511_v50  ;;  %v6615_v50 = vcombine.low %v3956_v25, %v3960_v47 }
 0x467   : > { %5414 = vmatprep.subr.bf16.mxu1 %v6520_v35  ;;  %v6616_v35 = vcombine.high %v3956_v25, %v3960_v47  ;;  %v4008_v25 = vld [vmem:[#allocation13 + $0x5a0] sm:$0xff]  ;;  %v4005_v47 = vld [vmem:[#allocation13 + $0x588] sm:$0xff] }
 0x46a   : > { %5415 = vmatpush1.bf16.msra.mxu1 %v6519_v49  ;;  %v6618_v49 = vcombine.high %v3957_v48, %v3961_v51  ;;  %v4009_v48 = vld [vmem:[#allocation13 + $0x5a8] sm:$0xff] }
 0x46b   : > { %5416 = vmatprep.subr.bf16.mxu1 %v6528_v53  ;;  %v8439_v53 = vld [vmem:[#allocation11] sm:$0xf] }
 0x46c   : > { %5529 = vmatprep.subr.bf16.mxu0 %v6618_v49  ;;  %v3661_v58 = vrot.slane %v8439_v53, %v8395_v54  ;;  %v3665_v59 = vrot.slane %v8439_v53, %v8400_v57  ;;  %v4012_v49 = vld [vmem:[#allocation13 + $0x5c0] sm:$0xff] }
 0x46e   : > { %5417 = vmatpush1.bf16.msra.mxu1 %v6527_v60 }
 0x46f   : > { %5418 = vmatprep.subr.bf16.mxu1 %v6536_v20 }
 0x472   : > { %5419 = vmatpush1.bf16.msra.mxu1 %v6535_v62 }
 0x473   : > { %5420 = vmatprep.subr.bf16.mxu1 %v6544_v63  ;;  %v3964_v63 = vld [vmem:[#allocation13 + $0x440] sm:$0xff] }
 0x474   : > { %v6623_v11 = vcombine.low %v3964_v63, %v3968_v2 }
 0x476   : > { %5421 = vmatpush1.bf16.msra.mxu1 %v6543_v3  ;;  %v3965_v3 = vld [vmem:[#allocation13 + $0x448] sm:$0xff] }
 0x477   : > { %5422 = vmatprep.subr.bf16.mxu1 %v6552_v4  ;;  %v3969_v4 = vld [vmem:[#allocation13 + $0x468] sm:$0xff] }
 0x478   : > { %v6625_v15 = vcombine.low %v3965_v3, %v3969_v4 }
 0x47a   : > { %5423 = vmatpush1.bf16.msra.mxu1 %v6551_v8  ;;  %v6624_v8 = vcombine.high %v3964_v63, %v3968_v2 }
 0x47b   : > { %5424 = vmatprep.subr.bf16.mxu1 %v6560_v9  ;;  %v6626_v9 = vcombine.high %v3965_v3, %v3969_v4  ;;  %v4024_v3 = vld [vmem:[#allocation13 + $0x620] sm:$0xff]  ;;  %v4021_v4 = vld [vmem:[#allocation13 + $0x608] sm:$0xff] }
 0x47e   : > { %5425 = vmatpush1.bf16.msra.mxu1 %v6559_v14  ;;  %v3973_v14 = vld [vmem:[#allocation13 + $0x488] sm:$0xff] }
 0x47f   : > { %5426 = vmatprep.subr.bf16.mxu1 %v6568_v17  ;;  %v3977_v17 = vld [vmem:[#allocation13 + $0x4a8] sm:$0xff] }
 0x480   : > { %v6633_v27 = vcombine.low %v3973_v14, %v3977_v17 }
 0x482   : > { %5427 = vmatpush1.bf16.msra.mxu1 %v6567_v19  ;;  %v6632_v19 = vcombine.high %v3972_v12, %v3976_v13 }
 0x483   : > { %5428 = vmatprep.subr.bf16.mxu1 %v6576_v0  ;;  %v6634_v0 = vcombine.high %v3973_v14, %v3977_v17 }
 0x486   : > { %5429 = vmatpush1.bf16.msra.mxu1 %v6575_v23  ;;  %v3981_v23 = vld [vmem:[#allocation13 + $0x4c8] sm:$0xff] }
 0x487   : > { %5430 = vmatprep.subr.bf16.mxu1 %v6584_v24  ;;  %v3985_v24 = vld [vmem:[#allocation13 + $0x4e8] sm:$0xff] }
 0x488   : > { %v6641_v33 = vcombine.low %v3981_v23, %v3985_v24 }
 0x48a   : > { %5431 = vmatpush1.bf16.msra.mxu1 %v6583_v18  ;;  %v6640_v18 = vcombine.high %v3980_v21, %v3984_v22 }
 0x48b   : > { %5432 = vmatprep.subr.bf16.mxu1 %v6592_v28  ;;  %v6642_v28 = vcombine.high %v3981_v23, %v3985_v24 }
 0x48e   : > { %5433 = vmatpush1.bf16.msra.mxu1 %v6591_v29  ;;  %v3988_v29 = vld [vmem:[#allocation13 + $0x500] sm:$0xff] }
 0x48f   : > { %5434 = vmatprep.subr.bf16.mxu1 %v6600_v32  ;;  %v6639_v32 = vcombine.low %v3980_v21, %v3984_v22  ;;  %v6648_v34 = vcombine.high %v3988_v29, %v3992_v55  ;;  %v4029_v21 = vld [vmem:[#allocation13 + $0x648] sm:$0xff] }
 0x490   : > { %v4033_v22 = vld [vmem:[#allocation13 + $0x668] sm:$0xff] }
 0x492   : > { %5435 = vmatpush1.bf16.msra.mxu1 %v6599_v37  ;;  %v3996_v37 = vld [vmem:[#allocation13 + $0x540] sm:$0xff] }
 0x493   : > { %5436 = vmatprep.subr.bf16.mxu1 %v6608_v41  ;;  %v6647_v41 = vcombine.low %v3988_v29, %v3992_v55  ;;  %v6656_v43 = vcombine.high %v3996_v37, %v4000_v38  ;;  %v4040_v29 = vld [vmem:[#allocation13 + $0x6a0] sm:$0xff]  ;;  %v4037_v55 = vld [vmem:[#allocation13 + $0x688] sm:$0xff] }
 0x496   : > { %5437 = vmatpush1.bf16.msra.mxu1 %v6607_v46  ;;  %v4004_v46 = vld [vmem:[#allocation13 + $0x580] sm:$0xff] }
 0x497   : > { %5447 = vmatprep.subr.bf16.mxu1 %v6616_v35  ;;  %v6657_v35 = vcombine.low %v3997_v39, %v4001_v40  ;;  %v6664_v51 = vcombine.high %v4004_v46, %v4008_v25  ;;  %v4049_v39 = vld [vmem:[#allocation13 + $0x6e8] sm:$0xff] }
 0x50c   : > { %v3744_v60 = vpop.f32.mrb[8].mxu1 }
 0x50d   : > { %v3745_v20 = vadd.f32 %v3744_v60, %v3661_v58  ;;  %v3746_v61 = vpop.f32.mrb[9].mxu1  ;;  %v4016_v58 = vld [vmem:[#allocation13 + $0x5e0] sm:$0xff]  ;;  %v4017_v60 = vld [vmem:[#allocation13 + $0x5e8] sm:$0xff] }
 0x50e   : > { %v3747_v56 = vadd.f32 %v3746_v61, %v3665_v59  ;;  %v4013_v59 = vld [vmem:[#allocation13 + $0x5c8] sm:$0xff]  ;;  %v6663_v61 = vcombine.low %v4004_v46, %v4008_v25  ;;  %v6671_v13 = vcombine.low %v4012_v49, %v4016_v58  ;;  %v4056_v46 = vld [vmem:[#allocation13 + $0x720] sm:$0xff] }
 0x50f   : > { %v3820_v62 = vmax.f32 %v3745_v20, 0.0  ;;  %v3673_v20 = vrot.slane %v8439_v53, %v8409_v16  ;;  %v6674_v63 = vcombine.high %v4013_v59, %v4017_v60  ;;  %v6673_v14 = vcombine.low %v4013_v59, %v4017_v60  ;;  %v4053_v25 = vld [vmem:[#allocation13 + $0x708] sm:$0xff] }
 0x510   : > { %v3821_v1 = vmax.f32 %v3747_v56, 0.0  ;;  %v6665_v56 = vcombine.low %v4005_v47, %v4009_v48  ;;  %v4065_v59 = vld [vmem:[#allocation13 + $0x768] sm:$0xff] }
 0x511   : > { %v8447_v7 = vpack.c.bf16 %v3820_v62, %v3820_v62  ;;  %v6672_v62 = vcombine.high %v4012_v49, %v4016_v58  ;;  %v4064_v49 = vld [vmem:[#allocation13 + $0x760] sm:$0xff]  ;;  %v4061_v58 = vld [vmem:[#allocation13 + $0x748] sm:$0xff] }
 0x512   : > { %v8445_v6 = vpack.c.bf16 %v3821_v1, %v3821_v1  ;;  %v4020_v1 = vld [vmem:[#allocation13 + $0x600] sm:$0xff] }
 0x513   : > { %v6680_v17 = vcombine.high %v4020_v1, %v4024_v3  ;;  %v6679_v24 = vcombine.low %v4020_v1, %v4024_v3  ;;  %v4069_v1 = vld [vmem:[#allocation13 + $0x788] sm:$0xff] }
 0x514   : > { %5438 = vmatprep.mubr.bf16.mxu1 %v8445_v6  ;;  %5520 = vmatprep.mubr.bf16.mxu0 %v8445_v6  ;;  %v4073_v3 = vld [vmem:[#allocation13 + $0x7a8] sm:$0xff] }
 0x515   : > { %5439 = vmatmul.mubr.bf16.vlgmr.msra.gmra.mrb[12].mxu1 %v8447_v7  ;;  %5521 = vmatmul.mubr.bf16.vlgmr.msra.gmra.mrb[8].mxu0 %v8447_v7 }
 0x516   : > { %5448 = vmatpush1.bf16.msra.mxu1 %v6615_v50  ;;  %5530 = vmatpush1.bf16.msra.mxu0 %v6617_v52  ;;  %v6655_v50 = vcombine.low %v3996_v37, %v4000_v38  ;;  %v6666_v52 = vcombine.high %v4005_v47, %v4009_v48  ;;  %v4048_v37 = vld [vmem:[#allocation13 + $0x6e0] sm:$0xff]  ;;  %v4045_v38 = vld [vmem:[#allocation13 + $0x6c8] sm:$0xff] }
 0x517   : > { %5449 = vmatprep.subr.bf16.mxu1 %v6624_v8  ;;  %5531 = vmatprep.subr.bf16.mxu0 %v6626_v9  ;;  %v4025_v8 = vld [vmem:[#allocation13 + $0x628] sm:$0xff] }
 0x518   : > { %v4057_v47 = vld [vmem:[#allocation13 + $0x728] sm:$0xff] }
 0x51a   : > { %5450 = vmatpush1.bf16.msra.mxu1 %v6623_v11  ;;  %5532 = vmatpush1.bf16.msra.mxu0 %v6625_v15  ;;  %v6682_v11 = vcombine.high %v4021_v4, %v4025_v8  ;;  %v4028_v15 = vld [vmem:[#allocation13 + $0x640] sm:$0xff] }
 0x51b   : > { %5451 = vmatprep.subr.bf16.mxu1 %v6632_v19  ;;  %5533 = vmatprep.subr.bf16.mxu0 %v6634_v0  ;;  %v4032_v0 = vld [vmem:[#allocation13 + $0x660] sm:$0xff] }
 0x51c   : > { %v6687_v31 = vcombine.low %v4028_v15, %v4032_v0 }
 0x51e   : > { %5452 = vmatpush1.bf16.msra.mxu1 %v6631_v26  ;;  %5534 = vmatpush1.bf16.msra.mxu0 %v6633_v27  ;;  %v6681_v26 = vcombine.low %v4021_v4, %v4025_v8  ;;  %v6688_v27 = vcombine.high %v4028_v15, %v4032_v0  ;;  %v6721_v8 = vcombine.low %v4061_v58, %v4065_v59  ;;  %v4081_v15 = vld [vmem:[#allocation13 + $0x7e8] sm:$0xff] }
 0x51f   : > { %5453 = vmatprep.subr.bf16.mxu1 %v6640_v18  ;;  %5535 = vmatprep.subr.bf16.mxu0 %v6642_v28  ;;  %v6690_v18 = vcombine.high %v4029_v21, %v4033_v22  ;;  %v4036_v28 = vld [vmem:[#allocation13 + $0x680] sm:$0xff]  ;;  %v6729_v0 = vcombine.low %v4069_v1, %v4073_v3 }
 0x520   : > { %v6695_v40 = vcombine.low %v4036_v28, %v4040_v29 }
 0x522   : > { %5454 = vmatpush1.bf16.msra.mxu1 %v6639_v32  ;;  %5536 = vmatpush1.bf16.msra.mxu0 %v6641_v33  ;;  %v6689_v32 = vcombine.low %v4029_v21, %v4033_v22  ;;  %v6696_v33 = vcombine.high %v4036_v28, %v4040_v29 }
 0x523   : > { %5455 = vmatprep.subr.bf16.mxu1 %v6648_v34  ;;  %5537 = vmatprep.subr.bf16.mxu0 %v6650_v36  ;;  %v6698_v34 = vcombine.high %v4037_v55, %v4041_v30  ;;  %v4044_v36 = vld [vmem:[#allocation13 + $0x6c0] sm:$0xff] }
 0x524   : > { %v6703_v48 = vcombine.low %v4044_v36, %v4048_v37 }
 0x526   : > { %5456 = vmatpush1.bf16.msra.mxu1 %v6647_v41  ;;  %5538 = vmatpush1.bf16.msra.mxu0 %v6649_v42  ;;  %v6697_v41 = vcombine.low %v4037_v55, %v4041_v30  ;;  %v6704_v42 = vcombine.high %v4044_v36, %v4048_v37 }
 0x527   : > { %5457 = vmatprep.subr.bf16.mxu1 %v6656_v43  ;;  %5539 = vmatprep.subr.bf16.mxu0 %v6658_v44  ;;  %v6706_v43 = vcombine.high %v4045_v38, %v4049_v39  ;;  %v4052_v44 = vld [vmem:[#allocation13 + $0x700] sm:$0xff] }
 0x528   : > { %v6711_v60 = vcombine.low %v4052_v44, %v4056_v46 }
 0x52a   : > { %5458 = vmatpush1.bf16.msra.mxu1 %v6655_v50  ;;  %5540 = vmatpush1.bf16.msra.mxu0 %v6657_v35  ;;  %v6705_v50 = vcombine.low %v4045_v38, %v4049_v39  ;;  %v6712_v35 = vcombine.high %v4052_v44, %v4056_v46  ;;  %v3851_v44 = vld [vmem:[#allocation13 + $0xb8] sm:$0xff] }
 0x52b   : > { %5459 = vmatprep.subr.bf16.mxu1 %v6664_v51  ;;  %5541 = vmatprep.subr.bf16.mxu0 %v6666_v52  ;;  %v6714_v51 = vcombine.high %v4053_v25, %v4057_v47  ;;  %v4060_v52 = vld [vmem:[#allocation13 + $0x740] sm:$0xff] }
 0x52c   : > { %v8455_v2 = vpop.f32.mrb[10].mxu1  ;;  %v6719_v4 = vcombine.low %v4060_v52, %v4064_v49 }
 0x52d   : > { %v3817_v9 = vpop.f32.mrb[11].mxu1 }
 0x52e   : > { %v3818_v12 = vadd.f32 %v3817_v9, %v3673_v20  ;;  %5460 = vmatpush1.bf16.msra.mxu1 %v6663_v61  ;;  %5542 = vmatpush1.bf16.msra.mxu0 %v6665_v56  ;;  %v6713_v20 = vcombine.low %v4053_v25, %v4057_v47  ;;  %v6720_v61 = vcombine.high %v4060_v52, %v4064_v49  ;;  %v3859_v52 = vld [vmem:[#allocation13 + $0xf8] sm:$0xff] }
 0x52f   : > { %5461 = vmatprep.subr.bf16.mxu1 %v6672_v62  ;;  %5543 = vmatprep.subr.bf16.mxu0 %v6674_v63  ;;  %v6722_v56 = vcombine.high %v4061_v58, %v4065_v59  ;;  %v4068_v62 = vld [vmem:[#allocation13 + $0x780] sm:$0xff]  ;;  %v3669_v9 = vrot.slane %v8439_v53, %v8414_v45  ;;  %v3834_v53 = vld [vmem:[#allocation13 + $0x30] sm:$0xff] }
 0x530   : > { %v3823_v19 = vmax.f32 %v3818_v12, 0.0  ;;  %v4072_v63 = vld [vmem:[#allocation13 + $0x7a0] sm:$0xff] }
 0x531   : > { %v6728_v12 = vcombine.high %v4068_v62, %v4072_v63  ;;  %v3816_v21 = vadd.f32 %v8455_v2, %v3669_v9  ;;  %v3839_v2 = vld [vmem:[#allocation13 + $0x58] sm:$0xff] }
 0x532   : > { %v8457_v23 = vpack.c.bf16 %v3823_v19, %v3823_v19  ;;  %5462 = vmatpush1.bf16.msra.mxu1 %v6671_v13  ;;  %5544 = vmatpush1.bf16.msra.mxu0 %v6673_v14  ;;  %v6730_v13 = vcombine.high %v4069_v1, %v4073_v3  ;;  %v4076_v14 = vld [vmem:[#allocation13 + $0x7c0] sm:$0xff]  ;;  %v6727_v19 = vcombine.low %v4068_v62, %v4072_v63  ;;  %v3871_v9 = vld [vmem:[#allocation13 + $0x158] sm:$0xff] }
 0x533   : > { %5463 = vmatprep.subr.bf16.mxu1 %v6680_v17  ;;  %5545 = vmatprep.subr.bf16.mxu0 %v6682_v11  ;;  %v4080_v17 = vld [vmem:[#allocation13 + $0x7e0] sm:$0xff]  ;;  %v4077_v11 = vld [vmem:[#allocation13 + $0x7c8] sm:$0xff]  ;;  %v3822_v55 = vmax.f32 %v3816_v21, 0.0  ;;  %v3883_v21 = vld [vmem:[#allocation13 + $0x1b8] sm:$0xff] }
 0x534   : > { %5479 = vmatprep.mubr.bf16.mxu1 %v8457_v23  ;;  %5561 = vmatprep.mubr.bf16.mxu0 %v8457_v23  ;;  %v6736_v22 = vcombine.high %v4076_v14, %v4080_v17  ;;  %v6735_v28 = vcombine.low %v4076_v14, %v4080_v17  ;;  %v6737_v29 = vcombine.low %v4077_v11, %v4081_v15 }
 0x535   : > { %v8464_v37 = vpack.c.bf16 %v3822_v55, %v3822_v55 }
 0x536   : > { %5464 = vmatpush1.bf16.msra.mxu1 %v6679_v24  ;;  %5546 = vmatpush1.bf16.msra.mxu0 %v6681_v26  ;;  %v6738_v24 = vcombine.high %v4077_v11, %v4081_v15  ;;  %v3830_v26 = vld [vmem:[#allocation13 + $0x10] sm:$0xff] }
 0x537   : > { %5465 = vmatprep.subr.bf16.mxu1 %v6688_v27  ;;  %5547 = vmatprep.subr.bf16.mxu0 %v6690_v18  ;;  %v3831_v27 = vld [vmem:[#allocation13 + $0x18] sm:$0xff]  ;;  %v6492_v30 = vcombine.high %v3830_v26, %v3834_v53  ;;  %v6491_v36 = vcombine.low %v3830_v26, %v3834_v53  ;;  %v3878_v15 = vld [vmem:[#allocation13 + $0x190] sm:$0xff] }
 0x538   : > { %v3835_v18 = vld [vmem:[#allocation13 + $0x38] sm:$0xff] }
 0x539   : > { %v6493_v38 = vcombine.low %v3831_v27, %v3835_v18 }
 0x53a   : > { %5466 = vmatpush1.bf16.msra.mxu1 %v6687_v31  ;;  %5548 = vmatpush1.bf16.msra.mxu0 %v6689_v32  ;;  %v6494_v31 = vcombine.high %v3831_v27, %v3835_v18  ;;  %v3838_v32 = vld [vmem:[#allocation13 + $0x50] sm:$0xff] }
 0x53b   : > { %5467 = vmatprep.subr.bf16.mxu1 %v6696_v33  ;;  %5549 = vmatprep.subr.bf16.mxu0 %v6698_v34  ;;  %v3842_v33 = vld [vmem:[#allocation13 + $0x70] sm:$0xff]  ;;  %v3843_v34 = vld [vmem:[#allocation13 + $0x78] sm:$0xff] }
 0x53c   : > { %v6500_v39 = vcombine.high %v3838_v32, %v3842_v33  ;;  %v6499_v46 = vcombine.low %v3838_v32, %v3842_v33  ;;  %v6501_v25 = vcombine.low %v3839_v2, %v3843_v34  ;;  %v3886_v27 = vld [vmem:[#allocation13 + $0x1d0] sm:$0xff] }
 0x53d   : > { %v3890_v18 = vld [vmem:[#allocation13 + $0x1f0] sm:$0xff] }
 0x53e   : > { %5468 = vmatpush1.bf16.msra.mxu1 %v6695_v40  ;;  %5550 = vmatpush1.bf16.msra.mxu0 %v6697_v41  ;;  %v6502_v40 = vcombine.high %v3839_v2, %v3843_v34  ;;  %v3846_v41 = vld [vmem:[#allocation13 + $0x90] sm:$0xff]  ;;  %v3895_v34 = vld [vmem:[#allocation13 + $0x218] sm:$0xff] }
 0x53f   : > { %5469 = vmatprep.subr.bf16.mxu1 %v6704_v42  ;;  %5551 = vmatprep.subr.bf16.mxu0 %v6706_v43  ;;  %v3850_v42 = vld [vmem:[#allocation13 + $0xb0] sm:$0xff]  ;;  %v3847_v43 = vld [vmem:[#allocation13 + $0x98] sm:$0xff] }
 0x540   : > { %v6508_v47 = vcombine.high %v3846_v41, %v3850_v42  ;;  %v6507_v49 = vcombine.low %v3846_v41, %v3850_v42  ;;  %v6509_v58 = vcombine.low %v3847_v43, %v3851_v44  ;;  %v3894_v33 = vld [vmem:[#allocation13 + $0x210] sm:$0xff] }
 0x541   : > { %v3898_v2 = vld [vmem:[#allocation13 + $0x230] sm:$0xff] }
 0x542   : > { %5470 = vmatpush1.bf16.msra.mxu1 %v6703_v48  ;;  %5552 = vmatpush1.bf16.msra.mxu0 %v6705_v50  ;;  %v6510_v48 = vcombine.high %v3847_v43, %v3851_v44  ;;  %v3854_v50 = vld [vmem:[#allocation13 + $0xd0] sm:$0xff]  ;;  %v3903_v44 = vld [vmem:[#allocation13 + $0x258] sm:$0xff] }
 0x543   : > { %5471 = vmatprep.subr.bf16.mxu1 %v6712_v35  ;;  %5553 = vmatprep.subr.bf16.mxu0 %v6714_v51  ;;  %v3858_v35 = vld [vmem:[#allocation13 + $0xf0] sm:$0xff]  ;;  %v3855_v51 = vld [vmem:[#allocation13 + $0xd8] sm:$0xff] }
 0x544   : > { %v6516_v59 = vcombine.high %v3854_v50, %v3858_v35  ;;  %v6515_v62 = vcombine.low %v3854_v50, %v3858_v35  ;;  %v6517_v63 = vcombine.low %v3855_v51, %v3859_v52  ;;  %v3902_v42 = vld [vmem:[#allocation13 + $0x250] sm:$0xff] }
 0x545   : > { %v3906_v43 = vld [vmem:[#allocation13 + $0x270] sm:$0xff] }
 0x546   : > { %5472 = vmatpush1.bf16.msra.mxu1 %v6711_v60  ;;  %5554 = vmatpush1.bf16.msra.mxu0 %v6713_v20  ;;  %v6518_v60 = vcombine.high %v3855_v51, %v3859_v52  ;;  %v3862_v20 = vld [vmem:[#allocation13 + $0x110] sm:$0xff]  ;;  %v3911_v52 = vld [vmem:[#allocation13 + $0x298] sm:$0xff] }
 0x547   : > { %5473 = vmatprep.subr.bf16.mxu1 %v6720_v61  ;;  %5555 = vmatprep.subr.bf16.mxu0 %v6722_v56  ;;  %v3866_v61 = vld [vmem:[#allocation13 + $0x130] sm:$0xff]  ;;  %v3867_v56 = vld [vmem:[#allocation13 + $0x138] sm:$0xff] }
 0x548   : > { %v6524_v1 = vcombine.high %v3862_v20, %v3866_v61  ;;  %v3910_v35 = vld [vmem:[#allocation13 + $0x290] sm:$0xff] }
 0x549   : > { %v3914_v51 = vld [vmem:[#allocation13 + $0x2b0] sm:$0xff] }
 0x54a   : > { %5474 = vmatpush1.bf16.msra.mxu1 %v6719_v4  ;;  %5556 = vmatpush1.bf16.msra.mxu0 %v6721_v8  ;;  %v3870_v4 = vld [vmem:[#allocation13 + $0x150] sm:$0xff] }
 0x54b   : > { %5475 = vmatprep.subr.bf16.mxu1 %v6728_v12  ;;  %5557 = vmatprep.subr.bf16.mxu0 %v6730_v13  ;;  %v3874_v8 = vld [vmem:[#allocation13 + $0x170] sm:$0xff]  ;;  %v3875_v12 = vld [vmem:[#allocation13 + $0x178] sm:$0xff]  ;;  %v6523_v13 = vcombine.low %v3862_v20, %v3866_v61 }
 0x54c   : > { %v6532_v17 = vcombine.high %v3870_v4, %v3874_v8  ;;  %v6534_v11 = vcombine.high %v3871_v9, %v3875_v12  ;;  %v3918_v61 = vld [vmem:[#allocation13 + $0x2d0] sm:$0xff] }
 0x54e   : > { %5476 = vmatpush1.bf16.msra.mxu1 %v6727_v19  ;;  %5558 = vmatpush1.bf16.msra.mxu0 %v6729_v0  ;;  %v3882_v19 = vld [vmem:[#allocation13 + $0x1b0] sm:$0xff]  ;;  %v3879_v0 = vld [vmem:[#allocation13 + $0x198] sm:$0xff] }
 0x54f   : > { %5477 = vmatprep.subr.bf16.mxu1 %v6736_v22  ;;  %5559 = vmatprep.subr.bf16.mxu0 %v6738_v24  ;;  %v6531_v22 = vcombine.low %v3870_v4, %v3874_v8  ;;  %v6533_v24 = vcombine.low %v3871_v9, %v3875_v12  ;;  %v6540_v26 = vcombine.high %v3878_v15, %v3882_v19  ;;  %v3926_v8 = vld [vmem:[#allocation13 + $0x310] sm:$0xff]  ;;  %v3927_v12 = vld [vmem:[#allocation13 + $0x318] sm:$0xff] }
 0x550   : > { %v6542_v53 = vcombine.high %v3879_v0, %v3883_v21  ;;  %v6539_v55 = vcombine.low %v3878_v15, %v3882_v19  ;;  %v3930_v9 = vld [vmem:[#allocation13 + $0x330] sm:$0xff] }
 0x551   : > { %v3934_v19 = vld [vmem:[#allocation13 + $0x350] sm:$0xff] }
 0x552   : > { %5478 = vmatpush1.bf16.msra.mxu1 %v6735_v28  ;;  %5560 = vmatpush1.bf16.msra.mxu0 %v6737_v29  ;;  %v3887_v28 = vld [vmem:[#allocation13 + $0x1d8] sm:$0xff] }
 0x553   : > { %5570 = vmatprep.subr.bf16.mxu1 %v6492_v30  ;;  %5652 = vmatprep.subr.bf16.mxu0 %v6494_v31  ;;  %v3891_v29 = vld [vmem:[#allocation13 + $0x1f8] sm:$0xff]  ;;  %v6541_v30 = vcombine.low %v3879_v0, %v3883_v21  ;;  %v6548_v31 = vcombine.high %v3886_v27, %v3890_v18  ;;  %v3938_v0 = vld [vmem:[#allocation13 + $0x370] sm:$0xff] }
 0x554   : > { %v6550_v32 = vcombine.high %v3887_v28, %v3891_v29  ;;  %v3935_v21 = vld [vmem:[#allocation13 + $0x358] sm:$0xff] }
 0x555   : > { %5480 = vmatmul.mubr.bf16.vlgmr.msra.gmra.mrb[12].mxu1 %v8464_v37  ;;  %5562 = vmatmul.mubr.bf16.vlgmr.msra.gmra.mrb[8].mxu0 %v8464_v37 }
 0x556   : > { %5571 = vmatpush1.bf16.msra.mxu1 %v6491_v36  ;;  %5602 = vmatprep.mubr.bf16.mxu1 %v8445_v6  ;;  %v3899_v36 = vld [vmem:[#allocation13 + $0x238] sm:$0xff] }
 0x557   : > { %5653 = vmatpush1.bf16.msra.mxu0 %v6493_v38  ;;  %5684 = vmatprep.mubr.bf16.mxu0 %v8445_v6  ;;  %v3863_v6 = vld [vmem:[#allocation13 + $0x118] sm:$0xff]  ;;  %v6547_v38 = vcombine.low %v3886_v27, %v3890_v18  ;;  %v6558_v41 = vcombine.high %v3895_v34, %v3899_v36  ;;  %v3942_v18 = vld [vmem:[#allocation13 + $0x390] sm:$0xff] }
 0x558   : > { %5572 = vmatprep.subr.bf16.mxu1 %v6500_v39  ;;  %5654 = vmatprep.subr.bf16.mxu0 %v6502_v40  ;;  %v6526_v3 = vcombine.high %v3863_v6, %v3867_v56  ;;  %v6525_v14 = vcombine.low %v3863_v6, %v3867_v56  ;;  %v6549_v39 = vcombine.low %v3887_v28, %v3891_v29  ;;  %v3922_v6 = vld [vmem:[#allocation13 + $0x2f0] sm:$0xff]  ;;  %v3919_v56 = vld [vmem:[#allocation13 + $0x2d8] sm:$0xff] }
 0x559   : > { %v6556_v40 = vcombine.high %v3894_v33, %v3898_v2  ;;  %v3946_v28 = vld [vmem:[#allocation13 + $0x3b0] sm:$0xff]  ;;  %v3943_v29 = vld [vmem:[#allocation13 + $0x398] sm:$0xff] }
 0x55a   : > { %5573 = vmatpush1.bf16.msra.mxu1 %v6499_v46  ;;  %v3907_v46 = vld [vmem:[#allocation13 + $0x278] sm:$0xff] }
 0x55b   : > { %5655 = vmatpush1.bf16.msra.mxu0 %v6501_v25  ;;  %5574 = vmatprep.subr.bf16.mxu1 %v6508_v47  ;;  %v6555_v25 = vcombine.low %v3894_v33, %v3898_v2  ;;  %v6557_v47 = vcombine.low %v3895_v34, %v3899_v36  ;;  %v6566_v50 = vcombine.high %v3903_v44, %v3907_v46  ;;  %v3950_v2 = vld [vmem:[#allocation13 + $0x3d0] sm:$0xff]  ;;  %v3951_v36 = vld [vmem:[#allocation13 + $0x3d8] sm:$0xff] }
 0x55c   : > { %5656 = vmatprep.subr.bf16.mxu0 %v6510_v48  ;;  %v6564_v48 = vcombine.high %v3902_v42, %v3906_v43  ;;  %v3954_v34 = vld [vmem:[#allocation13 + $0x3f0] sm:$0xff] }
 0x55e   : > { %5575 = vmatpush1.bf16.msra.mxu1 %v6507_v49  ;;  %v3915_v49 = vld [vmem:[#allocation13 + $0x2b8] sm:$0xff] }
 0x55f   : > { %5657 = vmatpush1.bf16.msra.mxu0 %v6509_v58  ;;  %5576 = vmatprep.subr.bf16.mxu1 %v6516_v59  ;;  %v6563_v58 = vcombine.low %v3902_v42, %v3906_v43  ;;  %v6565_v59 = vcombine.low %v3903_v44, %v3907_v46  ;;  %v6574_v20 = vcombine.high %v3911_v52, %v3915_v49  ;;  %v3958_v43 = vld [vmem:[#allocation13 + $0x410] sm:$0xff]  ;;  %v3959_v46 = vld [vmem:[#allocation13 + $0x418] sm:$0xff] }
 0x560   : > { %5658 = vmatprep.subr.bf16.mxu0 %v6518_v60  ;;  %v6572_v60 = vcombine.high %v3910_v35, %v3914_v51  ;;  %v3962_v44 = vld [vmem:[#allocation13 + $0x430] sm:$0xff] }
 0x562   : > { %5577 = vmatpush1.bf16.msra.mxu1 %v6515_v62  ;;  %v3923_v62 = vld [vmem:[#allocation13 + $0x2f8] sm:$0xff] }
 0x563   : > { %5659 = vmatpush1.bf16.msra.mxu0 %v6517_v63  ;;  %5578 = vmatprep.subr.bf16.mxu1 %v6524_v1  ;;  %v6571_v63 = vcombine.low %v3910_v35, %v3914_v51  ;;  %v6573_v1 = vcombine.low %v3911_v52, %v3915_v49  ;;  %v6582_v4 = vcombine.high %v3919_v56, %v3923_v62  ;;  %v3966_v51 = vld [vmem:[#allocation13 + $0x450] sm:$0xff] }
 0x564   : > { %5660 = vmatprep.subr.bf16.mxu0 %v6526_v3  ;;  %v6580_v3 = vcombine.high %v3918_v61, %v3922_v6  ;;  %v3970_v52 = vld [vmem:[#allocation13 + $0x470] sm:$0xff]  ;;  %v6619_v49 = vcombine.low %v3958_v43, %v3962_v44 }
 0x566   : > { %5579 = vmatpush1.bf16.msra.mxu1 %v6523_v13  ;;  %v3931_v13 = vld [vmem:[#allocation13 + $0x338] sm:$0xff] }
 0x567   : > { %5661 = vmatpush1.bf16.msra.mxu0 %v6525_v14  ;;  %5580 = vmatprep.subr.bf16.mxu1 %v6532_v17  ;;  %v6579_v14 = vcombine.low %v3918_v61, %v3922_v6  ;;  %v6581_v17 = vcombine.low %v3919_v56, %v3923_v62  ;;  %v6590_v15 = vcombine.high %v3927_v12, %v3931_v13  ;;  %v3974_v61 = vld [vmem:[#allocation13 + $0x490] sm:$0xff]  ;;  %v3975_v62 = vld [vmem:[#allocation13 + $0x498] sm:$0xff] }
 0x568   : > { %5662 = vmatprep.subr.bf16.mxu0 %v6534_v11  ;;  %v6588_v11 = vcombine.high %v3926_v8, %v3930_v9  ;;  %v3978_v6 = vld [vmem:[#allocation13 + $0x4b0] sm:$0xff] }
 0x56a   : > { %5581 = vmatpush1.bf16.msra.mxu1 %v6531_v22  ;;  %v3939_v22 = vld [vmem:[#allocation13 + $0x378] sm:$0xff] }
 0x56b   : > { %5663 = vmatpush1.bf16.msra.mxu0 %v6533_v24  ;;  %5582 = vmatprep.subr.bf16.mxu1 %v6540_v26  ;;  %v6587_v24 = vcombine.low %v3926_v8, %v3930_v9  ;;  %v6589_v26 = vcombine.low %v3927_v12, %v3931_v13  ;;  %v6598_v27 = vcombine.high %v3935_v21, %v3939_v22  ;;  %v3982_v9 = vld [vmem:[#allocation13 + $0x4d0] sm:$0xff]  ;;  %v3983_v13 = vld [vmem:[#allocation13 + $0x4d8] sm:$0xff] }
 0x56c   : > { %5664 = vmatprep.subr.bf16.mxu0 %v6542_v53  ;;  %v6596_v53 = vcombine.high %v3934_v19, %v3938_v0  ;;  %v3986_v12 = vld [vmem:[#allocation13 + $0x4f0] sm:$0xff] }
 0x56e   : > { %5583 = vmatpush1.bf16.msra.mxu1 %v6539_v55  ;;  %v3947_v55 = vld [vmem:[#allocation13 + $0x3b8] sm:$0xff] }
 0x56f   : > { %5665 = vmatpush1.bf16.msra.mxu0 %v6541_v30  ;;  %5584 = vmatprep.subr.bf16.mxu1 %v6548_v31  ;;  %v6595_v30 = vcombine.low %v3934_v19, %v3938_v0  ;;  %v6597_v31 = vcombine.low %v3935_v21, %v3939_v22  ;;  %v6606_v33 = vcombine.high %v3943_v29, %v3947_v55  ;;  %v3990_v19 = vld [vmem:[#allocation13 + $0x510] sm:$0xff]  ;;  %v3991_v21 = vld [vmem:[#allocation13 + $0x518] sm:$0xff] }
 0x570   : > { %5666 = vmatprep.subr.bf16.mxu0 %v6550_v32  ;;  %v6604_v32 = vcombine.high %v3942_v18, %v3946_v28  ;;  %v3994_v0 = vld [vmem:[#allocation13 + $0x530] sm:$0xff]  ;;  %v3995_v22 = vld [vmem:[#allocation13 + $0x538] sm:$0xff] }
 0x572   : > { %5585 = vmatpush1.bf16.msra.mxu1 %v6547_v38  ;;  %v3955_v38 = vld [vmem:[#allocation13 + $0x3f8] sm:$0xff] }
 0x573   : > { %5667 = vmatpush1.bf16.msra.mxu0 %v6549_v39  ;;  %5586 = vmatprep.subr.bf16.mxu1 %v6556_v40  ;;  %v6603_v39 = vcombine.low %v3942_v18, %v3946_v28  ;;  %v6605_v40 = vcombine.low %v3943_v29, %v3947_v55  ;;  %v6614_v42 = vcombine.high %v3951_v36, %v3955_v38  ;;  %v4002_v18 = vld [vmem:[#allocation13 + $0x570] sm:$0xff]  ;;  %v3999_v28 = vld [vmem:[#allocation13 + $0x558] sm:$0xff] }
 0x574   : > { %5668 = vmatprep.subr.bf16.mxu0 %v6558_v41  ;;  %v6612_v41 = vcombine.high %v3950_v2, %v3954_v34  ;;  %v4003_v29 = vld [vmem:[#allocation13 + $0x578] sm:$0xff]  ;;  %v6651_v55 = vcombine.low %v3990_v19, %v3994_v0 }
 0x576   : > { %5587 = vmatpush1.bf16.msra.mxu1 %v6555_v25  ;;  %v3963_v25 = vld [vmem:[#allocation13 + $0x438] sm:$0xff] }
 0x577   : > { %5669 = vmatpush1.bf16.msra.mxu0 %v6557_v47  ;;  %5588 = vmatprep.subr.bf16.mxu1 %v6564_v48  ;;  %v6611_v47 = vcombine.low %v3950_v2, %v3954_v34  ;;  %v6613_v48 = vcombine.low %v3951_v36, %v3955_v38  ;;  %v6622_v35 = vcombine.high %v3959_v46, %v3963_v25  ;;  %v4010_v2 = vld [vmem:[#allocation13 + $0x5b0] sm:$0xff]  ;;  %v4007_v34 = vld [vmem:[#allocation13 + $0x598] sm:$0xff] }
 0x578   : > { %5670 = vmatprep.subr.bf16.mxu0 %v6566_v50  ;;  %v6620_v50 = vcombine.high %v3958_v43, %v3962_v44  ;;  %v4011_v36 = vld [vmem:[#allocation13 + $0x5b8] sm:$0xff]  ;;  %v4018_v43 = vld [vmem:[#allocation13 + $0x5f0] sm:$0xff] }
 0x579   : > { %v4015_v44 = vld [vmem:[#allocation13 + $0x5d8] sm:$0xff] }
 0x57a   : > { %5589 = vmatpush1.bf16.msra.mxu1 %v6563_v58  ;;  %v3967_v58 = vld [vmem:[#allocation13 + $0x458] sm:$0xff] }
 0x57b   : > { %5671 = vmatpush1.bf16.msra.mxu0 %v6565_v59  ;;  %5590 = vmatprep.subr.bf16.mxu1 %v6572_v60  ;;  %v3971_v59 = vld [vmem:[#allocation13 + $0x478] sm:$0xff]  ;;  %v6621_v60 = vcombine.low %v3959_v46, %v3963_v25 }
 0x57c   : > { %5672 = vmatprep.subr.bf16.mxu0 %v6574_v20  ;;  %v6628_v20 = vcombine.high %v3966_v51, %v3970_v52  ;;  %v6630_v56 = vcombine.high %v3967_v58, %v3971_v59  ;;  %v4019_v46 = vld [vmem:[#allocation13 + $0x5f8] sm:$0xff] }
 0x57e   : > { %5591 = vmatpush1.bf16.msra.mxu1 %v6571_v63  ;;  %v3979_v63 = vld [vmem:[#allocation13 + $0x4b8] sm:$0xff] }
 0x57f   : > { %5673 = vmatpush1.bf16.msra.mxu0 %v6573_v1  ;;  %5592 = vmatprep.subr.bf16.mxu1 %v6580_v3  ;;  %v6627_v1 = vcombine.low %v3966_v51, %v3970_v52  ;;  %v6629_v3 = vcombine.low %v3967_v58, %v3971_v59  ;;  %v6638_v8 = vcombine.high %v3975_v62, %v3979_v63  ;;  %v4026_v51 = vld [vmem:[#allocation13 + $0x630] sm:$0xff]  ;;  %v4023_v52 = vld [vmem:[#allocation13 + $0x618] sm:$0xff] }
 0x580   : > { %5674 = vmatprep.subr.bf16.mxu0 %v6582_v4  ;;  %v6636_v4 = vcombine.high %v3974_v61, %v3978_v6  ;;  %v6677_v59 = vcombine.low %v4015_v44, %v4019_v46 }
 0x582   : > { %5593 = vmatpush1.bf16.msra.mxu1 %v6579_v14  ;;  %v3987_v14 = vld [vmem:[#allocation13 + $0x4f8] sm:$0xff] }
 0x583   : > { %5675 = vmatpush1.bf16.msra.mxu0 %v6581_v17  ;;  %5594 = vmatprep.subr.bf16.mxu1 %v6588_v11  ;;  %v6635_v17 = vcombine.low %v3974_v61, %v3978_v6  ;;  %v6644_v11 = vcombine.high %v3982_v9, %v3986_v12  ;;  %v4030_v61 = vld [vmem:[#allocation13 + $0x650] sm:$0xff] }
 0x584   : > { %5676 = vmatprep.subr.bf16.mxu0 %v6590_v15  ;;  %v6646_v15 = vcombine.high %v3983_v13, %v3987_v14  ;;  %v4034_v6 = vld [vmem:[#allocation13 + $0x670] sm:$0xff] }
 0x586   : > { %5595 = vmatpush1.bf16.msra.mxu1 %v6587_v24  ;;  %v6645_v24 = vcombine.low %v3983_v13, %v3987_v14  ;;  %v4043_v13 = vld [vmem:[#allocation13 + $0x6b8] sm:$0xff]  ;;  %v6691_v14 = vcombine.low %v4030_v61, %v4034_v6 }
 0x587   : > { %5677 = vmatpush1.bf16.msra.mxu0 %v6589_v26  ;;  %5596 = vmatprep.subr.bf16.mxu1 %v6596_v53  ;;  %v6652_v26 = vcombine.high %v3990_v19, %v3994_v0  ;;  %v6654_v53 = vcombine.high %v3991_v21, %v3995_v22  ;;  %v4050_v19 = vld [vmem:[#allocation13 + $0x6f0] sm:$0xff]  ;;  %v4047_v0 = vld [vmem:[#allocation13 + $0x6d8] sm:$0xff] }
 0x588   : > { %5678 = vmatprep.subr.bf16.mxu0 %v6598_v27  ;;  %v3998_v27 = vld [vmem:[#allocation13 + $0x550] sm:$0xff] }
 0x589   : > { %v6659_v38 = vcombine.low %v3998_v27, %v4002_v18 }
 0x58a   : > { %5597 = vmatpush1.bf16.msra.mxu1 %v6595_v30  ;;  %v6653_v30 = vcombine.low %v3991_v21, %v3995_v22  ;;  %v4051_v21 = vld [vmem:[#allocation13 + $0x6f8] sm:$0xff] }
 0x58b   : > { %5679 = vmatpush1.bf16.msra.mxu0 %v6597_v31  ;;  %5598 = vmatprep.subr.bf16.mxu1 %v6604_v32  ;;  %v6660_v31 = vcombine.high %v3998_v27, %v4002_v18  ;;  %v6662_v32 = vcombine.high %v3999_v28, %v4003_v29  ;;  %v4058_v27 = vld [vmem:[#allocation13 + $0x730] sm:$0xff]  ;;  %v4055_v18 = vld [vmem:[#allocation13 + $0x718] sm:$0xff] }
 0x58c   : > { %5680 = vmatprep.subr.bf16.mxu0 %v6606_v33  ;;  %v4006_v33 = vld [vmem:[#allocation13 + $0x590] sm:$0xff] }
 0x58d   : > { %v6667_v25 = vcombine.low %v4006_v33, %v4010_v2 }
 0x58e   : > { %5599 = vmatpush1.bf16.msra.mxu1 %v6603_v39  ;;  %v6661_v39 = vcombine.low %v3999_v28, %v4003_v29  ;;  %v4059_v28 = vld [vmem:[#allocation13 + $0x738] sm:$0xff] }
 0x58f   : > { %5681 = vmatpush1.bf16.msra.mxu0 %v6605_v40  ;;  %5600 = vmatprep.subr.bf16.mxu1 %v6612_v41  ;;  %v6668_v40 = vcombine.high %v4006_v33, %v4010_v2  ;;  %v6670_v41 = vcombine.high %v4007_v34, %v4011_v36  ;;  %v4066_v33 = vld [vmem:[#allocation13 + $0x770] sm:$0xff]  ;;  %v4063_v2 = vld [vmem:[#allocation13 + $0x758] sm:$0xff] }
 0x590   : > { %5682 = vmatprep.subr.bf16.mxu0 %v6614_v42  ;;  %v4014_v42 = vld [vmem:[#allocation13 + $0x5d0] sm:$0xff] }
 0x591   : > { %v6675_v58 = vcombine.low %v4014_v42, %v4018_v43 }
 0x592   : > { %5601 = vmatpush1.bf16.msra.mxu1 %v6611_v47  ;;  %v6669_v47 = vcombine.low %v4007_v34, %v4011_v36  ;;  %v4067_v34 = vld [vmem:[#allocation13 + $0x778] sm:$0xff] }
 0x593   : > { %5683 = vmatpush1.bf16.msra.mxu0 %v6613_v48  ;;  %5611 = vmatprep.subr.bf16.mxu1 %v6620_v50  ;;  %v6676_v48 = vcombine.high %v4014_v42, %v4018_v43  ;;  %v6678_v50 = vcombine.high %v4015_v44, %v4019_v46  ;;  %v4074_v42 = vld [vmem:[#allocation13 + $0x7b0] sm:$0xff]  ;;  %v4071_v43 = vld [vmem:[#allocation13 + $0x798] sm:$0xff] }
 0x594   : > { %5693 = vmatprep.subr.bf16.mxu0 %v6622_v35  ;;  %v4022_v35 = vld [vmem:[#allocation13 + $0x610] sm:$0xff]  ;;  %v4075_v44 = vld [vmem:[#allocation13 + $0x7b8] sm:$0xff] }
 0x595   : > { %5603 = vmatmul.mubr.bf16.vlgmr.msra.gmra.mrb[16].mxu1 %v8447_v7 }
 0x596   : > { %5685 = vmatmul.mubr.bf16.vlgmr.msra.gmra.mrb[12].mxu0 %v8447_v7  ;;  %5612 = vmatpush1.bf16.msra.mxu1 %v6619_v49  ;;  %v6637_v7 = vcombine.low %v3975_v62, %v3979_v63  ;;  %v4027_v49 = vld [vmem:[#allocation13 + $0x638] sm:$0xff]  ;;  %v6683_v63 = vcombine.low %v4022_v35, %v4026_v51 }
 0x597   : > { %5643 = vmatprep.mubr.bf16.mxu1 %v8457_v23  ;;  %5694 = vmatpush1.bf16.msra.mxu0 %v6621_v60  ;;  %v6684_v60 = vcombine.high %v4022_v35, %v4026_v51  ;;  %v4035_v62 = vld [vmem:[#allocation13 + $0x678] sm:$0xff]  ;;  %v4082_v35 = vld [vmem:[#allocation13 + $0x7f0] sm:$0xff] }
 0x598   : > { %5725 = vmatprep.mubr.bf16.mxu0 %v8457_v23  ;;  %5613 = vmatprep.subr.bf16.mxu1 %v6628_v20  ;;  %v6643_v23 = vcombine.low %v3982_v9, %v3986_v12  ;;  %v6686_v20 = vcombine.high %v4023_v52, %v4027_v49  ;;  %v4042_v9 = vld [vmem:[#allocation13 + $0x6b0] sm:$0xff]  ;;  %v4039_v12 = vld [vmem:[#allocation13 + $0x698] sm:$0xff] }
 0x599   : > { %5695 = vmatprep.subr.bf16.mxu0 %v6630_v56  ;;  %v4031_v56 = vld [vmem:[#allocation13 + $0x658] sm:$0xff] }
 0x59a   : > { %5614 = vmatpush1.bf16.msra.mxu1 %v6627_v1  ;;  %v6685_v1 = vcombine.low %v4023_v52, %v4027_v49  ;;  %v4079_v51 = vld [vmem:[#allocation13 + $0x7d8] sm:$0xff] }
 0x59b   : > { %5696 = vmatpush1.bf16.msra.mxu0 %v6629_v3  ;;  %5615 = vmatprep.subr.bf16.mxu1 %v6636_v4  ;;  %v6692_v3 = vcombine.high %v4030_v61, %v4034_v6  ;;  %v6694_v4 = vcombine.high %v4031_v56, %v4035_v62  ;;  %v4083_v52 = vld [vmem:[#allocation13 + $0x7f8] sm:$0xff]  ;;  %v8476_v6 = vld [vmem:[#allocation14] sm:$0xff] }
 0x59c   : > { %5697 = vmatprep.subr.bf16.mxu0 %v6638_v8  ;;  %v4038_v8 = vld [vmem:[#allocation13 + $0x690] sm:$0xff]  ;;  %v6741_v61 = vcombine.low %v4079_v51, %v4083_v52 }
 0x59d   : > { %v6699_v22 = vcombine.low %v4038_v8, %v4042_v9 }
 0x59e   : > { %5616 = vmatpush1.bf16.msra.mxu1 %v6635_v17  ;;  %v6693_v17 = vcombine.low %v4031_v56, %v4035_v62  ;;  %v5369_v56 = vrot.slane %v8476_v6, %v8395_v54  ;;  %v5377_v62 = vrot.slane %v8476_v6, %v8414_v45 }
 0x59f   : > { %5698 = vmatpush1.bf16.msra.mxu0 %v6637_v7  ;;  %5617 = vmatprep.subr.bf16.mxu1 %v6644_v11  ;;  %v6700_v7 = vcombine.high %v4038_v8, %v4042_v9  ;;  %v6702_v11 = vcombine.high %v4039_v12, %v4043_v13 }
 0x5a0   : > { %5699 = vmatprep.subr.bf16.mxu0 %v6646_v15  ;;  %v4046_v15 = vld [vmem:[#allocation13 + $0x6d0] sm:$0xff] }
 0x5a1   : > { %v6707_v29 = vcombine.low %v4046_v15, %v4050_v19 }
 0x5a2   : > { %5618 = vmatpush1.bf16.msra.mxu1 %v6643_v23  ;;  %v6701_v23 = vcombine.low %v4039_v12, %v4043_v13 }
 0x5a3   : > { %5700 = vmatpush1.bf16.msra.mxu0 %v6645_v24  ;;  %5619 = vmatprep.subr.bf16.mxu1 %v6652_v26  ;;  %v6708_v24 = vcombine.high %v4046_v15, %v4050_v19  ;;  %v6710_v26 = vcombine.high %v4047_v0, %v4051_v21 }
 0x5a4   : > { %5701 = vmatprep.subr.bf16.mxu0 %v6654_v53  ;;  %v4054_v53 = vld [vmem:[#allocation13 + $0x710] sm:$0xff] }
 0x5a5   : > { %v6715_v36 = vcombine.low %v4054_v53, %v4058_v27 }
 0x5a6   : > { %5620 = vmatpush1.bf16.msra.mxu1 %v6651_v55  ;;  %v6709_v55 = vcombine.low %v4047_v0, %v4051_v21 }
 0x5a7   : > { %5702 = vmatpush1.bf16.msra.mxu0 %v6653_v30  ;;  %5621 = vmatprep.subr.bf16.mxu1 %v6660_v31  ;;  %v6716_v30 = vcombine.high %v4054_v53, %v4058_v27  ;;  %v6718_v31 = vcombine.high %v4055_v18, %v4059_v28 }
 0x5a8   : > { %5703 = vmatprep.subr.bf16.mxu0 %v6662_v32  ;;  %v4062_v32 = vld [vmem:[#allocation13 + $0x750] sm:$0xff] }
 0x5a9   : > { %v6723_v46 = vcombine.low %v4062_v32, %v4066_v33 }
 0x5aa   : > { %5622 = vmatpush1.bf16.msra.mxu1 %v6659_v38  ;;  %v6717_v38 = vcombine.low %v4055_v18, %v4059_v28 }
 0x5ab   : > { %5704 = vmatpush1.bf16.msra.mxu0 %v6661_v39  ;;  %5623 = vmatprep.subr.bf16.mxu1 %v6668_v40  ;;  %v6724_v39 = vcombine.high %v4062_v32, %v4066_v33  ;;  %v6726_v40 = vcombine.high %v4063_v2, %v4067_v34 }
 0x5ac   : > { %5705 = vmatprep.subr.bf16.mxu0 %v6670_v41  ;;  %v4070_v41 = vld [vmem:[#allocation13 + $0x790] sm:$0xff] }
 0x5ad   : > { %v6731_v49 = vcombine.low %v4070_v41, %v4074_v42 }
 0x5ae   : > { %5624 = vmatpush1.bf16.msra.mxu1 %v6667_v25  ;;  %v6725_v25 = vcombine.low %v4063_v2, %v4067_v34 }
 0x5af   : > { %5706 = vmatpush1.bf16.msra.mxu0 %v6669_v47  ;;  %5625 = vmatprep.subr.bf16.mxu1 %v6676_v48  ;;  %v6732_v47 = vcombine.high %v4070_v41, %v4074_v42  ;;  %v6734_v48 = vcombine.high %v4071_v43, %v4075_v44 }
 0x5b0   : > { %5707 = vmatprep.subr.bf16.mxu0 %v6678_v50  ;;  %v4078_v50 = vld [vmem:[#allocation13 + $0x7d0] sm:$0xff] }
 0x5b2   : > { %5626 = vmatpush1.bf16.msra.mxu1 %v6675_v58  ;;  %v6733_v58 = vcombine.low %v4071_v43, %v4075_v44 }
 0x5b3   : > { %5708 = vmatpush1.bf16.msra.mxu0 %v6677_v59  ;;  %5627 = vmatprep.subr.bf16.mxu1 %v6684_v60  ;;  %v6740_v59 = vcombine.high %v4078_v50, %v4082_v35  ;;  %v6742_v60 = vcombine.high %v4079_v51, %v4083_v52 }
 0x5b4   : > { %5709 = vmatprep.subr.bf16.mxu0 %v6686_v20  ;;  %v6739_v20 = vcombine.low %v4078_v50, %v4082_v35 }
 0x5b6   : > { %5628 = vmatpush1.bf16.msra.mxu1 %v6683_v63  ;;  %v5373_v63 = vrot.slane %v8476_v6, %v8400_v57 }
 0x5b7   : > { %5710 = vmatpush1.bf16.msra.mxu0 %v6685_v1  ;;  %5629 = vmatprep.subr.bf16.mxu1 %v6692_v3  ;;  %v5381_v1 = vrot.slane %v8476_v6, %v8409_v16 }
 0x5b8   : > { %5711 = vmatprep.subr.bf16.mxu0 %v6694_v4 }
 0x5ba   : > { %5630 = vmatpush1.bf16.msra.mxu1 %v6691_v14 }
 0x5bb   : > { %5712 = vmatpush1.bf16.msra.mxu0 %v6693_v17  ;;  %5631 = vmatprep.subr.bf16.mxu1 %v6700_v7 }
 0x5bc   : > { %5713 = vmatprep.subr.bf16.mxu0 %v6702_v11 }
 0x5be   : > { %5632 = vmatpush1.bf16.msra.mxu1 %v6699_v22 }
 0x5bf   : > { %5714 = vmatpush1.bf16.msra.mxu0 %v6701_v23  ;;  %5633 = vmatprep.subr.bf16.mxu1 %v6708_v24 }
 0x5c0   : > { %5715 = vmatprep.subr.bf16.mxu0 %v6710_v26 }
 0x5c2   : > { %5634 = vmatpush1.bf16.msra.mxu1 %v6707_v29 }
 0x5c3   : > { %5716 = vmatpush1.bf16.msra.mxu0 %v6709_v55  ;;  %5635 = vmatprep.subr.bf16.mxu1 %v6716_v30 }
 0x5c4   : > { %5717 = vmatprep.subr.bf16.mxu0 %v6718_v31 }
 0x5c6   : > { %5636 = vmatpush1.bf16.msra.mxu1 %v6715_v36 }
 0x5c7   : > { %5718 = vmatpush1.bf16.msra.mxu0 %v6717_v38  ;;  %5637 = vmatprep.subr.bf16.mxu1 %v6724_v39 }
 0x5c8   : > { %5719 = vmatprep.subr.bf16.mxu0 %v6726_v40 }
 0x5ca   : > { %5638 = vmatpush1.bf16.msra.mxu1 %v6723_v46 }
 0x5cb   : > { %5720 = vmatpush1.bf16.msra.mxu0 %v6725_v25  ;;  %5639 = vmatprep.subr.bf16.mxu1 %v6732_v47 }
 0x5cc   : > { %5721 = vmatprep.subr.bf16.mxu0 %v6734_v48 }
 0x5ce   : > { %5640 = vmatpush1.bf16.msra.mxu1 %v6731_v49 }
 0x5cf   : > { %5722 = vmatpush1.bf16.msra.mxu0 %v6733_v58  ;;  %5641 = vmatprep.subr.bf16.mxu1 %v6740_v59 }
 0x5d0   : > { %5723 = vmatprep.subr.bf16.mxu0 %v6742_v60 }
 0x5d2   : > { %5642 = vmatpush1.bf16.msra.mxu1 %v6739_v20 }
 0x5d3   : > { %5724 = vmatpush1.bf16.msra.mxu0 %v6741_v61 }
 0x5d5   : > { %5644 = vmatmul.mubr.bf16.vlgmr.msra.gmra.mrb[16].mxu1 %v8464_v37 }
 0x5d6   : > { %5726 = vmatmul.mubr.bf16.vlgmr.msra.gmra.mrb[12].mxu0 %v8464_v37 }
 0x628   : > { %v5481_v3 = vpop.f32.mrb[12].mxu1  ;;  %v5563_v4 = vpop.f32.mrb[8].mxu0 }
 0x629   : > { %v6827_v8 = vadd.f32 %v5481_v3, %v5369_v56  ;;  %v6829_v9 = vadd.f32 %v5563_v4, %v5377_v62  ;;  %v5483_v12 = vpop.f32.mrb[13].mxu1  ;;  %v5565_v37 = vpop.f32.mrb[9].mxu0 }
 0x62a   : > { %v6828_v13 = vadd.f32 %v5483_v12, %v5373_v63  ;;  %v6830_v14 = vadd.f32 %v5565_v37, %v5381_v1  ;;  %v5485_v17 = vpop.f32.mrb[14].mxu1  ;;  %v5567_v7 = vpop.f32.mrb[10].mxu0 }
 0x62b   : > { %v6743_v54 = vmul.f32 -1.442695, %v6827_v8  ;;  %v6745_v11 = vmul.f32 -1.442695, %v6829_v9  ;;  %v5486_v15 = vpop.f32.mrb[15].mxu1  ;;  %v5568_v45 = vpop.f32.mrb[11].mxu0 }
 0x62c   : > { %v6744_v19 = vmul.f32 -1.442695, %v6828_v13  ;;  %v6746_v0 = vmul.f32 -1.442695, %v6830_v14 }
 0x62d   : > { %7611 = vpow2.f32 %v6743_v54 }
 0x62e   : > { %7613 = vpow2.f32 %v6745_v11 }
 0x62f   : > { %7615 = vpow2.f32 %v6744_v19 }
 0x630   : > { %7617 = vpow2.f32 %v6746_v0 }
 0x637   : > { %v7612_v57 = vpop.eup %7611 }
 0x638   : > { %v7614_v16 = vpop.eup %7613  ;;  %v5758_v21 = vadd.f32 1.0, %v7612_v57 }
 0x639   : > { %v7616_v22 = vpop.eup %7615  ;;  %v5760_v23 = vadd.f32 1.0, %v7614_v16 }
 0x63a   : > { %v7618_v24 = vpop.eup %7617  ;;  %7619 = vrcp.f32 %v5758_v21  ;;  %v5759_v26 = vadd.f32 1.0, %v7616_v22 }
 0x63b   : > { %7621 = vrcp.f32 %v5760_v23  ;;  %v5761_v53 = vadd.f32 1.0, %v7618_v24 }
 0x63c   : > { %7623 = vrcp.f32 %v5759_v26 }
 0x63d   : > { %7625 = vrcp.f32 %v5761_v53 }
 0x644   : > { %v7620_v27 = vpop.eup %7619 }
 0x645   : > { %v7622_v18 = vpop.eup %7621 }
 0x646   : > { %v7624_v28 = vpop.eup %7623 }
 0x647   : > { %v7626_v29 = vpop.eup %7625  ;;  %v5790_v55 = vcombine.low %v7620_v27, %v7624_v28 }
 0x648   : > { %v5791_v30 = vcombine.low %v7622_v18, %v7626_v29 }
 0x649   : > { %v8487_v31 = vrot.slane %v5790_v55, %v8336_v10 }
 0x64a   : > { %v8490_v32 = vrot.slane %v5791_v30, %v8336_v10 }
 0x64c   : > { %v5822_v33 = vcombine.low %v8487_v31, %v8490_v32 }
 0x64d   : > { %7881 = shalt.err (!%p7878_p9)
}
 0x64e   : > { %s7882_s16 = scalar_lea.hbm %s8502_s21, 16  ;;  %s7886_s23 = scalar_lea.hbm %s8596_s11, 32 }
 0x64f   : > { %p7883_p12 = scmp.ne.s32.totalorder %s8502_s21, %s7882_s16  ;;  %p7887_p3 = scmp.lt.u32.totalorder %s8502_s21, %s8596_s11 }
 0x650   : > { %p7888_p4 = scmp.lt.u32.totalorder %s7886_s23, %s7882_s16  ;;  %p7890_p8 = scmp.lt.u32.totalorder %s7882_s16, %s8502_s21 }
 0x651   : > { %p7884_p10 = pnand %p7883_p12, %p8633_p11 }
 0x652   : > { %p7889_p7 = por %p7888_p4, %p7887_p3 }
 0x653   : > { %p7885_p2 = pneg %p7884_p10 }
 0x654   : > { %p7891_p13 = por %p7890_p8, %p7889_p7 }
 0x656   : > { %p7892_p1 = pnand %p7891_p13, %p7885_p2 }
 0x658   : > { %7895 = shalt.err (!%p7892_p1)
}
 0x659   : > { %6924 = dma.vmem_to_hbm [thread:$0]  (%p8633_p11), %s5868_s3, 16, %s8502_s21, %s5848_s14  }
 0x65a   : > { %s8527_s26 = scalar_lea.hbm %s8597_s12, %s6751_s29  ;;  %s5880_s5 = sshll.u32 %s539_s30, 4  ;;  %s5881_s5 = int_to_ptr.vmem [resolvable:$true] %s5880_s5 }
 0x65b   : > { %s5852_s16 = scalar_lea.sflag [#allocation18], %s8420_s24  ;;  %s7896_s19 = scalar_lea.vmem %s5881_s5, 16 }
 0x65c   : > { %p7897_p0 = scmp.ne.s32.totalorder %s5881_s5, %s7896_s19  ;;  %s8002_s28 = smov [#allocation17]  }
 0x65d   : > { %s7900_s23 = sshll.u32 %s8002_s28, 4  ;;  %s7901_s23 = int_to_ptr.vmem [resolvable:$false] %s7900_s23 }
 0x65e   : > { %p7898_p6 = pnand %p7897_p0, %p8633_p11  ;;  %s7902_s27 = scalar_lea.vmem %s7901_s23, 32 }
 0x65f   : > { %p7903_p9 = scmp.lt.s32.totalorder %s5881_s5, %s7901_s23  ;;  %p7904_p12 = scmp.lt.s32.totalorder %s7902_s27, %s7896_s19 }
 0x660   : > { %p7899_p5 = pneg %p7898_p6 }
 0x661   : > { %p7905_p10 = por %p7904_p12, %p7903_p9 }
 0x663   : > { %p7906_p2 = pnand %p7905_p10, %p7899_p5 }
 0x665   : > { %7909 = shalt.err (!%p7906_p2)
}
 0x666   : > { %s7910_s25 = scalar_lea.hbm %s8527_s26, 16  ;;  %s7914_s29 = scalar_lea.hbm %s8597_s12, 32 }
 0x667   : > { %p7911_p3 = scmp.ne.s32.totalorder %s8527_s26, %s7910_s25  ;;  %p7915_p8 = scmp.lt.u32.totalorder %s8527_s26, %s8597_s12 }
 0x668   : > { %p7916_p13 = scmp.lt.u32.totalorder %s7914_s29, %s7910_s25  ;;  %p7918_p0 = scmp.lt.u32.totalorder %s7910_s25, %s8527_s26 }
 0x669   : > { %p7912_p4 = pnand %p7911_p3, %p8633_p11 }
 0x66a   : > { %p7917_p1 = por %p7916_p13, %p7915_p8 }
 0x66b   : > { %p7913_p7 = pneg %p7912_p4 }
 0x66c   : > { %p7919_p6 = por %p7918_p0, %p7917_p1 }
 0x66e   : > { %p7920_p5 = pnand %p7919_p6, %p7913_p7 }
 0x670   : > { %7923 = shalt.err (!%p7920_p5)
}
 0x671   : > { %6925 = dma.vmem_to_hbm [thread:$0]  (%p8633_p11), %s5881_s5, 16, %s8527_s26, %s5852_s16   ;;  %v5384_v2 = vsub.s32 4, %v8328_v5  ;;  %v5392_v34 = vsub.s32 6, %v8328_v5  ;;  %v5388_v36 = vsub.s32 5, %v8328_v5  ;;  %v5396_v38 = vsub.s32 7, %v8328_v5 }
 0x672   : > { %s6095_s13 = sshll.u32 %s8325_s15, 3  ;;  %v5830_v11 = vrot.slane %v5822_v33, %v8336_v10 }
 0x673   : > { %v5385_v39 = vrot.slane %v8476_v6, %v5384_v2  ;;  %v5393_v40 = vrot.slane %v8476_v6, %v5392_v34  ;;  %v5389_v41 = vrot.slane %v8476_v6, %v5388_v36  ;;  %v5397_v42 = vrot.slane %v8476_v6, %v5396_v38  ;;  %s550_s20 = scalar_lea.vmem %s8595_s10, %s6095_s13 }
 0x6a8   : > { %v5645_v43 = vpop.f32.mrb[16].mxu1 }
 0x6a9   : > { %v6831_v44 = vadd.f32 %v5645_v43, %v5385_v39  ;;  %v5727_v46 = vpop.f32.mrb[12].mxu0  ;;  %v5647_v25 = vpop.f32.mrb[17].mxu1 }
 0x6aa   : > { %v6833_v47 = vadd.f32 %v5727_v46, %v5393_v40  ;;  %v6832_v48 = vadd.f32 %v5647_v25, %v5389_v41  ;;  %v5729_v50 = vpop.f32.mrb[13].mxu0  ;;  %v5649_v35 = vpop.f32.mrb[18].mxu1 }
 0x6ab   : > { %v6747_v51 = vmul.f32 -1.442695, %v6831_v44  ;;  %v6834_v52 = vadd.f32 %v5729_v50, %v5397_v42  ;;  %v5731_v49 = vpop.f32.mrb[14].mxu0  ;;  %v5650_v5 = vpop.f32.mrb[19].mxu1 }
 0x6ac   : > { %v6749_v58 = vmul.f32 -1.442695, %v6833_v47  ;;  %v6748_v59 = vmul.f32 -1.442695, %v6832_v48  ;;  %v5732_v60 = vpop.f32.mrb[15].mxu0 }
 0x6ad   : > { %7627 = vpow2.f32 %v6747_v51  ;;  %v6750_v20 = vmul.f32 -1.442695, %v6834_v52 }
 0x6ae   : > { %7629 = vpow2.f32 %v6749_v58 }
 0x6af   : > { %7631 = vpow2.f32 %v6748_v59 }
 0x6b0   : > { %7633 = vpow2.f32 %v6750_v20 }
 0x6b7   : > { %v7628_v61 = vpop.eup %7627 }
 0x6b8   : > { %v7630_v6 = vpop.eup %7629  ;;  %v5762_v56 = vadd.f32 1.0, %v7628_v61 }
 0x6b9   : > { %v7632_v62 = vpop.eup %7631  ;;  %v5764_v63 = vadd.f32 1.0, %v7630_v6 }
 0x6ba   : > { %v7634_v1 = vpop.eup %7633  ;;  %7635 = vrcp.f32 %v5762_v56  ;;  %v5763_v3 = vadd.f32 1.0, %v7632_v62 }
 0x6bb   : > { %7637 = vrcp.f32 %v5764_v63  ;;  %v5765_v4 = vadd.f32 1.0, %v7634_v1 }
 0x6bc   : > { %7639 = vrcp.f32 %v5763_v3 }
 0x6bd   : > { %7641 = vrcp.f32 %v5765_v4 }
 0x6c4   : > { %v7636_v8 = vpop.eup %7635 }
 0x6c5   : > { %v7638_v9 = vpop.eup %7637 }
 0x6c6   : > { %v7640_v12 = vpop.eup %7639 }
 0x6c7   : > { %v7642_v37 = vpop.eup %7641  ;;  %v5792_v13 = vcombine.low %v7636_v8, %v7640_v12 }
 0x6c8   : > { %v5793_v14 = vcombine.low %v7638_v9, %v7642_v37 }
 0x6c9   : > { %v5814_v17 = vrot.slane %v5792_v13, %v8336_v10 }
 0x6ca   : > { %v5821_v7 = vrot.slane %v5793_v14, %v8336_v10 }
 0x6cc   : > { %v5823_v54 = vcombine.low %v5814_v17, %v5821_v7 }
 0x6ce   : > { %v5837_v15 = vrot.slane %v5823_v54, %v8336_v10 }
 0x6d0   : > { %v5838_v45 = vcombine.low %v5830_v11, %v5837_v15 }
 0x6d2   : > { %5840 = vst [vmem:[%s550_s20] sm:$0xff] %v5838_v45 }
 0x6d3 PF: > { %s8634_s18 = sld [smem:[#allocation28_spill]]  ;;  %s8635_s26 = sld [smem:[#allocation26_spill]] }
 0x6d4   : > { %s8636_s5 = sld [smem:[#allocation31_spill]] }
 0x6d9   : > { %p6976_p11 = scmp.ge.s32.totalorder %s8634_s18, 2  ;;  %s5899_s15 = sand.u32 1, %s8635_s26  }
 0x6da   : > { %p8637_p9 = scmp.ne.s32.totalorder %s8636_s5, 0  ;;  %s5900_s16 = scalar_lea.sflag [#allocation4], %s5899_s15 }
 0x6dc   : > { %p6954_p12 = pnand %p6976_p11, %p8637_p9 }
 0x6de   : > { %7961 = dma.done.wait (!%p6954_p12), %s5900_s16, 16  }
 0x6df   : > { %7963 = vsyncadd (!%p6954_p12), %s5900_s16, 4294967280  ;;  %s5908_s19 = scalar_lea.sflag [#allocation18], %s5899_s15 }
 0x6e0   : > { %7965 = dma.done.wait (!%p6954_p12), %s5908_s19, 16  }
 0x6e1   : > { %7967 = vsyncadd (!%p6954_p12), %s5908_s19, 4294967280  ;;  %s8638_s24 = sld [smem:[#allocation29_spill]]  ;;  %s8639_s28 = sld [smem:[#allocation27_spill]] }
 0x6e2   : > { %s8640_s23 = sld [smem:[#allocation30_spill]]  ;;  %s8641_s21 = smov %s7974_s22 }
 0x6e7   : > { %p31_p10 = scmp.ge.s32.totalorder %s8638_s24, 4   ;;  %s8642_s22 = smov %s8639_s28 }
 0x6e9   :  { %33 = sbr.rel (!%p31_p10) target bundleno = 13 (0xd), region = 160 }
 0x6f0   :  { %5912 = vsyncpa [#allocation3], 1 }
 0x6f1   :  { %5914 = vsyncpa [#allocation3 + $0x1], 1 }
 0x6f2   :  { %5915 = vsyncpa [#allocation6], 1 }
 0x6f3   :  { %5916 = vsyncpa [#allocation9], 1 }
 0x6f4   :  { %5917 = vsyncpa [#allocation12], 1 }
 0x6f5   :  { %5918 = vsyncpa [#allocation15], 1 }
 0x6f6   :  { %5919 = vsyncpa [#allocation4], 1 }
 0x6f7   :  { %5921 = vsyncpa [#allocation4 + $0x1], 1 }
 0x6f8   :  { %5922 = vsyncpa [#allocation18], 1 }
 0x6f9   :  { %5924 = vsyncpa [#allocation18 + $0x1], 1 }

</bundles_post_ra>
